<compile_context>
chip_gen: v7x
topology: tpu7x:2x2x1
jax: 0.10.0
libtpu: 0.0.40
codegen_flags: <defaults>
</compile_context>

<pallas_src>
import math
from functools import partial

import jax
import jax.numpy as jnp
from jax import lax
from jax.experimental import pallas as pl
from jax.experimental.pallas import tpu as pltpu


def _complex_tanh(re, im):
    # tanh(x+iy) = (sinh(2x) + i*sin(2y)) / (cosh(2x) + cos(2y))
    # 2x is clamped so exp() never overflows in f32 (result unchanged to f32 eps).
    two_x = jnp.clip(2.0 * re, -40.0, 40.0)
    two_y = 2.0 * im
    e_p = jnp.exp(two_x)
    e_m = jnp.exp(-two_x)                       # exact (EUP), not approx reciprocal
    sinh2x = 0.5 * (e_p - e_m)
    cosh2x = 0.5 * (e_p + e_m)
    inv_den = 1.0 / (cosh2x + jnp.cos(two_y))   # exact reciprocal (tiny tensor now)
    return sinh2x * inv_den, jnp.sin(two_y) * inv_den


def feaf_lowpass_kernel(x_ref, fwd_ref, inv_ref, o_ref, *, gk, c, m8):
    """One (batch, K-group) step: x (3, gk*C, Tst) bf16 -> out (gk*C, Tst) bf16."""
    _, _, gkc, tst = x_ref.shape

    x = x_ref[0].reshape(3 * gkc, tst)            # (3*gkC, Tst) bf16
    fwd = fwd_ref[...]                            # (Tst, Fp)   bf16 : [cos | -sin | 0]
    inv = inv_ref[...]                            # (2*M8, Tst) bf16 : [cr ; ci], scaled

    # ---- Stage 1: forward DFT / mode-select for q,k,v in ONE MXU matmul ----
    ft = jnp.dot(x, fwd, preferred_element_type=jnp.float32)      # (3*gkC, Fp) f32
    ft_bf = ft.astype(jnp.bfloat16)                               # single cast pass
    qf = ft_bf[:gkc].reshape(gk, c, -1)                           # (gk, C, Fp)
    kf = ft_bf[gkc:2 * gkc].reshape(gk, c, -1)
    vf = ft_bf[2 * gkc:].reshape(gk, c, -1)

    # ---- Stage 2: all four real products of complex QK^T in one batched matmul ----
    # big[g, x, y] = sum_d qf[g, d, x] * kf[g, d, y]
    big = lax.dot_general(qf, kf, (((1,), (1,)), ((0,), (0,))),
                          preferred_element_type=jnp.float32)     # (gk, Fp, Fp)
    s_re = big[:, :m8, :m8] - big[:, m8:2 * m8, m8:2 * m8]        # (gk, M8, M8)
    s_im = big[:, :m8, m8:2 * m8] + big[:, m8:2 * m8, :m8]

    # ---- Stage 3: complex tanh, restricted to the (M8, M8) live modes ----
    t_re, t_im = _complex_tanh(s_re, s_im)
    t_re = t_re.astype(jnp.bfloat16)
    t_im = t_im.astype(jnp.bfloat16)

    # ---- Stage 4: complex (QK)V as four small real batched matmuls (no t12) ----
    v_re = vf[:, :, :m8]                                          # (gk, C, M8)
    v_im = vf[:, :, m8:2 * m8]
    dn = (((2,), (2,)), ((0,), (0,)))
    a_re = (lax.dot_general(v_re, t_re, dn, preferred_element_type=jnp.float32)
            - lax.dot_general(v_im, t_im, dn, preferred_element_type=jnp.float32))
    a_im = (lax.dot_general(v_re, t_im, dn, preferred_element_type=jnp.float32)
            + lax.dot_general(v_im, t_re, dn, preferred_element_type=jnp.float32))

    # ---- Stage 5: scaled irfft back to (zero-padded) time, one MXU matmul ----
    a2 = jnp.concatenate([a_re.astype(jnp.bfloat16),
                          a_im.astype(jnp.bfloat16)], axis=-1)    # (gk, C, 2*M8) bf16
    out = jnp.dot(a2.reshape(gkc, 2 * m8), inv,
                  preferred_element_type=jnp.float32)             # (gkC, Tst) f32
    o_ref[0] = out.astype(o_ref.dtype)                            # lane-dense bf16 store


def _choose_gk(kwav, c, batch):
    """Split the K axis across the grid when the batch is small so there are
    >= 4 parallel grid steps (v7x has 2 TensorCores), while keeping gk*c >= 128
    dense MXU rows per step."""
    divs = [d for d in range(1, kwav + 1) if kwav % d == 0]
    ok = [d for d in divs if (d * c) >= 128 and (d * c) % 8 == 0]
    if not ok:
        return kwav
    for d in sorted(ok, reverse=True):
        if batch * (kwav // d) >= 4:
            return d
    return min(ok)


def feaf_lowpass(xqkv, *, kwav, c, num_modes, d_model, t_dft):
    """xqkv: (B, 3, K*C, Tst) bf16 (stacked q/k/v, time zero-padded past t_dft)
       -> (B, K*C, Tst) bf16."""
    B, three, KC, Tst = xqkv.shape
    assert three == 3 and KC == kwav * c and Tst % 128 == 0

    M = min(t_dft // 2, num_modes)
    M8 = ((max(M, 1) + 7) // 8) * 8                       # sublane-aligned live modes
    Fp = max(128, ((2 * M8 + 127) // 128) * 128)          # lane-dense combined re|im axis
    scale = 1.0 / d_model / d_model

    n = jnp.arange(Tst, dtype=jnp.float32)
    m = jnp.arange(M8, dtype=jnp.float32)
    live = ((m < M)[None, :] & (n < t_dft)[:, None]).astype(jnp.float32)   # (Tst, M8)
    ang = 2.0 * jnp.pi * jnp.outer(n, m) / t_dft                           # (Tst, M8)
    fc = jnp.cos(ang) * live                              # Re(X[m]) = x @ fc
    fs = -jnp.sin(ang) * live                             # Im(X[m]) = x @ fs
    fwd = (jnp.zeros((Tst, Fp), jnp.float32)
           .at[:, :M8].set(fc)
           .at[:, M8:2 * M8].set(fs)).astype(jnp.bfloat16)                 # (Tst, Fp)

    w_re = jnp.where(m == 0, 1.0, 2.0)                    # irfft weights
    w_im = jnp.where(m == 0, 0.0, 2.0)                    # imag of DC mode is dropped
    cr = (scale / t_dft) * w_re[:, None] * (jnp.cos(ang) * live).T         # (M8, Tst)
    ci = -(scale / t_dft) * w_im[:, None] * (jnp.sin(ang) * live).T
    inv = jnp.concatenate([cr, ci], axis=0).astype(jnp.bfloat16)           # (2*M8, Tst)

    gk = _choose_gk(kwav, c, B)
    gkc = gk * c
    grid = (B, kwav // gk)

    # Tight scoped-VMEM budget: pipeline buffers + bases + in-kernel temps,
    # plus compiler headroom, capped well under v7x's 64 MiB per TensorCore.
    bf, f32 = 2, 4
    est = (2 * (3 * gkc * Tst * bf)            # double-buffered stacked input block
           + 2 * (gkc * Tst * bf)              # double-buffered bf16 output block
           + 2 * (Tst * Fp * bf)               # forward DFT basis
           + 2 * (2 * M8 * Tst * bf)           # inverse DFT basis
           + 3 * gkc * Fp * (f32 + bf)         # ft + bf16 copy
           + gk * Fp * Fp * f32                # Stage-2 product
           + 10 * gk * M8 * M8 * f32           # s_re/s_im/tanh temporaries
           + 2 * gk * c * M8 * (f32 + bf)      # a_re/a_im (+bf16)
           + gkc * Tst * (f32 + bf))           # Stage-5 result before cast/store
    vmem_limit = int(min(est + (16 << 20), 48 << 20))

    kernel = partial(feaf_lowpass_kernel, gk=gk, c=c, m8=M8)
    return pl.pallas_call(
        kernel,
        out_shape=jax.ShapeDtypeStruct((B, KC, Tst), jnp.bfloat16),
        grid=grid,
        in_specs=[
            pl.BlockSpec((1, 3, gkc, Tst), lambda b, g: (b, 0, g, 0)),
            pl.BlockSpec((Tst, Fp), lambda b, g: (0, 0)),
            pl.BlockSpec((2 * M8, Tst), lambda b, g: (0, 0)),
        ],
        out_specs=pl.BlockSpec((1, gkc, Tst), lambda b, g: (b, g, 0)),
        compiler_params=pltpu.CompilerParams(
            dimension_semantics=("parallel", "parallel"),
            vmem_limit_bytes=vmem_limit),
    )(xqkv, fwd, inv)


def init_feaw_params(key, d_model, c, k):
    ks = jax.random.split(key, 8)
    s_in = 1.0 / math.sqrt(d_model)
    s_out = 1.0 / math.sqrt(c * k)
    return {
        "Wq": jax.random.normal(ks[0], (d_model, c * k), jnp.float32) * s_in,
        "bq": jax.random.normal(ks[1], (c * k,), jnp.float32) * s_in,
        "Wk": jax.random.normal(ks[2], (d_model, c * k), jnp.float32) * s_in,
        "bk": jax.random.normal(ks[3], (c * k,), jnp.float32) * s_in,
        "Wv": jax.random.normal(ks[4], (d_model, c * k), jnp.float32) * s_in,
        "bv": jax.random.normal(ks[5], (c * k,), jnp.float32) * s_in,
        "Wo": jax.random.normal(ks[6], (c * k, d_model), jnp.float32) * s_out,
        "bo": jax.random.normal(ks[7], (d_model,), jnp.float32) * s_out,
    }


def feaw_forward(params, q, k, v, *, c, kwav, num_modes):
    b, t, h, dim = q.shape
    d_model = h * dim

    # Stack raw q/k/v (small) and fold the (b,t,c,k)->(b,k,c,t) permute into the
    # input projections with one batched einsum -> stacked kernel layout, no
    # standalone full-activation transposes.
    qkv = jnp.stack([q.reshape(b, t, d_model),
                     k.reshape(b, t, d_model),
                     v.reshape(b, t, d_model)], axis=0)            # (3, b, t, d)
    W = jnp.stack([params["Wq"], params["Wk"], params["Wv"]], axis=0)
    W = W.reshape(3, d_model, c, kwav)                             # (3, d, c, k)
    bias = jnp.stack([params["bq"], params["bk"], params["bv"]], axis=0)
    bias = jnp.transpose(bias.reshape(3, c, kwav), (0, 2, 1))      # (3, k, c)

    x = jnp.einsum("sbtd,sdck->bskct", qkv, W) + bias[None, :, :, :, None]

    # wrap-pad time to the next power of two (matches reference `pad`), then
    # zero-pad the stored time axis to a lane multiple (exact: basis rows/cols
    # past t_dft are zero) so kernel loads/stores are dense.
    t_dft = 2 ** int(math.ceil(math.log2(t)))
    if t_dft != t:
        x = jnp.concatenate([x, x[..., : t_dft - t]], axis=-1)     # (b, 3, k, c, Tdft)
    t_st = max(128, t_dft)
    if t_st != t_dft:
        x = jnp.pad(x, ((0, 0),) * 4 + ((0, t_st - t_dft),))
    x = x.reshape(b, 3, kwav * c, t_st).astype(jnp.bfloat16)

    attn = feaf_lowpass(x, kwav=kwav, c=c, num_modes=num_modes,
                        d_model=d_model, t_dft=t_dft)              # (b, KC, Tst) bf16
    attn = attn.reshape(b, kwav, c, t_st)[..., :t]                 # (b, k, c, t)

    # Fold the inverse permute into the output projection.
    Wo = params["Wo"].reshape(c, kwav, d_model)
    out = jnp.einsum("bkct,ckd->btd", attn, Wo) + params["bo"]
    return out.reshape(b, t, h, dim)


if __name__ == "__main__":
    # small shapes: batch=2, seq=6 (exercises wrap-pad -> 8), heads=2, dim=4,
    # wavelet channels c=16, wavelet k=8, num_modes=16  (=> K*C = 128 fused rows)
    B, T, H, DIM = 2, 6, 2, 4
    C, KWAV, NUM_MODES = 16, 8, 16
    D_MODEL = H * DIM

    key = jax.random.PRNGKey(0)
    kq, kk_, kv, kp = jax.random.split(key, 4)
    q = jax.random.normal(kq, (B, T, H, DIM), jnp.float32)
    k = jax.random.normal(kk_, (B, T, H, DIM), jnp.float32)
    v = jax.random.normal(kv, (B, T, H, DIM), jnp.float32)

    params = init_feaw_params(kp, D_MODEL, C, KWAV)

    out = feaw_forward(params, q, k, v, c=C, kwav=KWAV, num_modes=NUM_MODES)
    out = jax.block_until_ready(out)
    assert out.shape == (B, T, H, DIM), out.shape
    assert bool(jnp.all(jnp.isfinite(out)))
    print("KERNEL_OK")
</pallas_src>

<mosaic_0001>
module attributes {stable_mosaic.version = 11 : i64} {
  func.func @feaf_lowpass_kernel(%arg0: i32, %arg1: i32, %arg2: memref<1x3x128x128xbf16, #tpu.memory_space<vmem>>, %arg3: memref<128x128xbf16, #tpu.memory_space<vmem>>, %arg4: memref<16x128xbf16, #tpu.memory_space<vmem>>, %arg5: memref<1x128x128xbf16, #tpu.memory_space<vmem>>) attributes {dimension_semantics = [#tpu.dimension_semantics<parallel>, #tpu.dimension_semantics<parallel>], iteration_bounds = array<i64: 2, 1>, scalar_prefetch = 0 : i64, scratch_operands = 0 : i64, tpu.core_type = #tpu.core_type<tc>, window_params = [{transform_indices = @transform_0, window_bounds = array<i64: 1, 3, 128, 128>}, {pipeline_mode = #tpu.pipeline_mode<synchronous>, transform_indices = @transform_1, window_bounds = array<i64: 128, 128>}, {pipeline_mode = #tpu.pipeline_mode<synchronous>, transform_indices = @transform_2, window_bounds = array<i64: 16, 128>}, {transform_indices = @transform_3, window_bounds = array<i64: 1, 128, 128>}]} {
    %c0 = arith.constant 0 : index
    %c0_0 = arith.constant 0 : index
    %c0_1 = arith.constant 0 : index
    %c0_2 = arith.constant 0 : index
    %0 = vector.load %arg2[%c0, %c0_0, %c0_1, %c0_2] : memref<1x3x128x128xbf16, #tpu.memory_space<vmem>>, vector<1x3x128x128xbf16>
    %1 = vector.shape_cast %0 : vector<1x3x128x128xbf16> to vector<3x128x128xbf16>
    %2 = vector.shape_cast %1 : vector<3x128x128xbf16> to vector<384x128xbf16>
    %c0_3 = arith.constant 0 : index
    %c0_4 = arith.constant 0 : index
    %3 = vector.load %arg3[%c0_3, %c0_4] : memref<128x128xbf16, #tpu.memory_space<vmem>>, vector<128x128xbf16>
    %c0_5 = arith.constant 0 : index
    %c0_6 = arith.constant 0 : index
    %4 = vector.load %arg4[%c0_5, %c0_6] : memref<16x128xbf16, #tpu.memory_space<vmem>>, vector<16x128xbf16>
    %cst = arith.constant dense<0.000000e+00> : vector<384x128xf32>
    %5 = tpu.matmul %2, %3, %cst {dimension_numbers = #tpu.dot_dimension_numbers<[1], [0], [0], [1], [0, 0, 1, 1], [], []>} : vector<384x128xbf16>, vector<128x128xbf16>, vector<384x128xf32> -> vector<384x128xf32>
    %6 = arith.truncf %5 : vector<384x128xf32> to vector<384x128xbf16>
    %7 = vector.extract_strided_slice %6 {offsets = [0, 0], sizes = [128, 128], strides = [1, 1]} : vector<384x128xbf16> to vector<128x128xbf16>
    %8 = vector.shape_cast %7 : vector<128x128xbf16> to vector<8x16x128xbf16>
    %9 = vector.extract_strided_slice %6 {offsets = [128, 0], sizes = [128, 128], strides = [1, 1]} : vector<384x128xbf16> to vector<128x128xbf16>
    %10 = vector.shape_cast %9 : vector<128x128xbf16> to vector<8x16x128xbf16>
    %11 = vector.extract_strided_slice %6 {offsets = [256, 0], sizes = [128, 128], strides = [1, 1]} : vector<384x128xbf16> to vector<128x128xbf16>
    %12 = vector.shape_cast %11 : vector<128x128xbf16> to vector<8x16x128xbf16>
    %cst_7 = arith.constant dense<0.000000e+00> : vector<8x128x128xf32>
    %13 = tpu.matmul %8, %10, %cst_7 {dimension_numbers = #tpu.dot_dimension_numbers<[1], [1], [2], [2], [0, 0, 0, 2, 1, 2], [0], [0]>} : vector<8x16x128xbf16>, vector<8x16x128xbf16>, vector<8x128x128xf32> -> vector<8x128x128xf32>
    %14 = vector.extract_strided_slice %13 {offsets = [0, 0, 0], sizes = [8, 8, 8], strides = [1, 1, 1]} : vector<8x128x128xf32> to vector<8x8x8xf32>
    %15 = vector.extract_strided_slice %13 {offsets = [0, 8, 8], sizes = [8, 8, 8], strides = [1, 1, 1]} : vector<8x128x128xf32> to vector<8x8x8xf32>
    %16 = arith.subf %14, %15 : vector<8x8x8xf32>
    %17 = vector.extract_strided_slice %13 {offsets = [0, 0, 8], sizes = [8, 8, 8], strides = [1, 1, 1]} : vector<8x128x128xf32> to vector<8x8x8xf32>
    %18 = vector.extract_strided_slice %13 {offsets = [0, 8, 0], sizes = [8, 8, 8], strides = [1, 1, 1]} : vector<8x128x128xf32> to vector<8x8x8xf32>
    %19 = arith.addf %17, %18 : vector<8x8x8xf32>
    %cst_8 = arith.constant 2.000000e+00 : f32
    %20 = vector.broadcast %cst_8 : f32 to vector<8x8x8xf32>
    %21 = arith.mulf %20, %16 : vector<8x8x8xf32>
    %cst_9 = arith.constant -4.000000e+01 : f32
    %cst_10 = arith.constant 4.000000e+01 : f32
    %22 = vector.broadcast %cst_9 : f32 to vector<8x8x8xf32>
    %23 = arith.maximumf %22, %21 : vector<8x8x8xf32>
    %24 = vector.broadcast %cst_10 : f32 to vector<8x8x8xf32>
    %25 = arith.minimumf %24, %23 : vector<8x8x8xf32>
    %cst_11 = arith.constant 2.000000e+00 : f32
    %26 = vector.broadcast %cst_11 : f32 to vector<8x8x8xf32>
    %27 = arith.mulf %26, %19 : vector<8x8x8xf32>
    %28 = math.exp %25 : vector<8x8x8xf32>
    %cst_12 = arith.constant 0.000000e+00 : f32
    %29 = vector.broadcast %cst_12 : f32 to vector<8x8x8xf32>
    %30 = arith.subf %29, %25 : vector<8x8x8xf32>
    %31 = math.exp %30 : vector<8x8x8xf32>
    %32 = arith.subf %28, %31 : vector<8x8x8xf32>
    %cst_13 = arith.constant 5.000000e-01 : f32
    %33 = vector.broadcast %cst_13 : f32 to vector<8x8x8xf32>
    %34 = arith.mulf %33, %32 : vector<8x8x8xf32>
    %35 = arith.addf %28, %31 : vector<8x8x8xf32>
    %cst_14 = arith.constant 5.000000e-01 : f32
    %36 = vector.broadcast %cst_14 : f32 to vector<8x8x8xf32>
    %37 = arith.mulf %36, %35 : vector<8x8x8xf32>
    %38 = math.cos %27 : vector<8x8x8xf32>
    %39 = arith.addf %37, %38 : vector<8x8x8xf32>
    %cst_15 = arith.constant 1.000000e+00 : f32
    %40 = vector.broadcast %cst_15 : f32 to vector<8x8x8xf32>
    %41 = arith.divf %40, %39 : vector<8x8x8xf32>
    %42 = arith.mulf %34, %41 : vector<8x8x8xf32>
    %43 = math.sin %27 : vector<8x8x8xf32>
    %44 = arith.mulf %43, %41 : vector<8x8x8xf32>
    %45 = arith.truncf %42 : vector<8x8x8xf32> to vector<8x8x8xbf16>
    %46 = arith.truncf %44 : vector<8x8x8xf32> to vector<8x8x8xbf16>
    %47 = vector.extract_strided_slice %12 {offsets = [0, 0, 0], sizes = [8, 16, 8], strides = [1, 1, 1]} : vector<8x16x128xbf16> to vector<8x16x8xbf16>
    %48 = vector.extract_strided_slice %12 {offsets = [0, 0, 8], sizes = [8, 16, 8], strides = [1, 1, 1]} : vector<8x16x128xbf16> to vector<8x16x8xbf16>
    %cst_16 = arith.constant dense<0.000000e+00> : vector<8x16x8xf32>
    %49 = tpu.matmul %47, %45, %cst_16 {dimension_numbers = #tpu.dot_dimension_numbers<[2], [2], [1], [1], [0, 0, 0, 1, 1, 1], [0], [0]>} : vector<8x16x8xbf16>, vector<8x8x8xbf16>, vector<8x16x8xf32> -> vector<8x16x8xf32>
    %cst_17 = arith.constant dense<0.000000e+00> : vector<8x16x8xf32>
    %50 = tpu.matmul %48, %46, %cst_17 {dimension_numbers = #tpu.dot_dimension_numbers<[2], [2], [1], [1], [0, 0, 0, 1, 1, 1], [0], [0]>} : vector<8x16x8xbf16>, vector<8x8x8xbf16>, vector<8x16x8xf32> -> vector<8x16x8xf32>
    %51 = arith.subf %49, %50 : vector<8x16x8xf32>
    %cst_18 = arith.constant dense<0.000000e+00> : vector<8x16x8xf32>
    %52 = tpu.matmul %47, %46, %cst_18 {dimension_numbers = #tpu.dot_dimension_numbers<[2], [2], [1], [1], [0, 0, 0, 1, 1, 1], [0], [0]>} : vector<8x16x8xbf16>, vector<8x8x8xbf16>, vector<8x16x8xf32> -> vector<8x16x8xf32>
    %cst_19 = arith.constant dense<0.000000e+00> : vector<8x16x8xf32>
    %53 = tpu.matmul %48, %45, %cst_19 {dimension_numbers = #tpu.dot_dimension_numbers<[2], [2], [1], [1], [0, 0, 0, 1, 1, 1], [0], [0]>} : vector<8x16x8xbf16>, vector<8x8x8xbf16>, vector<8x16x8xf32> -> vector<8x16x8xf32>
    %54 = arith.addf %52, %53 : vector<8x16x8xf32>
    %55 = arith.truncf %51 : vector<8x16x8xf32> to vector<8x16x8xbf16>
    %56 = arith.truncf %54 : vector<8x16x8xf32> to vector<8x16x8xbf16>
    %57 = tpu.concatenate %55, %56 in 2 : vector<8x16x8xbf16>, vector<8x16x8xbf16> -> vector<8x16x16xbf16>
    %58 = vector.shape_cast %57 : vector<8x16x16xbf16> to vector<128x16xbf16>
    %cst_20 = arith.constant dense<0.000000e+00> : vector<128x128xf32>
    %59 = tpu.matmul %58, %4, %cst_20 {dimension_numbers = #tpu.dot_dimension_numbers<[1], [0], [0], [1], [0, 0, 1, 1], [], []>} : vector<128x16xbf16>, vector<16x128xbf16>, vector<128x128xf32> -> vector<128x128xf32>
    %60 = arith.truncf %59 : vector<128x128xf32> to vector<128x128xbf16>
    %c0_21 = arith.constant 0 : index
    %c0_22 = arith.constant 0 : index
    %c0_23 = arith.constant 0 : index
    %61 = vector.load %arg5[%c0_21, %c0_22, %c0_23] : memref<1x128x128xbf16, #tpu.memory_space<vmem>>, vector<1x128x128xbf16>
    %62 = vector.shape_cast %61 : vector<1x128x128xbf16> to vector<128x128xbf16>
    %63 = vector.shape_cast %60 : vector<128x128xbf16> to vector<1x128x128xbf16>
    tpu.vector_store %arg5[%c0_21, %c0_22, %c0_23], %63 {strides = array<i32>} : memref<1x128x128xbf16, #tpu.memory_space<vmem>>, vector<1x128x128xbf16>,
    return
  }
  func.func @transform_0(%arg0: i32, %arg1: i32) -> (i32, i32, i32, i32) {
    %c0_i32 = arith.constant 0 : i32
    %c0_i32_0 = arith.constant 0 : i32
    %c0_i32_1 = arith.constant 0 : i32
    return %arg0, %c0_i32, %arg1, %c0_i32_0 : i32, i32, i32, i32
  }
  func.func @transform_1(%arg0: i32, %arg1: i32) -> (i32, i32) {
    %c0_i32 = arith.constant 0 : i32
    %c0_i32_0 = arith.constant 0 : i32
    %c0_i32_1 = arith.constant 0 : i32
    return %c0_i32, %c0_i32_0 : i32, i32
  }
  func.func @transform_2(%arg0: i32, %arg1: i32) -> (i32, i32) {
    %c0_i32 = arith.constant 0 : i32
    %c0_i32_0 = arith.constant 0 : i32
    %c0_i32_1 = arith.constant 0 : i32
    return %c0_i32, %c0_i32_0 : i32, i32
  }
  func.func @transform_3(%arg0: i32, %arg1: i32) -> (i32, i32, i32) {
    %c0_i32 = arith.constant 0 : i32
    %c0_i32_0 = arith.constant 0 : i32
    return %arg0, %arg1, %c0_i32 : i32, i32, i32
  }
}

</mosaic_0001>

<bundles_post_ra>
// kernel: tpu_custom_call.1
= control target key start
LH: loop header
LB: loop body
LE: loop exit
PB: predicated region body
PF: predicated region fallthrough
CT: control target
= control target key end

     0   :  { %8 = vsyncpa [#allocation3], 0  ;;  %s8745_s0 = inlined_call_operand.hbm [shape: bf16[2,3,128,128], index: 0, kind: input, shape index: {}]   ;;  %s8746_s1 = inlined_call_operand.hbm [shape: bf16[128,128], index: 1, kind: input, shape index: {}]   ;;  %s8747_s2 = inlined_call_operand.hbm [shape: bf16[16,128], index: 2, kind: input, shape index: {}]   ;;  %s8748_s3 = inlined_call_operand.hbm [shape: bf16[2,128,128], index: 3, kind: output, shape index: {}]  }
   0x1   :  { %10 = vsyncpa [#allocation3 + $0x1], 0 }
   0x2   :  { %11 = vsyncpa [#allocation6], 0 }
   0x3   :  { %12 = vsyncpa [#allocation4], 0 }
   0x4   :  { %14 = vsyncpa [#allocation4 + $0x1], 0  ;;  %s6933_s12 = smov 0   ;;  %s6935_s13 = smov 0  }
   0x5   :  { %s6937_s14 = smov 0   ;;  %s6939_s15 = smov 0  }
   0x6   :  { %s6941_s16 = smov 0   ;;  %s6943_s17 = smov 0  }
   0x7 LB: > { %s5541_s18 = sadd.s32 4294967295, %s6893_s17   ;;  %s5542_s19 = sadd.s32 4294967294, %s6893_s17   ;;  %s6893_s17 = sphi %s6943_s17, %s20_s17   ;;  %s6889_s16 = sphi %s6941_s16, %s8897_s16   ;;  %s6885_s15 = sphi %s6939_s15, %s8896_s15   ;;  %s6881_s14 = sphi %s6937_s14, %s8895_s14   ;;  %s6877_s13 = sphi %s6935_s13, %s8894_s13   ;;  %s6873_s12 = sphi %s6933_s12, %s8893_s12  }
   0x8   : > { %p54_p0 = scmp.ne.s32.totalorder %s6877_s13, %s6873_s12  ;;  %p6967_p1 = scmp.eq.s32.totalorder %s5541_s18, 0 }
   0x9   : > { %p6971_p2 = scmp.eq.s32.totalorder %s5541_s18, 1  ;;  %p128_p3 = scmp.eq.s32.totalorder %s5542_s19, 1 }
   0xa   : > { %s8805_s20 = scalar_select %p6967_p1, 1, 0 }
   0xb   : > { %p6977_p4 = por %p6967_p1, %p54_p0  ;;  %p5543_p5 = scmp.ge.s32.totalorder %s6893_s17, 1 }
   0xc   : > { %p6982_p6 = por %p128_p3, %p54_p0  ;;  %p135_p7 = scmp.lt.s32.totalorder %s6893_s17, 3 }
   0xd   : > { %s8807_s22 = scalar_select %p6977_p4, 1, 0 }
   0xe   : > { %s8808_s23 = scalar_select %p6982_p6, 1, 0 }
   0xf   : > { %p6987_p8 = pnand %p5543_p5, %p135_p7  ;;  %s6895_s25 = smov [#allocation5]  }
  0x10   : > { %s147_s26 = sshll.u32 %s6895_s25, 4  ;;  %s6896_s28 = smov [#allocation7]   ;;  %s6991_s26 = int_to_ptr.vmem [resolvable:$true] %s147_s26 }
  0x11   : > { %p6522_p9 = pneg %p6987_p8  ;;  %s160_s29 = sshll.u32 %s6896_s28, 4  ;;  %s7002_s29 = int_to_ptr.vmem [resolvable:$true] %s160_s29 }
  0x12   : > { %s6721_s5 = scalar_lea.hbm %s8746_s1, 1024 }
  0x13   : > { %p6998_p11 = pnand %p6522_p9, %p6967_p1  ;;  %p6722_p12 = scmp.ne.s32.totalorder %s8746_s1, %s6721_s5 }
  0x14   : > { %p6728_p5 = scmp.lt.u32.totalorder %s6721_s5, %s8746_s1 }
  0x15   : > { %p6723_p13 = pneg %p6998_p11 }
  0x17   : > { %p6724_p0 = pnand %p6723_p13, %p6722_p12 }
  0x19   : > { %p6725_p3 = pneg %p6724_p0 }
  0x1b   : > { %p6730_p7 = pnand %p6728_p5, %p6725_p3 }
  0x1d   : > { %6733 = shalt.err (!%p6730_p7)
}
  0x1e   : > { %s6734_s10 = scalar_lea.vmem %s6991_s26, 1024  ;;  %p6742_p1 = scmp.lt.s32.totalorder %s6991_s26, %s6991_s26 }
  0x1f   : > { %p6735_p9 = scmp.ne.s32.totalorder %s6991_s26, %s6734_s10  ;;  %p6743_p12 = scmp.lt.s32.totalorder %s6734_s10, %s6734_s10 }
  0x21   : > { %p6737_p10 = pnand %p6735_p9, %p6723_p13  ;;  %p6744_p0 = por %p6743_p12, %p6742_p1 }
  0x23   : > { %p6738_p6 = pneg %p6737_p10 }
  0x25   : > { %p6745_p4 = pnand %p6744_p0, %p6738_p6 }
  0x27   : > { %6748 = shalt.err (!%p6745_p4)
}
  0x28   : > { %s6897_s11 = smov 64   ;;  %s6898_s18 = smov 4  }
  0x29   : > { %6525 = dma.hbm_to_vmem [thread:$0]  (!%p6998_p11), %s8746_s1, 1024, %s6991_s26, [#allocation6], %s6897_s11, %s6897_s11, %s6898_s18  }
  0x2a   : > { %s6749_s4 = scalar_lea.hbm %s8747_s2, 128 }
  0x2b   : > { %p6750_p1 = scmp.ne.s32.totalorder %s8747_s2, %s6749_s4  ;;  %p6756_p10 = scmp.lt.u32.totalorder %s6749_s4, %s8747_s2 }
  0x2d   : > { %p6752_p4 = pnand %p6750_p1, %p6723_p13 }
  0x2f   : > { %p6753_p6 = pneg %p6752_p4 }
  0x31   : > { %p6758_p3 = pnand %p6756_p10, %p6753_p6 }
  0x33   : > { %6761 = shalt.err (!%p6758_p3)
}
  0x34   : > { %s6762_s26 = scalar_lea.vmem %s7002_s29, 128  ;;  %p6770_p12 = scmp.lt.s32.totalorder %s7002_s29, %s7002_s29 }
  0x35   : > { %p6763_p5 = scmp.ne.s32.totalorder %s7002_s29, %s6762_s26  ;;  %p6771_p0 = scmp.lt.s32.totalorder %s6762_s26, %s6762_s26 }
  0x37   : > { %p6765_p7 = pnand %p6763_p5, %p6723_p13  ;;  %p6772_p1 = por %p6771_p0, %p6770_p12 }
  0x39   : > { %p6766_p9 = pneg %p6765_p7 }
  0x3b   : > { %p6773_p4 = pnand %p6772_p1, %p6766_p9 }
  0x3d   : > { %6776 = shalt.err (!%p6773_p4)
}
  0x3e   : > { %6528 = dma.hbm_to_vmem [thread:$0]  (!%p6998_p11), %s8747_s2, 128, %s7002_s29, [#allocation6], %s6897_s11, %s6897_s11, %s6898_s18  }
  0x3f   : > { %s32_s27 = sadd.s32 1, %s6889_s16  ;;  %s41_s19 = sadd.s32 1, %s6881_s14 }
  0x40   : > { %p34_p13 = scmp.ge.s32.totalorder %s32_s27, 2  ;;  %p48_p6 = scmp.ne.s32.totalorder %s6881_s14, %s6877_s13 }
  0x41   : > { %p49_p10 = scmp.eq.s32.totalorder %s6893_s17, 0  ;;  %p6539_p3 = scmp.lt.s32.totalorder %s6893_s17, 2 }
  0x42   : > { %s8899_s27 = smov (%p34_p13, %s32_s27), 0  ;;  %p7072_p7 = por %p6971_p2, %p48_p6 }
  0x43   : > { %p50_p5 = por %p49_p10, %p48_p6  ;;  %s36_s28 = ssub.s32 %s6889_s16, %s8899_s27 }
  0x44   : > { %s8811_s25 = scalar_select %p7072_p7, 1, 0 }
  0x45   : > { %s174_s30 = sand.u32 1, %s6881_s14   ;;  %p39_p9 = scmp.eq.s32.totalorder %s36_s28, 0 }
  0x46   : > { %s6475_s29 = smul.u32 192, %s174_s30  ;;  %p7079_p11 = pnand %p6539_p3, %p50_p5 }
  0x47   : > { %s7084_s5 = scalar_select %p39_p9, %s6881_s14, %s41_s19  }
  0x48   : > { %s6476_s6 = smul.u32 3072, %s6889_s16  ;;  %s178_s7 = scalar_lea.vmem [#allocation2], %s6475_s29 }
  0x49   : > { %s187_s8 = sshll.u32 %s178_s7, 4  ;;  %s7094_s10 = scalar_lea.sflag [#allocation3], %s174_s30  ;;  %s7092_s8 = int_to_ptr.vmem [resolvable:$true] %s187_s8 }
  0x4a   : > { %s7090_s9 = scalar_lea.hbm %s8745_s0, %s6476_s6  ;;  %p6779_p12 = pneg %p7079_p11 }
  0x4b   : > { %s6777_s28 = scalar_lea.hbm %s7090_s9, 3072  ;;  %s6782_s6 = scalar_lea.hbm %s8745_s0, 6144 }
  0x4c   : > { %p6778_p2 = scmp.ne.s32.totalorder %s7090_s9, %s6777_s28  ;;  %p6783_p4 = scmp.lt.u32.totalorder %s7090_s9, %s8745_s0 }
  0x4d   : > { %p6784_p13 = scmp.lt.u32.totalorder %s6782_s6, %s6777_s28  ;;  %p6786_p10 = scmp.lt.u32.totalorder %s6777_s28, %s7090_s9 }
  0x4e   : > { %p6780_p0 = pnand %p6779_p12, %p6778_p2 }
  0x4f   : > { %p6785_p6 = por %p6784_p13, %p6783_p4 }
  0x50   : > { %p6781_p1 = pneg %p6780_p0 }
  0x51   : > { %p6787_p3 = por %p6786_p10, %p6785_p6 }
  0x53   : > { %p6788_p5 = pnand %p6787_p3, %p6781_p1 }
  0x55   : > { %6791 = shalt.err (!%p6788_p5)
}
  0x56   : > { %s6792_s30 = scalar_lea.vmem %s7092_s8, 3072  ;;  %s6899_s26 = smov [#allocation2]  }
  0x57   : > { %p6793_p9 = scmp.ne.s32.totalorder %s7092_s8, %s6792_s30  ;;  %s6797_s19 = sshll.u32 %s6899_s26, 4  ;;  %s6798_s19 = int_to_ptr.vmem [resolvable:$false] %s6797_s19 }
  0x58   : > { %s6799_s29 = scalar_lea.vmem %s6798_s19, 6144  ;;  %p6800_p7 = scmp.lt.s32.totalorder %s7092_s8, %s6798_s19 }
  0x59   : > { %p6795_p2 = pnand %p6793_p9, %p6779_p12  ;;  %p6801_p4 = scmp.lt.s32.totalorder %s6799_s29, %s6792_s30 }
  0x5b   : > { %p6796_p0 = pneg %p6795_p2  ;;  %p6802_p13 = por %p6801_p4, %p6800_p7 }
  0x5d   : > { %p6803_p6 = pnand %p6802_p13, %p6796_p0 }
  0x5f   : > { %6806 = shalt.err (!%p6803_p6)
}
  0x60   : > { %6532 = dma.hbm_to_vmem [thread:$0]  (!%p7079_p11), %s7090_s9, 3072, %s7092_s8, %s7094_s10, %s6897_s11, %s6897_s11, %s6898_s18  }
  0x61   : > { %199 = sbr.rel (%p6987_p8) target bundleno = 2077 (0x81d), region = 32 }
  0x68   : > { %s7128_s28 = sand.u32 1, %s6877_s13   ;;  %p8813_p7 = scmp.ne.s32.totalorder %s8807_s22, 0 }
  0x69   : > { %s6477_s6 = smul.u32 192, %s7128_s28  ;;  %s202_s7 = scalar_lea.sflag [#allocation3], %s7128_s28 }
  0x6b   : > { %s7132_s21 = scalar_lea.vmem [#allocation2], %s6477_s6 }
  0x6c   : > { %6860 = dma.done.wait (%p8813_p7), %s202_s7, 3072  }
  0x6d   : > { %6862 = vsyncadd (%p8813_p7), %s202_s7, 4294964224  ;;  %p8814_p11 = scmp.ne.s32.totalorder %s8805_s20, 0 }
  0x6f   : > { %6864 = dma.done.wait (%p8814_p11), [#allocation6], 1152  }
  0x70   : > { %6866 = vsyncadd (%p8814_p11), [#allocation6], 4294966144  ;;  %v6608_v0 = vld [vmem:[#allocation5] sm:$0xff]   ;;  %v6609_v1 = vld [vmem:[#allocation5 + $0x8] sm:$0xff]   ;;  %vm762_vm0 = vcmask 130048   ;;  %s6900_s20 = smov 8  }
  0x71   : > { %6023 = vmatprep.subr.bf16.mxu0 %v6608_v0  ;;  %v6610_v2 = vld [vmem:[#allocation5 + $0x10] sm:$0xff]   ;;  %v6611_v3 = vld [vmem:[#allocation5 + $0x18] sm:$0xff]   ;;  %v6616_v4 = vld [vmem:[%s7132_s21] sm:$0xff]   ;;  %s6901_s22 = smov 120   ;;  %s5551_s24 = sshll.u32 %s7128_s28, 6 }
  0x72   : > { %6024 = vmatpush3.bf16.msra.mxu0 %v6608_v0  ;;  %6039 = vmatprep.mubr.bf16.mxu0 %v6616_v4  ;;  %v6612_v5 = vld [vmem:[#allocation5 + $0x20] sm:$0xff]   ;;  %v6613_v6 = vld [vmem:[#allocation5 + $0x28] sm:$0xff]   ;;  %v6614_v7 = vld [vmem:[#allocation5 + $0x30] sm:$0xff]   ;;  %s235_s11 = scalar_lea.vmem [#allocation8], %s5551_s24  ;;  %s5798_s4 = sshll.u32 %s6885_s15, 10 }
  0x73   : > { %6025 = vmatprep.subr.bf16.mxu0 %v6609_v1  ;;  %v6615_v8 = vld [vmem:[#allocation5 + $0x38] sm:$0xff]   ;;  %v6617_v9 = vld [vmem:[%s7132_s21 + $0x8] sm:$0xff]   ;;  %v6618_v10 = vld [vmem:[%s7132_s21 + $0x10] sm:$0xff]   ;;  %s5435_s18 = sshll.u32 %s235_s11, 4  ;;  %s8696_s10 = scalar_lea.hbm %s8748_s3, %s5798_s4  ;;  %s8691_s18 = int_to_ptr.vmem [resolvable:$true] %s5435_s18 }
  0x74   : > { %v6619_v11 = vld [vmem:[%s7132_s21 + $0x18] sm:$0xff]   ;;  %v6620_v12 = vld [vmem:[%s7132_s21 + $0x20] sm:$0xff]   ;;  %v6621_v13 = vld [vmem:[%s7132_s21 + $0x28] sm:$0xff]   ;;  %s5420_s30 = scalar_lea.sflag [#allocation4], %s7128_s28  ;;  %s6807_s26 = scalar_lea.vmem %s8691_s18, 1024 }
  0x75   : > { %v6622_v14 = vld [vmem:[%s7132_s21 + $0x30] sm:$0xff]   ;;  %v6623_v15 = vld [vmem:[%s7132_s21 + $0x38] sm:$0xff]   ;;  %v6624_v16 = vld [vmem:[%s7132_s21 + $0x40] sm:$0xff]   ;;  %p6808_p8 = scmp.ne.s32.totalorder %s8691_s18, %s6807_s26  ;;  %p8890_p12 = scmp.ne.s32.totalorder %s8811_s25, 0 }
  0x76   : > { %6026 = vmatpush3.bf16.msra.mxu0 %v6609_v1  ;;  %v6625_v17 = vld [vmem:[%s7132_s21 + $0x48] sm:$0xff]   ;;  %v6626_v18 = vld [vmem:[%s7132_s21 + $0x50] sm:$0xff]   ;;  %v6627_v19 = vld [vmem:[%s7132_s21 + $0x58] sm:$0xff]   ;;  %s6910_s15 = smov [#allocation8]  }
  0x77   : > { %6027 = vmatprep.subr.bf16.mxu0 %v6610_v2  ;;  %v6628_v20 = vld [vmem:[%s7132_s21 + $0x60] sm:$0xff]   ;;  %v6629_v21 = vld [vmem:[%s7132_s21 + $0x68] sm:$0xff]   ;;  %v6630_v22 = vld [vmem:[%s7132_s21 + $0x70] sm:$0xff]   ;;  %p6809_p1 = pnand %p6808_p8, %p8890_p12  ;;  %s6811_s19 = sshll.u32 %s6910_s15, 4  ;;  %s6812_s19 = int_to_ptr.vmem [resolvable:$false] %s6811_s19 }
  0x78   : > { %v6631_v23 = vld [vmem:[%s7132_s21 + $0x78] sm:$0xff]   ;;  %v6632_v36 = vld [vmem:[%s7132_s21 + $0x80] sm:$0xff]   ;;  %v6633_v38 = vld [vmem:[%s7132_s21 + $0x88] sm:$0xff]   ;;  %s6813_s29 = scalar_lea.vmem %s6812_s19, 2048  ;;  %p6814_p3 = scmp.lt.s32.totalorder %s8691_s18, %s6812_s19 }
  0x79   : > { %v6634_v44 = vld [vmem:[%s7132_s21 + $0x90] sm:$0xff]   ;;  %v6635_v46 = vld [vmem:[%s7132_s21 + $0x98] sm:$0xff]   ;;  %v6636_v52 = vld [vmem:[%s7132_s21 + $0xa0] sm:$0xff]   ;;  %p6810_p10 = pneg %p6809_p1  ;;  %p6815_p5 = scmp.lt.s32.totalorder %s6813_s29, %s6807_s26 }
  0x7a   : > { %6028 = vmatpush3.bf16.msra.mxu0 %v6610_v2  ;;  %v6637_v54 = vld [vmem:[%s7132_s21 + $0xa8] sm:$0xff]   ;;  %v6638_v60 = vld [vmem:[%s7132_s21 + $0xb0] sm:$0xff]   ;;  %v6639_v62 = vld [vmem:[%s7132_s21 + $0xb8] sm:$0xff]  }
  0x7b   : > { %6029 = vmatprep.subr.bf16.mxu0 %v6611_v3  ;;  %p6816_p9 = por %p6815_p5, %p6814_p3 }
  0x7d   : > { %p6817_p2 = pnand %p6816_p9, %p6810_p10 }
  0x7e   : > { %6030 = vmatpush3.bf16.msra.mxu0 %v6611_v3 }
  0x7f   : > { %6031 = vmatprep.subr.bf16.mxu0 %v6612_v5 }
  0x82   : > { %6032 = vmatpush3.bf16.msra.mxu0 %v6612_v5 }
  0x83   : > { %6033 = vmatprep.subr.bf16.mxu0 %v6613_v6 }
  0x86   : > { %6034 = vmatpush3.bf16.msra.mxu0 %v6613_v6 }
  0x87   : > { %6035 = vmatprep.subr.bf16.mxu0 %v6614_v7 }
  0x8a   : > { %6036 = vmatpush3.bf16.msra.mxu0 %v6614_v7 }
  0x8b   : > { %6037 = vmatprep.subr.bf16.mxu0 %v6615_v8 }
  0x8e   : > { %6038 = vmatpush3.bf16.msra.mxu0 %v6615_v8 }
  0x91   : > { %6040 = vmatmul.mubr.bf16.vlgmr.msra.gmra.mrb[0].mxu0 %v6617_v9 }
  0x92   : > { %6043 = vmatprep.mubr.bf16.mxu0 %v6618_v10 }
  0x99   : > { %6044 = vmatmul.mubr.bf16.gmra.mrb[4].mxu0 %v6619_v11 }
  0x9a   : > { %6047 = vmatprep.mubr.bf16.mxu0 %v6620_v12 }
  0xa1   : > { %6048 = vmatmul.mubr.bf16.gmra.mrb[8].mxu0 %v6621_v13 }
  0xa2   : > { %6051 = vmatprep.mubr.bf16.mxu0 %v6622_v14 }
  0xa9   : > { %6052 = vmatmul.mubr.bf16.gmra.mrb[12].mxu0 %v6623_v15 }
  0xaa   : > { %6055 = vmatprep.mubr.bf16.mxu0 %v6624_v16 }
  0xb1   : > { %6056 = vmatmul.mubr.bf16.gmra.mrb[16].mxu0 %v6625_v17 }
  0xb2   : > { %6059 = vmatprep.mubr.bf16.mxu0 %v6626_v18 }
  0xb9   : > { %6060 = vmatmul.mubr.bf16.gmra.mrb[20].mxu0 %v6627_v19 }
  0xba   : > { %6063 = vmatprep.mubr.bf16.mxu0 %v6628_v20 }
  0xc1   : > { %6064 = vmatmul.mubr.bf16.gmra.mrb[24].mxu0 %v6629_v21 }
  0xc2   : > { %6067 = vmatprep.mubr.bf16.mxu0 %v6630_v22 }
  0xc9   : > { %6068 = vmatmul.mubr.bf16.gmra.mrb[28].mxu0 %v6631_v23 }
  0xca   : > { %6071 = vmatprep.mubr.bf16.mxu0 %v6632_v36 }
  0xd1   : > { %6072 = vmatmul.mubr.bf16.gmra.mrb[32].mxu0 %v6633_v38 }
  0xd2   : > { %6075 = vmatprep.mubr.bf16.mxu0 %v6634_v44 }
  0xd9   : > { %6076 = vmatmul.mubr.bf16.gmra.mrb[36].mxu0 %v6635_v46 }
  0xda   : > { %6079 = vmatprep.mubr.bf16.mxu0 %v6636_v52 }
  0xe1   : > { %6080 = vmatmul.mubr.bf16.gmra.mrb[40].mxu0 %v6637_v54 }
  0xe2   : > { %6083 = vmatprep.mubr.bf16.mxu0 %v6638_v60 }
  0xe9   : > { %6084 = vmatmul.mubr.bf16.gmra.mrb[44].mxu0 %v6639_v62 }
 0x164   : > { %v6041_v24 = vpop.f32.mrb[0].mxu0 }
 0x165   : > { %v531_v25 = vpop.f32.mrb[1].mxu0 }
 0x166   : > { %v6042_v26 = vpop.f32.mrb[2].mxu0 }
 0x167   : > { %v723_v27 = vpack.c.bf16 %v6042_v26, %v6041_v24  ;;  %v534_v28 = vpop.f32.mrb[3].mxu0 }
 0x168   : > { %v722_v29 = vpack.c.bf16 %v534_v28, %v531_v25 }
 0x16a   : > { %746 = vxpose.xlu0.c.b16.start.end [1/1] (short) %v722_v29, 128 }
 0x16c   : > { %v6045_v30 = vpop.f32.mrb[4].mxu0 }
 0x16d   : > { %v547_v31 = vpop.f32.mrb[5].mxu0 }
 0x16e   : > { %v6046_v32 = vpop.f32.mrb[6].mxu0 }
 0x16f   : > { %v725_v33 = vpack.c.bf16 %v6046_v32, %v6045_v30  ;;  %v550_v34 = vpop.f32.mrb[7].mxu0 }
 0x170   : > { %v724_v35 = vpack.c.bf16 %v550_v34, %v547_v31 }
 0x172   : > { %993 = vxpose.xlu1.c.b16.start.end [1/1] (short) %v724_v35, 128 }
 0x174   : > { %v6049_v37 = vpop.f32.mrb[8].mxu0 }
 0x175   : > { %v563_v39 = vpop.f32.mrb[9].mxu0 }
 0x176   : > { %v6050_v40 = vpop.f32.mrb[10].mxu0 }
 0x177   : > { %v727_v41 = vpack.c.bf16 %v6050_v40, %v6049_v37  ;;  %v566_v42 = vpop.f32.mrb[11].mxu0 }
 0x178   : > { %v726_v43 = vpack.c.bf16 %v566_v42, %v563_v39 }
 0x17c   : > { %v6053_v45 = vpop.f32.mrb[12].mxu0 }
 0x17d   : > { %v579_v47 = vpop.f32.mrb[13].mxu0 }
 0x17e   : > { %v6054_v48 = vpop.f32.mrb[14].mxu0 }
 0x17f   : > { %v729_v49 = vpack.c.bf16 %v6054_v48, %v6053_v45  ;;  %v582_v50 = vpop.f32.mrb[15].mxu0 }
 0x180   : > { %v728_v51 = vpack.c.bf16 %v582_v50, %v579_v47 }
 0x184   : > { %v6057_v53 = vpop.f32.mrb[16].mxu0 }
 0x185   : > { %v595_v55 = vpop.f32.mrb[17].mxu0 }
 0x186   : > { %v6058_v56 = vpop.f32.mrb[18].mxu0 }
 0x187   : > { %870 = vxpose.xlu0.c.b16.start.end [1/1] (short) %v723_v27, 128  ;;  %v731_v57 = vpack.c.bf16 %v6058_v56, %v6057_v53  ;;  %v598_v58 = vpop.f32.mrb[19].mxu0 }
 0x188   : > { %v730_v59 = vpack.c.bf16 %v598_v58, %v595_v55 }
 0x18a   : > { %6087 = vmatprep.subr.bf16.mxu1 %v730_v59 }
 0x18b   : > { %6088 = vmatpush3.bf16.msra.mxu1 %v730_v59 }
 0x18c   : > { %6105 = vmatprep.subr.bf16.mxu1 %v731_v57  ;;  %v6061_v61 = vpop.f32.mrb[20].mxu0 }
 0x18d   : > { %v611_v63 = vpop.f32.mrb[21].mxu0 }
 0x18e   : > { %v6062_v0 = vpop.f32.mrb[22].mxu0 }
 0x18f   : > { %1116 = vxpose.xlu1.c.b16.start.end [1/1] (short) %v725_v33, 128  ;;  %v7166_v1 = vpack.c.bf16 %v6062_v0, %v6061_v61  ;;  %v614_v2 = vpop.f32.mrb[23].mxu0 }
 0x190   : > { %v732_v3 = vpack.c.bf16 %v614_v2, %v611_v63 }
 0x194   : > { %v6065_v4 = vpop.f32.mrb[24].mxu0 }
 0x195   : > { %v627_v5 = vpop.f32.mrb[25].mxu0 }
 0x196   : > { %v6066_v6 = vpop.f32.mrb[26].mxu0 }
 0x197   : > { %v7168_v7 = vpack.c.bf16 %v6066_v6, %v6065_v4  ;;  %v630_v8 = vpop.f32.mrb[27].mxu0 }
 0x198   : > { %v7170_v9 = vpack.c.bf16 %v630_v8, %v627_v5 }
 0x19a   : > { %6159 = vmatprep.subr.bf16.mxu0 %v7170_v9 }
 0x19b   : > { %6160 = vmatpush3.bf16.msra.mxu0 %v7170_v9 }
 0x19c   : > { %v6069_v10 = vpop.f32.mrb[28].mxu0 }
 0x19d   : > { %v643_v11 = vpop.f32.mrb[29].mxu0 }
 0x19e   : > { %v6070_v12 = vpop.f32.mrb[30].mxu0 }
 0x19f   : > { %v7174_v13 = vpack.c.bf16 %v6070_v12, %v6069_v10  ;;  %v646_v14 = vpop.f32.mrb[31].mxu0 }
 0x1a0   : > { %v736_v15 = vpack.c.bf16 %v646_v14, %v643_v11 }
 0x1a2   : > { %6195 = vmatprep.subr.bf16.mxu0 %v736_v15 }
 0x1a4   : > { %1239 = vxpose.xlu0.c.b16.start.end [1/1] (short) %v726_v43, 128  ;;  %v6073_v61 = vpop.f32.mrb[32].mxu0 }
 0x1a5   : > { %v659_v63 = vpop.f32.mrb[33].mxu0 }
 0x1a6   : > { %v6074_v0 = vpop.f32.mrb[34].mxu0 }
 0x1a7   : > { %v662_v2 = vpop.f32.mrb[35].mxu0 }
 0x1a8   : > { %v7228_v4 = vpack.c.bf16 %v662_v2, %v659_v63 }
 0x1ac   : > { %1362 = vxpose.xlu1.c.b16.start.end [1/1] (short) %v727_v41, 128  ;;  %v6077_v5 = vpop.f32.mrb[36].mxu0 }
 0x1ad   : > { %v675_v6 = vpop.f32.mrb[37].mxu0 }
 0x1ae   : > { %v6078_v8 = vpop.f32.mrb[38].mxu0 }
 0x1c1   : > { %1485 = vxpose.xlu0.c.b16.start.end [1/1] (short) %v728_v51, 128 }
 0x1c9   : > { %1608 = vxpose.xlu1.c.b16.start.end [1/1] (short) %v729_v49, 128 }
 0x1d0   : > { %v754_v16 = vpop.trf.xlu0 }
 0x1d1   : > { %6089 = vmatprep.mubr.msk.bf16.mxu1 %vm762_vm0, %v754_v16 }
 0x1d4   : > { %v755_v17 = vpop.trf.xlu0 }
 0x1d5   : > { %6090 = vmatmul.mubr.msk.bf16.vlgmr.msra.gmra.mrb[0].mxu1 %vm762_vm0, %v755_v17 }
 0x1d6   : > { %6106 = vmatpush3.bf16.msra.mxu1 %v731_v57 }
 0x1d7   : > { %6123 = vmatprep.subr.bf16.mxu1 %v732_v3 }
 0x1d8   : > { %v756_v18 = vpop.trf.xlu0  ;;  %v1001_v22 = vpop.trf.xlu1 }
 0x1d9   : > { %6093 = vmatprep.mubr.msk.bf16.mxu1 %vm762_vm0, %v756_v18 }
 0x1dc   : > { %v757_v19 = vpop.trf.xlu0  ;;  %v1002_v24 = vpop.trf.xlu1 }
 0x1dd   : > { %6094 = vmatmul.mubr.msk.bf16.gmra.mrb[4].mxu1 %vm762_vm0, %v757_v19 }
 0x1e0   : > { %v758_v20 = vpop.trf.xlu0  ;;  %v1003_v27 = vpop.trf.xlu1 }
 0x1e1   : > { %6097 = vmatprep.mubr.msk.bf16.mxu1 %vm762_vm0, %v758_v20 }
 0x1e4   : > { %v759_v21 = vpop.trf.xlu0  ;;  %v1004_v29 = vpop.trf.xlu1 }
 0x1e5   : > { %6098 = vmatmul.mubr.msk.bf16.gmra.mrb[8].mxu1 %vm762_vm0, %v759_v21 }
 0x1e8   : > { %v760_v23 = vpop.trf.xlu0  ;;  %v1005_v32 = vpop.trf.xlu1 }
 0x1e9   : > { %6101 = vmatprep.mubr.msk.bf16.mxu1 %vm762_vm0, %v760_v23 }
 0x1ec   : > { %v761_v25 = vpop.trf.xlu0  ;;  %v1006_v34 = vpop.trf.xlu1 }
 0x1ed   : > { %6102 = vmatmul.mubr.msk.bf16.gmra.mrb[12].mxu1 %vm762_vm0, %v761_v25 }
 0x1f0   : > { %v878_v26 = vpop.trf.xlu0  ;;  %v1007_v37 = vpop.trf.xlu1 }
 0x1f1   : > { %6107 = vmatprep.mubr.msk.bf16.mxu1 %vm762_vm0, %v878_v26 }
 0x1f4   : > { %v879_v28 = vpop.trf.xlu0  ;;  %v1008_v39 = vpop.trf.xlu1 }
 0x1f5   : > { %6108 = vmatmul.mubr.msk.bf16.vlgmr.msra.gmra.mrb[16].mxu1 %vm762_vm0, %v879_v28 }
 0x1f6   : > { %6124 = vmatpush3.bf16.msra.mxu1 %v732_v3 }
 0x1f7   : > { %6141 = vmatprep.subr.bf16.mxu1 %v7166_v1 }
 0x1f8   : > { %v880_v30 = vpop.trf.xlu0  ;;  %v1124_v42 = vpop.trf.xlu1 }
 0x1f9   : > { %6111 = vmatprep.mubr.msk.bf16.mxu1 %vm762_vm0, %v880_v30 }
 0x1fc   : > { %v881_v31 = vpop.trf.xlu0  ;;  %v1125_v44 = vpop.trf.xlu1 }
 0x1fd   : > { %6112 = vmatmul.mubr.msk.bf16.gmra.mrb[20].mxu1 %vm762_vm0, %v881_v31 }
 0x200   : > { %v882_v33 = vpop.trf.xlu0  ;;  %v1126_v47 = vpop.trf.xlu1 }
 0x201   : > { %6115 = vmatprep.mubr.msk.bf16.mxu1 %vm762_vm0, %v882_v33 }
 0x204   : > { %v883_v35 = vpop.trf.xlu0  ;;  %v1127_v49 = vpop.trf.xlu1 }
 0x205   : > { %6116 = vmatmul.mubr.msk.bf16.gmra.mrb[24].mxu1 %vm762_vm0, %v883_v35 }
 0x208   : > { %v884_v36 = vpop.trf.xlu0  ;;  %v1128_v52 = vpop.trf.xlu1 }
 0x209   : > { %6119 = vmatprep.mubr.msk.bf16.mxu1 %vm762_vm0, %v884_v36 }
 0x20c   : > { %v885_v38 = vpop.trf.xlu0  ;;  %v1129_v54 = vpop.trf.xlu1 }
 0x20d   : > { %6120 = vmatmul.mubr.msk.bf16.gmra.mrb[28].mxu1 %vm762_vm0, %v885_v38 }
 0x20e   : > { %6125 = vmatprep.mubr.msk.bf16.mxu1 %vm762_vm0, %v1001_v22 }
 0x210   : > { %v1247_v40 = vpop.trf.xlu0  ;;  %v1130_v56 = vpop.trf.xlu1 }
 0x211   : > { %6161 = vmatprep.mubr.msk.bf16.mxu0 %vm762_vm0, %v1247_v40 }
 0x214   : > { %v1248_v41 = vpop.trf.xlu0  ;;  %v1131_v57 = vpop.trf.xlu1 }
 0x215   : > { %6126 = vmatmul.mubr.msk.bf16.vlgmr.msra.gmra.mrb[32].mxu1 %vm762_vm0, %v1002_v24  ;;  %6162 = vmatmul.mubr.msk.bf16.vlgmr.msra.gmra.mrb[48].mxu0 %vm762_vm0, %v1248_v41 }
 0x216   : > { %6142 = vmatpush3.bf16.msra.mxu1 %v7166_v1  ;;  %6129 = vmatprep.mubr.msk.bf16.mxu1 %vm762_vm0, %v1003_v27  ;;  %v7226_v1 = vpack.c.bf16 %v6074_v0, %v6073_v61 }
 0x217   : > { %6441 = vmatprep.subr.bf16.mxu1 %v7170_v9  ;;  %6196 = vmatpush3.bf16.msra.mxu0 %v736_v15 }
 0x218   : > { %v1249_v43 = vpop.trf.xlu0  ;;  %v1370_v58 = vpop.trf.xlu1 }
 0x219   : > { %6165 = vmatprep.mubr.msk.bf16.mxu0 %vm762_vm0, %v1249_v43 }
 0x21c   : > { %v1250_v45 = vpop.trf.xlu0  ;;  %v1371_v59 = vpop.trf.xlu1 }
 0x21d   : > { %6130 = vmatmul.mubr.msk.bf16.gmra.mrb[36].mxu1 %vm762_vm0, %v1004_v29  ;;  %6166 = vmatmul.mubr.msk.bf16.gmra.mrb[52].mxu0 %vm762_vm0, %v1250_v45 }
 0x21e   : > { %6133 = vmatprep.mubr.msk.bf16.mxu1 %vm762_vm0, %v1005_v32 }
 0x220   : > { %v1251_v46 = vpop.trf.xlu0  ;;  %v1372_v60 = vpop.trf.xlu1 }
 0x221   : > { %6169 = vmatprep.mubr.msk.bf16.mxu0 %vm762_vm0, %v1251_v46 }
 0x224   : > { %v1252_v48 = vpop.trf.xlu0  ;;  %v1373_v62 = vpop.trf.xlu1 }
 0x225   : > { %6134 = vmatmul.mubr.msk.bf16.gmra.mrb[40].mxu1 %vm762_vm0, %v1006_v34  ;;  %6170 = vmatmul.mubr.msk.bf16.gmra.mrb[56].mxu0 %vm762_vm0, %v1252_v48 }
 0x226   : > { %6137 = vmatprep.mubr.msk.bf16.mxu1 %vm762_vm0, %v1007_v37 }
 0x228   : > { %v1253_v50 = vpop.trf.xlu0  ;;  %v1374_v3 = vpop.trf.xlu1 }
 0x22c   : > { %v1254_v51 = vpop.trf.xlu0  ;;  %v1375_v14 = vpop.trf.xlu1 }
 0x22d   : > { %6138 = vmatmul.mubr.msk.bf16.gmra.mrb[44].mxu1 %vm762_vm0, %v1008_v39 }
 0x22e   : > { %6143 = vmatprep.mubr.msk.bf16.mxu1 %vm762_vm0, %v1124_v42 }
 0x230   : > { %v1493_v53 = vpop.trf.xlu0  ;;  %v1376_v23 = vpop.trf.xlu1 }
 0x231   : > { %6197 = vmatprep.mubr.msk.bf16.mxu0 %vm762_vm0, %v1493_v53 }
 0x234   : > { %v1494_v55 = vpop.trf.xlu0  ;;  %v1377_v25 = vpop.trf.xlu1 }
 0x235   : > { %6144 = vmatmul.mubr.msk.bf16.vlgmr.msra.gmra.mrb[48].mxu1 %vm762_vm0, %v1125_v44  ;;  %6198 = vmatmul.mubr.msk.bf16.vlgmr.msra.gmra.mrb[60].mxu0 %vm762_vm0, %v1494_v55 }
 0x236   : > { %6442 = vmatpush3.bf16.msra.mxu1 %v7170_v9  ;;  %6147 = vmatprep.mubr.msk.bf16.mxu1 %vm762_vm0, %v1126_v47  ;;  %v678_v9 = vpop.f32.mrb[39].mxu0 }
 0x237   : > { %6177 = vmatprep.subr.bf16.mxu1 %v7168_v7  ;;  %v7235_v10 = vpack.c.bf16 %v678_v9, %v675_v6  ;;  %v6081_v11 = vpop.f32.mrb[40].mxu0 }
 0x238   : > { %v691_v12 = vpop.f32.mrb[41].mxu0  ;;  %v1616_v26 = vpop.trf.xlu1 }
 0x239   : > { %v6082_v15 = vpop.f32.mrb[42].mxu0  ;;  %v1495_v28 = vpop.trf.xlu0 }
 0x23a   : > { %v7237_v16 = vpack.c.bf16 %v6082_v15, %v6081_v11  ;;  %v694_v17 = vpop.f32.mrb[43].mxu0  ;;  %6201 = vmatprep.mubr.msk.bf16.mxu0 %vm762_vm0, %v1495_v28 }
 0x23b   : > { %v7239_v18 = vpack.c.bf16 %v694_v17, %v691_v12  ;;  %v6085_v19 = vpop.f32.mrb[44].mxu0 }
 0x23c   : > { %8815 = vst [vmem:[#allocation12_spill] sm:$0xff] %v7237_v16  ;;  %v707_v20 = vpop.f32.mrb[45].mxu0  ;;  %v1617_v27 = vpop.trf.xlu1 }
 0x23d   : > { %6148 = vmatmul.mubr.msk.bf16.gmra.mrb[52].mxu1 %vm762_vm0, %v1127_v49  ;;  %v1496_v29 = vpop.trf.xlu0 }
 0x23e   : > { %6151 = vmatprep.mubr.msk.bf16.mxu1 %vm762_vm0, %v1128_v52  ;;  %6202 = vmatmul.mubr.msk.bf16.gmra.mrb[64].mxu0 %vm762_vm0, %v1496_v29 }
 0x240   : > { %v1618_v34 = vpop.trf.xlu1 }
 0x241   : > { %v1497_v30 = vpop.trf.xlu0 }
 0x242   : > { %6205 = vmatprep.mubr.msk.bf16.mxu0 %vm762_vm0, %v1497_v30 }
 0x244   : > { %v1619_v39 = vpop.trf.xlu1 }
 0x245   : > { %6152 = vmatmul.mubr.msk.bf16.gmra.mrb[56].mxu1 %vm762_vm0, %v1129_v54  ;;  %v1498_v31 = vpop.trf.xlu0 }
 0x246   : > { %6155 = vmatprep.mubr.msk.bf16.mxu1 %vm762_vm0, %v1130_v56  ;;  %6206 = vmatmul.mubr.msk.bf16.gmra.mrb[68].mxu0 %vm762_vm0, %v1498_v31 }
 0x248   : > { %v1620_v40 = vpop.trf.xlu1 }
 0x249   : > { %v1499_v32 = vpop.trf.xlu0 }
 0x24a   : > { %6209 = vmatprep.mubr.msk.bf16.mxu0 %vm762_vm0, %v1499_v32 }
 0x24c   : > { %v1621_v45 = vpop.trf.xlu1 }
 0x24d   : > { %6156 = vmatmul.mubr.msk.bf16.gmra.mrb[60].mxu1 %vm762_vm0, %v1131_v57  ;;  %v1500_v33 = vpop.trf.xlu0 }
 0x24e   : > { %6173 = vmatprep.mubr.msk.bf16.mxu1 %vm762_vm0, %v1253_v50  ;;  %6210 = vmatmul.mubr.msk.bf16.gmra.mrb[72].mxu0 %vm762_vm0, %v1500_v33 }
 0x250   : > { %v1622_v46 = vpop.trf.xlu1 }
 0x255   : > { %6174 = vmatmul.mubr.msk.bf16.vlgmr.msra.gmra.mrb[64].mxu1 %vm762_vm0, %v1254_v51  ;;  %v1623_v51 = vpop.trf.xlu1 }
 0x256   : > { %6178 = vmatpush3.bf16.msra.mxu1 %v7168_v7  ;;  %6179 = vmatprep.mubr.msk.bf16.mxu1 %vm762_vm0, %v1370_v58  ;;  %v7233_v7 = vpack.c.bf16 %v6078_v8, %v6077_v5 }
 0x257   : > { %6213 = vmatprep.subr.bf16.mxu1 %v7174_v13 }
 0x25d   : > { %6180 = vmatmul.mubr.msk.bf16.vlgmr.msra.gmra.mrb[68].mxu1 %vm762_vm0, %v1371_v59 }
 0x25e   : > { %6214 = vmatpush3.bf16.msra.mxu1 %v7174_v13  ;;  %6183 = vmatprep.mubr.msk.bf16.mxu1 %vm762_vm0, %v1372_v60  ;;  %v6086_v13 = vpop.f32.mrb[46].mxu0 }
 0x25f   : > { %v7243_v21 = vpack.c.bf16 %v6086_v13, %v6085_v19  ;;  %v710_v22 = vpop.f32.mrb[47].mxu0 }
 0x260   : > { %v7245_v24 = vpack.c.bf16 %v710_v22, %v707_v20 }
 0x261   : > { %8816 = vst [vmem:[#allocation13_spill] sm:$0xff] %v7243_v21 }
 0x262   : > { %8817 = vst [vmem:[#allocation14_spill] sm:$0xff] %v7245_v24 }
 0x265   : > { %6184 = vmatmul.mubr.msk.bf16.gmra.mrb[72].mxu1 %vm762_vm0, %v1373_v62 }
 0x266   : > { %6187 = vmatprep.mubr.msk.bf16.mxu1 %vm762_vm0, %v1374_v3 }
 0x26d   : > { %6188 = vmatmul.mubr.msk.bf16.gmra.mrb[76].mxu1 %vm762_vm0, %v1375_v14 }
 0x26e   : > { %6191 = vmatprep.mubr.msk.bf16.mxu1 %vm762_vm0, %v1376_v23 }
 0x275   : > { %6192 = vmatmul.mubr.msk.bf16.gmra.mrb[80].mxu1 %vm762_vm0, %v1377_v25 }
 0x276   : > { %6215 = vmatprep.mubr.msk.bf16.mxu1 %vm762_vm0, %v1616_v26 }
 0x27d   : > { %6216 = vmatmul.mubr.msk.bf16.vlgmr.msra.gmra.mrb[84].mxu1 %vm762_vm0, %v1617_v27 }
 0x27e   : > { %6219 = vmatprep.mubr.msk.bf16.mxu1 %vm762_vm0, %v1618_v34 }
 0x285   : > { %6220 = vmatmul.mubr.msk.bf16.gmra.mrb[88].mxu1 %vm762_vm0, %v1619_v39 }
 0x286   : > { %6223 = vmatprep.mubr.msk.bf16.mxu1 %vm762_vm0, %v1620_v40 }
 0x28d   : > { %6224 = vmatmul.mubr.msk.bf16.gmra.mrb[92].mxu1 %vm762_vm0, %v1621_v45 }
 0x28e   : > { %6227 = vmatprep.mubr.msk.bf16.mxu1 %vm762_vm0, %v1622_v46 }
 0x295   : > { %6228 = vmatmul.mubr.msk.bf16.gmra.mrb[96].mxu1 %vm762_vm0, %v1623_v51 }
 0x2a8   : > { %v6091_v35 = vpop.f32.mrb[0].mxu1 }
 0x2a9   : > { %v7259_v36 = vpop.f32.mrb[1].mxu1 }
 0x2aa   : > { %v6092_v37 = vpop.f32.mrb[2].mxu1 }
 0x2ab   : > { %v7261_v38 = vpop.f32.mrb[3].mxu1 }
 0x2ac   : > { %1771 = vrot.lane.b32.xlu0 %v7261_v38, %s6900_s20 }
 0x2b0   : > { %v6095_v41 = vpop.f32.mrb[4].mxu1 }
 0x2b1   : > { %v835_v42 = vpop.f32.mrb[5].mxu1 }
 0x2b2   : > { %v6096_v43 = vpop.f32.mrb[6].mxu1 }
 0x2b3   : > { %v837_v44 = vpop.f32.mrb[7].mxu1 }
 0x2b8   : > { %v6099_v47 = vpop.f32.mrb[8].mxu1 }
 0x2b9   : > { %v847_v48 = vpop.f32.mrb[9].mxu1 }
 0x2ba   : > { %v6100_v49 = vpop.f32.mrb[10].mxu1 }
 0x2bb   : > { %v849_v50 = vpop.f32.mrb[11].mxu1 }
 0x2c0   : > { %v6103_v52 = vpop.f32.mrb[12].mxu1 }
 0x2c1   : > { %v859_v53 = vpop.f32.mrb[13].mxu1 }
 0x2c2   : > { %v6104_v54 = vpop.f32.mrb[14].mxu1 }
 0x2c3   : > { %v861_v55 = vpop.f32.mrb[15].mxu1 }
 0x2c8   : > { %v6109_v56 = vpop.f32.mrb[16].mxu1 }
 0x2c9   : > { %v7270_v57 = vpop.f32.mrb[17].mxu1 }
 0x2ca   : > { %v6110_v58 = vpop.f32.mrb[18].mxu1 }
 0x2cb   : > { %v7272_v59 = vpop.f32.mrb[19].mxu1 }
 0x2cc   : > { %1773 = vrot.lane.b32.xlu1 %v7272_v59, %s6900_s20 }
 0x2d0   : > { %v6113_v60 = vpop.f32.mrb[20].mxu1 }
 0x2d1   : > { %v958_v61 = vpop.f32.mrb[21].mxu1 }
 0x2d2   : > { %v6114_v62 = vpop.f32.mrb[22].mxu1 }
 0x2d3   : > { %v960_v63 = vpop.f32.mrb[23].mxu1 }
 0x2d8   : > { %v6117_v0 = vpop.f32.mrb[24].mxu1 }
 0x2d9   : > { %v970_v2 = vpop.f32.mrb[25].mxu1 }
 0x2da   : > { %v6118_v3 = vpop.f32.mrb[26].mxu1 }
 0x2db   : > { %v972_v5 = vpop.f32.mrb[27].mxu1 }
 0x2e0   : > { %v6121_v6 = vpop.f32.mrb[28].mxu1 }
 0x2e1   : > { %v982_v8 = vpop.f32.mrb[29].mxu1 }
 0x2e2   : > { %v6122_v9 = vpop.f32.mrb[30].mxu1 }
 0x2e3   : > { %v984_v11 = vpop.f32.mrb[31].mxu1 }
 0x2e8   : > { %v6127_v12 = vpop.f32.mrb[32].mxu1  ;;  %v6163_v14 = vpop.f32.mrb[48].mxu0 }
 0x2e9   : > { %v7276_v15 = vpop.f32.mrb[33].mxu1  ;;  %v7278_v17 = vpop.f32.mrb[49].mxu0 }
 0x2ea   : > { %v6128_v19 = vpop.f32.mrb[34].mxu1  ;;  %v6164_v20 = vpop.f32.mrb[50].mxu0 }
 0x2eb   : > { %v1070_v13 = vpop.f32.mrb[35].mxu1  ;;  %v1316_v22 = vpop.f32.mrb[51].mxu0 }
 0x2ec   : > { %1775 = vrot.lane.b32.xlu1 %v1070_v13, %s6900_s20  ;;  %1779 = vrot.lane.b32.xlu0 %v1316_v22, %s6900_s20 }
 0x2f0   : > { %v6131_v23 = vpop.f32.mrb[36].mxu1  ;;  %v6167_v25 = vpop.f32.mrb[52].mxu0 }
 0x2f1   : > { %v1081_v26 = vpop.f32.mrb[37].mxu1  ;;  %v1327_v27 = vpop.f32.mrb[53].mxu0 }
 0x2f2   : > { %v6132_v28 = vpop.f32.mrb[38].mxu1  ;;  %v6168_v29 = vpop.f32.mrb[54].mxu0 }
 0x2f3   : > { %v1083_v30 = vpop.f32.mrb[39].mxu1  ;;  %v1329_v31 = vpop.f32.mrb[55].mxu0 }
 0x2f4   : > { %v8759_v31 = vmov 2102212464  }
 0x2f8   : > { %v6135_v32 = vpop.f32.mrb[40].mxu1  ;;  %v6171_v33 = vpop.f32.mrb[56].mxu0 }
 0x2f9   : > { %v1093_v34 = vpop.f32.mrb[41].mxu1  ;;  %v1339_v35 = vpop.f32.mrb[57].mxu0  ;;  %v8767_v33 = vmov 920167782  }
 0x2fa   : > { %v6136_v37 = vpop.f32.mrb[42].mxu1  ;;  %v6172_v39 = vpop.f32.mrb[58].mxu0 }
 0x2fb   : > { %v1095_v40 = vpop.f32.mrb[43].mxu1  ;;  %v1341_v41 = vpop.f32.mrb[59].mxu0 }
 0x2fc   : > { %v8757_v40 = vmov 1326507024  }
 0x300   : > { %v6139_v42 = vpop.f32.mrb[44].mxu1 }
 0x301   : > { %v1105_v43 = vpop.f32.mrb[45].mxu1 }
 0x302   : > { %v6140_v44 = vpop.f32.mrb[46].mxu1  ;;  %v8765_v43 = vmov 683565275  }
 0x303   : > { %v1107_v45 = vpop.f32.mrb[47].mxu1 }
 0x304   : > { %v8769_v45 = vmov 2475754826  }
 0x308   : > { %v6145_v46 = vpop.f32.mrb[48].mxu1  ;;  %v6199_v47 = vpop.f32.mrb[60].mxu0 }
 0x309   : > { %v7282_v48 = vpop.f32.mrb[49].mxu1  ;;  %v7284_v49 = vpop.f32.mrb[61].mxu0 }
 0x30a   : > { %v6146_v50 = vpop.f32.mrb[50].mxu1  ;;  %v6200_v51 = vpop.f32.mrb[62].mxu0 }
 0x30b   : > { %v7286_v52 = vpop.f32.mrb[51].mxu1  ;;  %v1562_v53 = vpop.f32.mrb[63].mxu0  ;;  %v8763_v51 = vmov 2131351028  }
 0x30c   : > { %1777 = vrot.lane.b32.xlu1 %v7286_v52, %s6900_s20  ;;  %1783 = vrot.lane.b32.xlu0 %v1562_v53, %s6900_s20 }
 0x310   : > { %v6149_v54 = vpop.f32.mrb[52].mxu1  ;;  %1739 = vrot.lane.b32.xlu0 %v7261_v38, %s6901_s22 }
 0x311   : > { %v1204_v55 = vpop.f32.mrb[53].mxu1 }
 0x312   : > { %v6150_v56 = vpop.f32.mrb[54].mxu1 }
 0x313   : > { %v1206_v58 = vpop.f32.mrb[55].mxu1 }
 0x314   : > { %1743 = vrot.lane.b32.xlu0 %v1070_v13, %s6901_s22 }
 0x318   : > { %v6153_v60 = vpop.f32.mrb[56].mxu1  ;;  %1747 = vrot.lane.b32.xlu0 %v1316_v22, %s6901_s22 }
 0x319   : > { %v1216_v61 = vpop.f32.mrb[57].mxu1 }
 0x31a   : > { %v6154_v62 = vpop.f32.mrb[58].mxu1 }
 0x31b   : > { %v1218_v63 = vpop.f32.mrb[59].mxu1 }
 0x31c   : > { %1751 = vrot.lane.b32.xlu0 %v1562_v53, %s6901_s22 }
 0x31e   : > { %v1772_v0 = vpop.permute.xlu0 %1771 }
 0x31f   : > { %v1795_v2 = vadd.f32 %v1772_v0, %v7259_v36 }
 0x320   : > { %v6157_v3 = vpop.f32.mrb[60].mxu1 }
 0x321   : > { %v7297_v5 = vmul.f32 2.0, %v1795_v2  ;;  %v1228_v38 = vpop.f32.mrb[61].mxu1 }
 0x322   : > { %v6158_v6 = vpop.f32.mrb[62].mxu1 }
 0x323   : > { %8818 = vst [vmem:[#allocation15_spill] sm:$0xff] %v7297_v5  ;;  %v1910_v8 = vand.u32 2139095040, %v7297_v5  ;;  %v1230_v9 = vpop.f32.mrb[63].mxu1  ;;  %v1907_v11 = vand.u32 2147483647, %v7297_v5  ;;  %vm1909_vm14 = vcmp.lt.s32.totalorder %v7297_v5, 0 }
 0x325   : > { %v1911_v12 = vshrl.u32 %v1910_v8, 23  ;;  %v1914_v20 = vand.u32 8388607, %v1907_v11  ;;  %vm7397_vm15 = vcmp.le.f32.partialorder %v1907_v11, 0.7853982 }
 0x327   : > { %v5656_v14 = vadd.s32 4294967169, %v1911_v12  ;;  %v1915_v27 = vor.u32 8388608, %v1914_v20 }
 0x328   : > { %v6175_v19 = vpop.f32.mrb[64].mxu1 }
 0x329   : > { %v1917_v13 = vadd.s32 1, %v5656_v14  ;;  %v1351_v22 = vpop.f32.mrb[65].mxu1  ;;  %v1955_v37 = vshll.u32 %v1915_v27, 8 }
 0x32a   : > { %v6176_v23 = vpop.f32.mrb[66].mxu1 }
 0x32b   : > { %vm1918_vm1 = vcmp.gt.s32.totalorder %v1917_v13, 0  ;;  %v1353_v25 = vpop.f32.mrb[67].mxu1 }
 0x32c   : > { %v1919_v26 = vsel %vm1918_vm1, %v1917_v13, 0 }
 0x32d   : > { %v1921_v28 = vand.u32 31, %v1919_v26  ;;  %v1920_v29 = vshrl.u32 %v1919_v26, 5 }
 0x32f   : > { %v1922_v30 = vsub.s32 32, %v1921_v28  ;;  %v1933_v32 = vshll.u32 %v8759_v31, %v1921_v28  ;;  %v1936_v34 = vshll.u32 %v8767_v33, %v1921_v28  ;;  %v1924_v44 = vshll.u32 %v8765_v43, %v1921_v28 }
 0x330   : > { %v6181_v35 = vpop.f32.mrb[68].mxu1  ;;  %v1927_v50 = vshll.u32 %v8769_v45, %v1921_v28  ;;  %v1930_v54 = vshll.u32 %v8763_v51, %v1921_v28  ;;  %vm1942_vm2 = vcmp.lt.s32.totalorder %v1920_v29, 4  ;;  %vm1939_vm3 = vcmp.lt.s32.totalorder %v1920_v29, 1 }
 0x331   : > { %v1934_v39 = vshrl.u32 %v8767_v33, %v1922_v30  ;;  %v1937_v41 = vshrl.u32 %v8757_v40, %v1922_v30  ;;  %v7307_v42 = vpop.f32.mrb[69].mxu1  ;;  %v1925_v46 = vshrl.u32 %v8769_v45, %v1922_v30  ;;  %v1928_v53 = vshrl.u32 %v8763_v51, %v1922_v30 }
 0x332   : > { %v6182_v47 = vpop.f32.mrb[70].mxu1  ;;  %v1931_v55 = vshrl.u32 %v8759_v31, %v1922_v30  ;;  %v1923_v62 = vshrl.u32 %v8765_v43, %v1922_v30  ;;  %vm1940_vm4 = vcmp.lt.s32.totalorder %v1920_v29, 2  ;;  %vm1941_vm5 = vcmp.lt.s32.totalorder %v1920_v29, 3 }
 0x333   : > { %v1935_v56 = vor.u32 %v1934_v39, %v1933_v32  ;;  %v1938_v58 = vor.u32 %v1937_v41, %v1936_v34  ;;  %v7315_v60 = vpop.f32.mrb[71].mxu1  ;;  %v1926_v61 = vor.u32 %v1925_v46, %v1924_v44  ;;  %v1929_v63 = vor.u32 %v1928_v53, %v1927_v50 }
 0x334   : > { %1781 = vrot.lane.b32.xlu1 %v7315_v60, %s6900_s20  ;;  %v1932_v0 = vor.u32 %v1931_v55, %v1930_v54 }
 0x335   : > { %v1948_v2 = vsel %vm1942_vm2, %v1935_v56, 920167782  ;;  %v1952_v3 = vsel %vm1942_vm2, %v1938_v58, 1326507024  ;;  %v1947_v6 = vsel %vm1939_vm3, %v1926_v61, %v1929_v63  ;;  %v1943_v12 = vsel %vm1939_vm3, %v1923_v62, %v1926_v61 }
 0x336   : > { %v1944_v38 = vsel %vm1942_vm2, %v1932_v0, 2102212464  ;;  %v1949_v8 = vsel %vm1941_vm5, %v1932_v0, %v1948_v2  ;;  %v1951_v9 = vsel %vm1939_vm3, %v1929_v63, %v1932_v0  ;;  %v1953_v20 = vsel %vm1941_vm5, %v1935_v56, %v1952_v3 }
 0x337   : > { %v1945_v14 = vsel %vm1941_vm5, %v1929_v63, %v1944_v38  ;;  %v1950_v19 = vsel %vm1940_vm4, %v1947_v6, %v1949_v8  ;;  %v1954_v22 = vsel %vm1940_vm4, %v1951_v9, %v1953_v20  ;;  %vm1999_vm5 = vweird.f32 %v7297_v5 }
 0x338   : > { %v6185_v13 = vpop.f32.mrb[72].mxu1  ;;  %v7322_v23 = vmul.u32.u64.low %v1955_v37, %v1950_v19  ;;  %v7323_v25 = vmul.u32.u64.high %v1955_v37, %v1950_v19, %v7322_v23  ;;  %v7325_v27 = vmul.u32.u64.low %v1955_v37, %v1954_v22  ;;  %v7326_v28 = vmul.u32.u64.high %v1955_v37, %v1954_v22, %v7325_v27 }
 0x339   : > { %v1450_v26 = vpop.f32.mrb[73].mxu1  ;;  %v1946_v32 = vsel %vm1940_vm4, %v1943_v12, %v1945_v14 }
 0x33a   : > { %v6186_v30 = vpop.f32.mrb[74].mxu1  ;;  %v1965_v35 = vadd.s32 1, %v7323_v25  ;;  %v1962_v39 = vmul.u32 %v1955_v37, %v1946_v32  ;;  %vm1964_vm6 = vc.u32 %v7326_v28, %v7322_v23  ;;  %v1963_v27 = vadd.s32 %v7322_v23, %v7326_v28 }
 0x33b   : > { %v1452_v34 = vpop.f32.mrb[75].mxu1 }
 0x33c   : > { %v1966_v44 = vsel %vm1964_vm6, %v1965_v35, %v7323_v25 }
 0x33d   : > { %v1967_v47 = vadd.s32 %v1966_v44, %v1962_v39 }
 0x33e   : > { %v1774_v41 = vpop.permute.xlu1 %1773 }
 0x33f   : > { %v1796_v46 = vadd.f32 %v1774_v41, %v7270_v57  ;;  %v1968_v55 = vadd.s32 536870912, %v1967_v47 }
 0x340   : > { %v6189_v50 = vpop.f32.mrb[76].mxu1 }
 0x341   : > { %v7333_v53 = vmul.f32 2.0, %v1796_v46  ;;  %v1462_v54 = vpop.f32.mrb[77].mxu1  ;;  %v7336_v61 = vshrl.u32 %v1968_v55, 30 }
 0x342   : > { %v6190_v56 = vpop.f32.mrb[78].mxu1 }
 0x343   : > { %8819 = vst [vmem:[#allocation16_spill] sm:$0xff] %v7333_v53  ;;  %v2013_v29 = vand.u32 2139095040, %v7333_v53  ;;  %v1464_v58 = vpop.f32.mrb[79].mxu1  ;;  %v2010_v37 = vand.u32 2147483647, %v7333_v53  ;;  %v1970_v63 = vshll.u32 %v7336_v61, 30 }
 0x345   : > { %v2014_v62 = vshrl.u32 %v2013_v29, 23  ;;  %v1971_v2 = vsub.s32 %v1967_v47, %v1970_v63  ;;  %v2017_v3 = vand.u32 8388607, %v2010_v37 }
 0x347   : > { %v5660_v0 = vadd.s32 4294967169, %v2014_v62  ;;  %v1973_v9 = vsub.s32 0, %v1971_v2  ;;  %v2018_v20 = vor.u32 8388608, %v2017_v3 }
 0x348   : > { %v6193_v38 = vpop.f32.mrb[80].mxu1 }
 0x349   : > { %v2020_v6 = vadd.s32 1, %v5660_v0  ;;  %v1474_v8 = vpop.f32.mrb[81].mxu1  ;;  %v5657_v19 = vmin.u32 %v1973_v9, %v1971_v2  ;;  %v7345_v35 = vshll.u32 %v2018_v20, 8 }
 0x34a   : > { %v6194_v12 = vpop.f32.mrb[82].mxu1 }
 0x34b   : > { %vm2021_vm7 = vcmp.gt.s32.totalorder %v2020_v6, 0  ;;  %v1476_v14 = vpop.f32.mrb[83].mxu1  ;;  %v1975_v26 = vclz %v5657_v19 }
 0x34c   : > { %v2022_v13 = vsel %vm2021_vm7, %v2020_v6, 0 }
 0x34d   : > { %v2023_v22 = vshrl.u32 %v2022_v13, 5  ;;  %v2024_v25 = vand.u32 31, %v2022_v13  ;;  %v5658_v41 = vadd.s32 4294967294, %v1975_v26 }
 0x34f   : > { %v2025_v30 = vsub.s32 32, %v2024_v25  ;;  %v2036_v32 = vshll.u32 %v8759_v31, %v2024_v25  ;;  %v2039_v34 = vshll.u32 %v8767_v33, %v2024_v25  ;;  %vm2045_vm8 = vcmp.lt.s32.totalorder %v2023_v22, 4 }
 0x350   : > { %v6217_v39 = vpop.f32.mrb[84].mxu1  ;;  %v2027_v44 = vshll.u32 %v8765_v43, %v2024_v25  ;;  %v2030_v46 = vshll.u32 %v8769_v45, %v2024_v25  ;;  %v2033_v28 = vshll.u32 %v8763_v51, %v2024_v25  ;;  %vm5659_vm9 = vcmp.lt.s32.totalorder %v5658_v41, 0 }
 0x351   : > { %v2037_v47 = vshrl.u32 %v8767_v33, %v2025_v30  ;;  %v2040_v50 = vshrl.u32 %v8757_v40, %v2025_v30  ;;  %v7351_v54 = vpop.f32.mrb[85].mxu1  ;;  %v2028_v23 = vshrl.u32 %v8769_v45, %v2025_v30  ;;  %v2026_v56 = vshrl.u32 %v8765_v43, %v2025_v30 }
 0x352   : > { %v6218_v55 = vpop.f32.mrb[86].mxu1  ;;  %v2031_v29 = vshrl.u32 %v8763_v51, %v2025_v30  ;;  %v2034_v58 = vshrl.u32 %v8759_v31, %v2025_v30  ;;  %v1978_v3 = vsel %vm5659_vm9, 0, %v5658_v41  ;;  %vm2042_vm10 = vcmp.lt.s32.totalorder %v2023_v22, 1 }
 0x353   : > { %v2038_v62 = vor.u32 %v2037_v47, %v2036_v32  ;;  %v2041_v63 = vor.u32 %v2040_v50, %v2039_v34  ;;  %v1685_v0 = vpop.f32.mrb[87].mxu1  ;;  %v2029_v38 = vor.u32 %v2028_v23, %v2027_v44  ;;  %v1979_v6 = vsub.s32 32, %v1978_v3 }
 0x354   : > { %1785 = vrot.lane.b32.xlu1 %v1685_v0, %s6900_s20  ;;  %v1983_v8 = vsub.s32 4294967266, %v1978_v3  ;;  %v2032_v9 = vor.u32 %v2031_v29, %v2030_v46  ;;  %v1980_v19 = vshll.u32 %v1971_v2, %v1978_v3  ;;  %v2035_v20 = vor.u32 %v2034_v58, %v2033_v28 }
 0x355   : > { %v2051_v12 = vsel %vm2045_vm8, %v2038_v62, 920167782  ;;  %v2055_v14 = vsel %vm2045_vm8, %v2041_v63, 1326507024  ;;  %v1981_v13 = vshrl.u32 %v1963_v27, %v1979_v6  ;;  %vm2043_vm11 = vcmp.lt.s32.totalorder %v2023_v22, 2  ;;  %v6203_v63 = vpop.f32.mrb[64].mxu0 }
 0x356   : > { %v1984_v25 = vadd.s32 127, %v1983_v8  ;;  %vm2044_vm12 = vcmp.lt.s32.totalorder %v2023_v22, 3  ;;  %v2047_v26 = vsel %vm2045_vm8, %v2035_v20, 2102212464  ;;  %v2050_v30 = vsel %vm2042_vm10, %v2029_v38, %v2032_v9 }
 0x357   : > { %v2052_v32 = vsel %vm2044_vm12, %v2035_v20, %v2051_v12  ;;  %v2054_v34 = vsel %vm2042_vm10, %v2032_v9, %v2035_v20  ;;  %v1982_v39 = vor.u32 %v1981_v13, %v1980_v19  ;;  %v2046_v44 = vsel %vm2042_vm10, %v2026_v56, %v2029_v38 }
 0x358   : > { %1741 = vrot.lane.b32.xlu1 %v7272_v59, %s6901_s22  ;;  %v1985_v41 = vshll.u32 %v1984_v25, 23  ;;  %v2053_v2 = vsel %vm2043_vm11, %v2050_v30, %v2052_v32  ;;  %v2048_v27 = vsel %vm2044_vm12, %v2032_v9, %v2047_v26  ;;  %v2056_v46 = vsel %vm2044_vm12, %v2038_v62, %v2055_v14  ;;  %v1573_v9 = vpop.f32.mrb[65].mxu0 }
 0x359   : > { %v7369_v47 = vmul.u32.u64.low %v7345_v35, %v2053_v2  ;;  %v7370_v50 = vmul.u32.u64.high %v7345_v35, %v2053_v2, %v7369_v47  ;;  %v2057_v28 = vsel %vm2043_vm11, %v2054_v34, %v2056_v46  ;;  %v1989_v56 = vcvt.s32.f32 %v1982_v39  ;;  %v6204_v12 = vpop.f32.mrb[66].mxu0 }
 0x35a   : > { %v1986_v23 = vor.u32 4788187, %v1985_v41  ;;  %v7375_v55 = vmul.u32.u64.low %v7345_v35, %v2057_v28  ;;  %v7376_v29 = vmul.u32.u64.high %v7345_v35, %v2057_v28, %v7375_v55  ;;  %v2049_v58 = vsel %vm2043_vm11, %v2046_v44, %v2048_v27  ;;  %v1575_v20 = vpop.f32.mrb[67].mxu0 }
 0x35b   : > { %v2068_v62 = vadd.s32 1, %v7370_v50  ;;  %v2065_v8 = vmul.u32 %v7345_v35, %v2049_v58  ;;  %v1993_v26 = vsub.s32 4, %v7336_v61  ;;  %v6207_v39 = vpop.f32.mrb[68].mxu0  ;;  %vm2012_vm12 = vcmp.lt.s32.totalorder %v7333_v53, 0 }
 0x35c   : > { %1745 = vrot.lane.b32.xlu1 %v7286_v52, %s6901_s22  ;;  %v1987_v59 = vand.u32 2147483647, %v1986_v23  ;;  %vm2067_vm13 = vc.u32 %v7376_v29, %v7369_v47  ;;  %v1585_v11 = vpop.f32.mrb[69].mxu0  ;;  %v2066_v39 = vadd.s32 %v7369_v47, %v7376_v29 }
 0x35d   : > { %v2069_v22 = vsel %vm2067_vm13, %v2068_v62, %v7370_v50  ;;  %v1994_v27 = vsel %vm1909_vm14, %v1993_v26, %v7336_v61  ;;  %v6208_v46 = vpop.f32.mrb[70].mxu0  ;;  %vm7511_vm13 = vcmp.le.f32.partialorder %v2010_v37, 0.7853982 }
 0x35e   : > { %v1776_v3 = vpop.permute.xlu1 %1775  ;;  %v1990_v38 = vmul.f32 %v1989_v56, %v1987_v59  ;;  %v2070_v19 = vadd.s32 %v2069_v22, %v2065_v8  ;;  %v1780_v25 = vpop.permute.xlu0 %1779  ;;  %v7417_v55 = vsel %vm7397_vm15, 0, %v1994_v27 }
 0x35f   : > { %v1797_v6 = vadd.f32 %v1776_v3, %v7276_v15  ;;  %v1799_v41 = vadd.f32 %v1780_v25, %v7278_v17  ;;  %v1587_v23 = vpop.f32.mrb[71].mxu0  ;;  %v2000_v63 = vand.u32 3, %v7417_v55 }
 0x360   : > { %1749 = vrot.lane.b32.xlu1 %v7315_v60, %s6901_s22  ;;  %v1991_v52 = vxor.u32 2147483648, %v1990_v38  ;;  %v2071_v32 = vadd.s32 536870912, %v2070_v19  ;;  %v6211_v3 = vpop.f32.mrb[72].mxu0 }
 0x361   : > { %v7390_v14 = vmul.f32 2.0, %v1797_v6  ;;  %v7413_v28 = vmul.f32 2.0, %v1799_v41  ;;  %v1597_v6 = vpop.f32.mrb[73].mxu0  ;;  %vm2001_vm2 = vcmp.lt.s32.totalorder %v2000_v63, 2  ;;  %vm2002_vm3 = vcmp.eq.s32.totalorder %v2000_v63, 0 }
 0x362   : > { %v1992_v35 = vsel %vm1909_vm14, %v1991_v52, %v1990_v38  ;;  %v7407_v44 = vshrl.u32 %v2071_v32, 30  ;;  %v6212_v52 = vpop.f32.mrb[74].mxu0  ;;  %vm2005_vm4 = vcmp.eq.s32.totalorder %v2000_v63, 2 }
 0x363   : > { %8820 = vst [vmem:[#allocation17_spill] sm:$0xff] %v7390_v14  ;;  %v2116_v13 = vand.u32 2139095040, %v7390_v14  ;;  %v1995_v30 = vsel %vm7397_vm15, %v7297_v5, %v1992_v35  ;;  %8823 = vst [vmem:[#allocation18_spill] sm:$0xff] %v7413_v28  ;;  %v2322_v61 = vand.u32 2139095040, %v7413_v28  ;;  %v1599_v12 = vpop.f32.mrb[75].mxu0 }
 0x364   : > { %1753 = vrot.lane.b32.xlu1 %v1685_v0, %s6901_s22  ;;  %6641 = vcosq.f32 %v1995_v30  ;;  %v2073_v0 = vshll.u32 %v7407_v44, 30  ;;  %v8756_v25 = vand.u32 2147483647, %v7390_v14 }
 0x365   : > { %v2117_v34 = vshrl.u32 %v2116_v13, 23  ;;  %6643 = vsinq.f32 %v1995_v30  ;;  %v2323_v35 = vshrl.u32 %v2322_v61, 23 }
 0x366   : > { %v2074_v59 = vsub.s32 %v2070_v19, %v2073_v0 }
 0x367   : > { %v5664_v2 = vadd.s32 4294967169, %v2117_v34  ;;  %v5672_v46 = vadd.s32 4294967169, %v2323_v35 }
 0x368   : > { %v2076_v58 = vsub.s32 0, %v2074_v59 }
 0x369   : > { %v2123_v50 = vadd.s32 1, %v5664_v2 }
 0x36a   : > { %v5661_v38 = vmin.u32 %v2076_v58, %v2074_v59 }
 0x36b   : > { %vm2124_vm1 = vcmp.gt.s32.totalorder %v2123_v50, 0 }
 0x36c   : > { %v2125_v56 = vsel %vm2124_vm1, %v2123_v50, 0  ;;  %v2078_v13 = vclz %v5661_v38  ;;  %v2120_v50 = vand.u32 8388607, %v8756_v25  ;;  %vm2102_vm1 = vweird.f32 %v7333_v53 }
 0x36d   : > { %v2127_v62 = vand.u32 31, %v2125_v56  ;;  %v7443_v11 = vshrl.u32 %v2125_v56, 5 }
 0x36e   : > { %v7421_v8 = vpop.eup %6641  ;;  %v5662_v41 = vadd.s32 4294967294, %v2078_v13 }
 0x36f   : > { %8824 = vst [vmem:[#allocation19_spill] sm:$0xff] %v7421_v8  ;;  %v7423_v9 = vsub.s32 32, %v2127_v62  ;;  %v7425_v22 = vpop.eup %6643  ;;  %v8753_v20 = vxor.u32 2147483648, %v7421_v8  ;;  %v2139_v2 = vshll.u32 %v8759_v31, %v2127_v62  ;;  %v2142_v27 = vshll.u32 %v8767_v33, %v2127_v62 }
 0x370   : > { %v8754_v19 = vxor.u32 2147483648, %v7425_v22  ;;  %vm5663_vm6 = vcmp.lt.s32.totalorder %v5662_v41, 0  ;;  %v2130_v61 = vshll.u32 %v8765_v43, %v2127_v62  ;;  %v2133_v38 = vshll.u32 %v8769_v45, %v2127_v62 }
 0x371   : > { %v2140_v60 = vshrl.u32 %v8767_v33, %v7423_v9  ;;  %v2143_v26 = vshrl.u32 %v8757_v40, %v7423_v9  ;;  %v2007_v32 = vsel %vm2005_vm4, %v8753_v20, %v7425_v22  ;;  %v2131_v47 = vshrl.u32 %v8769_v45, %v7423_v9 }
 0x372   : > { %v2004_v30 = vsel %vm2002_vm3, %v7421_v8, %v8754_v19  ;;  %v2081_v56 = vsel %vm5663_vm6, 0, %v5662_v41  ;;  %v2134_v58 = vshrl.u32 %v8763_v51, %v7423_v9  ;;  %vm2148_vm7 = vcmp.lt.s32.totalorder %v7443_v11, 4 }
 0x373   : > { %v2008_v34 = vsel %vm2001_vm2, %v2004_v30, %v2007_v32  ;;  %v2141_v29 = vor.u32 %v2140_v60, %v2139_v2  ;;  %v2144_v23 = vor.u32 %v2143_v26, %v2142_v27  ;;  %v2082_v63 = vsub.s32 32, %v2081_v56 }
 0x374   : > { %v2009_v0 = vsel %vm1999_vm5, nan, %v2008_v34  ;;  %v2086_v3 = vsub.s32 4294967266, %v2081_v56  ;;  %v2083_v6 = vshll.u32 %v2074_v59, %v2081_v56  ;;  %v2136_v52 = vshll.u32 %v8763_v51, %v2127_v62 }
 0x375   : > { %2739 = vrot.lane.b32.xlu0 %v2009_v0, %s6901_s22  ;;  %v2137_v12 = vshrl.u32 %v8759_v31, %v7423_v9  ;;  %v2084_v35 = vshrl.u32 %v2066_v39, %v2082_v63  ;;  %v7462_v60 = vor.u32 %v2131_v47, %v2130_v61  ;;  %v7464_v26 = vor.u32 %v2134_v58, %v2133_v38  ;;  %v6221_v63 = vpop.f32.mrb[88].mxu1 }
 0x376   : > { %v2087_v13 = vadd.s32 127, %v2086_v3  ;;  %v2154_v30 = vsel %vm2148_vm7, %v2141_v29, 920167782  ;;  %v2158_v34 = vsel %vm2148_vm7, %v2144_v23, 1326507024  ;;  %v2329_v41 = vadd.s32 1, %v5672_v46 }
 0x377   : > { %v2138_v32 = vor.u32 %v2137_v12, %v2136_v52  ;;  %v2085_v59 = vor.u32 %v2084_v35, %v2083_v6  ;;  %vm2145_vm8 = vcmp.lt.s32.totalorder %v7443_v11, 1  ;;  %vm2147_vm9 = vcmp.lt.s32.totalorder %v7443_v11, 3  ;;  %v1696_v61 = vpop.f32.mrb[89].mxu1 }
 0x378   : > { %v2088_v2 = vshll.u32 %v2087_v13, 23  ;;  %v2121_v0 = vor.u32 8388608, %v2120_v50  ;;  %v2153_v47 = vsel %vm2145_vm8, %v7462_v60, %v7464_v26  ;;  %v2159_v58 = vsel %vm2147_vm9, %v2141_v29, %v2158_v34  ;;  %v6222_v52 = vpop.f32.mrb[90].mxu1 }
 0x379   : > { %v2155_v56 = vsel %vm2147_vm9, %v2138_v32, %v2154_v30  ;;  %v2157_v23 = vsel %vm2145_vm8, %v7464_v26, %v2138_v32  ;;  %vm2330_vm10 = vcmp.gt.s32.totalorder %v2329_v41, 0  ;;  %v2092_v3 = vcvt.s32.f32 %v2085_v59  ;;  %v1698_v30 = vpop.f32.mrb[91].mxu1 }
 0x37a   : > { %v2089_v27 = vor.u32 4788187, %v2088_v2  ;;  %vm2146_vm11 = vcmp.lt.s32.totalorder %v7443_v11, 2  ;;  %v7493_v29 = vshll.u32 %v2121_v0, 8  ;;  %v2331_v34 = vsel %vm2330_vm10, %v2329_v41, 0  ;;  %v6225_v52 = vpop.f32.mrb[92].mxu1 }
 0x37b   : > { %v2156_v6 = vsel %vm2146_vm11, %v2153_v47, %v2155_v56  ;;  %v2160_v13 = vsel %vm2146_vm11, %v2157_v23, %v2159_v58  ;;  %v2096_v2 = vsub.s32 4, %v7407_v44  ;;  %v2333_v0 = vand.u32 31, %v2331_v34 }
 0x37c   : > { %v2090_v50 = vand.u32 2147483647, %v2089_v27  ;;  %v7504_v56 = vmul.u32.u64.low %v7493_v29, %v2160_v13  ;;  %v7505_v23 = vmul.u32.u64.high %v7493_v29, %v2160_v13, %v7504_v56  ;;  %v2150_v37 = vsel %vm2148_vm7, %v2138_v32, 2102212464 }
 0x37d   : > { %v2097_v61 = vsel %vm2012_vm12, %v2096_v2, %v7407_v44  ;;  %v8755_v30 = vand.u32 2147483647, %v7413_v28  ;;  %v7527_v44 = vsub.s32 32, %v2333_v0  ;;  %v2342_v25 = vshll.u32 %v8763_v51, %v2333_v0 }
 0x37e   : > { %v1778_v62 = vpop.permute.xlu1 %1777  ;;  %v1784_v39 = vpop.permute.xlu0 %1783  ;;  %v2093_v35 = vmul.f32 %v2092_v3, %v2090_v50 }
 0x37f   : > { %v1798_v46 = vadd.f32 %v1778_v62, %v7282_v48  ;;  %v1801_v13 = vadd.f32 %v1784_v39, %v7284_v49  ;;  %v7548_v41 = vand.u32 8388607, %v8755_v30  ;;  %v2337_v19 = vshrl.u32 %v8769_v45, %v7527_v44 }
 0x380   : > { %v2094_v62 = vxor.u32 2147483648, %v2093_v35  ;;  %v2339_v30 = vshll.u32 %v8769_v45, %v2333_v0 }
 0x381   : > { %v7485_v38 = vmul.f32 2.0, %v1798_v46  ;;  %v7498_v27 = vmul.u32.u64.low %v7493_v29, %v2156_v6  ;;  %v7499_v46 = vmul.u32.u64.high %v7493_v29, %v2156_v6, %v7498_v27 }
 0x382   : > { %v7489_v12 = vpop.permute.xlu0 %1739  ;;  %v2095_v63 = vsel %vm2012_vm12, %v2094_v62, %v2093_v35  ;;  %v1708_v35 = vpop.f32.mrb[93].mxu1 }
 0x383   : > { %v2219_v59 = vand.u32 2139095040, %v7485_v38  ;;  %v2098_v6 = vsel %vm7511_vm13, %v7333_v53, %v2095_v63  ;;  %v6226_v62 = vpop.f32.mrb[94].mxu1  ;;  %v2171_v52 = vadd.s32 1, %v7499_v46  ;;  %vm2170_vm14 = vc.u32 %v7505_v23, %v7498_v27 }
 0x384   : > { %6645 = vcosq.f32 %v2098_v6  ;;  %v1710_v39 = vpop.f32.mrb[95].mxu1  ;;  %v2327_v62 = vor.u32 8388608, %v7548_v41 }
 0x385   : > { %v2220_v47 = vshrl.u32 %v2219_v59, 23  ;;  %6647 = vsinq.f32 %v2098_v6  ;;  %v2129_v59 = vshrl.u32 %v8765_v43, %v7423_v9  ;;  %v2151_v9 = vsel %vm2147_vm9, %v7464_v26, %v2150_v37 }
 0x386   : > { %v7507_v58 = vpop.permute.xlu0 %1743  ;;  %v7543_v6 = vmul.f32 2.0, %v1801_v13  ;;  %v2349_v26 = vshrl.u32 %v8757_v40, %v7527_v44  ;;  %v6229_v13 = vpop.f32.mrb[96].mxu1  ;;  %v7559_v37 = vshrl.u32 %v2331_v34, 5  ;;  %v2345_v39 = vshll.u32 %v8759_v31, %v2333_v0 }
 0x387   : > { %v5668_v50 = vadd.s32 4294967169, %v2220_v47  ;;  %v7533_v47 = vsel %vm7511_vm13, 0, %v2097_v61  ;;  %v2149_v63 = vsel %vm2145_vm8, %v2129_v59, %v7462_v60  ;;  %v2346_v61 = vshrl.u32 %v8767_v33, %v7527_v44  ;;  %v1720_v11 = vpop.f32.mrb[97].mxu1 }
 0x388   : > { %8827 = vst [vmem:[#allocation20_spill] sm:$0xff] %v7533_v47  ;;  %v2152_v60 = vsel %vm2146_vm11, %v2149_v63, %v2151_v9  ;;  %v2528_v35 = vand.u32 2139095040, %v7543_v6  ;;  %v2172_v59 = vsel %vm2170_vm14, %v2171_v52, %v7499_v46  ;;  %v2348_v63 = vshll.u32 %v8767_v33, %v2333_v0  ;;  %v6230_v20 = vpop.f32.mrb[98].mxu1 }
 0x389   : > { %v2226_v56 = vadd.s32 1, %v5668_v50  ;;  %v2103_v50 = vand.u32 3, %v7533_v47  ;;  %v2168_v9 = vmul.u32 %v7493_v29, %v2152_v60  ;;  %v2340_v46 = vshrl.u32 %v8763_v51, %v7527_v44  ;;  %v1722_v41 = vpop.f32.mrb[99].mxu1 }
 0x38a   : > { %v7529_v2 = vpop.permute.xlu0 %1747  ;;  %v2343_v52 = vshrl.u32 %v8759_v31, %v7527_v44  ;;  %v2347_v32 = vor.u32 %v2346_v61, %v2345_v39  ;;  %v2350_v3 = vor.u32 %v2349_v26, %v2348_v63  ;;  %v2529_v60 = vshrl.u32 %v2528_v35, 23 }
 0x38b   : > { %vm2227_vm15 = vcmp.gt.s32.totalorder %v2226_v56, 0  ;;  %vm2104_vm2 = vcmp.lt.s32.totalorder %v2103_v50, 2  ;;  %v2173_v20 = vadd.s32 %v2172_v59, %v2168_v9  ;;  %vm2105_vm3 = vcmp.eq.s32.totalorder %v2103_v50, 0 }
 0x38c   : > { %v2228_v34 = vsel %vm2227_vm15, %v2226_v56, 0  ;;  %v2336_v56 = vshll.u32 %v8765_v43, %v2333_v0  ;;  %vm2108_vm4 = vcmp.eq.s32.totalorder %v2103_v50, 2  ;;  %vm2354_vm6 = vcmp.lt.s32.totalorder %v7559_v37, 4 }
 0x38d   : > { %v7582_v40 = vand.u32 31, %v2228_v34  ;;  %v2341_v26 = vor.u32 %v2340_v46, %v2339_v30  ;;  %v2344_v39 = vor.u32 %v2343_v52, %v2342_v25  ;;  %v2360_v35 = vsel %vm2354_vm6, %v2347_v32, 920167782 }
 0x38e   : > { %v7568_v13 = vpop.eup %6645  ;;  %v2338_v61 = vor.u32 %v2337_v19, %v2336_v56  ;;  %v2174_v63 = vadd.s32 536870912, %v2173_v20  ;;  %v2364_v9 = vsel %vm2354_vm6, %v2350_v3, 1326507024  ;;  %v5680_v41 = vadd.s32 4294967169, %v2529_v60 }
 0x38f   : > { %8828 = vst [vmem:[#allocation21_spill] sm:$0xff] %v7568_v13  ;;  %v7576_v11 = vpop.eup %6647  ;;  %v8761_v29 = vxor.u32 2147483648, %v7568_v13  ;;  %vm2351_vm7 = vcmp.lt.s32.totalorder %v7559_v37, 1  ;;  %v7599_v25 = vsub.s32 32, %v7582_v40  ;;  %vm2353_vm8 = vcmp.lt.s32.totalorder %v7559_v37, 3 }
 0x390   : > { %8829 = vst [vmem:[#allocation22_spill] sm:$0xff] %v7576_v11  ;;  %v8762_v31 = vxor.u32 2147483648, %v7576_v11  ;;  %v7603_v46 = vshrl.u32 %v2174_v63, 30  ;;  %v2356_v3 = vsel %vm2354_vm6, %v2344_v39, 2102212464  ;;  %v2359_v50 = vsel %vm2351_vm7, %v2338_v61, %v2341_v26 }
 0x391   : > { %v2110_v0 = vsel %vm2108_vm4, %v8761_v29, %v7576_v11  ;;  %v2361_v52 = vsel %vm2353_vm8, %v2344_v39, %v2360_v35  ;;  %v2335_v56 = vshrl.u32 %v8765_v43, %v7527_v44  ;;  %vm2352_vm9 = vcmp.lt.s32.totalorder %v7559_v37, 2 }
 0x392   : > { %v2107_v59 = vsel %vm2105_vm3, %v7568_v13, %v8762_v31  ;;  %v2176_v60 = vshll.u32 %v7603_v46, 30  ;;  %v2362_v63 = vsel %vm2352_vm9, %v2359_v50, %v2361_v52  ;;  %v2243_v35 = vshrl.u32 %v8767_v33, %v7599_v25 }
 0x393   : > { %v2111_v19 = vsel %vm2104_vm2, %v2107_v59, %v2110_v0  ;;  %v2363_v59 = vsel %vm2351_vm7, %v2341_v26, %v2344_v39  ;;  %v2535_v0 = vadd.s32 1, %v5680_v41  ;;  %v2355_v44 = vsel %vm2351_vm7, %v2335_v56, %v2338_v61 }
 0x394   : > { %v2112_v30 = vsel %vm2102_vm1, nan, %v2111_v19  ;;  %v2365_v19 = vsel %vm2353_vm8, %v2347_v32, %v2364_v9  ;;  %v7625_v29 = vsub.s32 %v2173_v20, %v2176_v60  ;;  %v2357_v31 = vsel %vm2353_vm8, %v2341_v26, %v2356_v3 }
 0x395   : > { %2741 = vrot.lane.b32.xlu1 %v2112_v30, %s6901_s22  ;;  %v2367_v30 = vshll.u32 %v2327_v62, 8  ;;  %v8830_v39 = vmov 1326507024   ;;  %v2366_v50 = vsel %vm2352_vm9, %v2363_v59, %v2365_v19  ;;  %v8831_v60 = vmov 2102212464  }
 0x396   : > { %v2246_v41 = vshrl.u32 %v8830_v39, %v7599_v25  ;;  %v2179_v62 = vsub.s32 0, %v7625_v29  ;;  %v2242_v26 = vshll.u32 %v8831_v60, %v7582_v40  ;;  %v2245_v3 = vshll.u32 %v8767_v33, %v7582_v40 }
 0x397   : > { %v7635_v52 = vmul.u32.u64.low %v2367_v30, %v2362_v63  ;;  %v7636_v32 = vmul.u32.u64.high %v2367_v30, %v2362_v63, %v7635_v52  ;;  %v7640_v20 = vmul.u32.u64.low %v2367_v30, %v2366_v50  ;;  %v7641_v9 = vmul.u32.u64.high %v2367_v30, %v2366_v50, %v7640_v20 }
 0x398   : > { %v2358_v56 = vsel %vm2352_vm9, %v2355_v44, %v2357_v31  ;;  %v7650_v59 = vshrl.u32 %v2228_v34, 5  ;;  %vm2536_vm10 = vcmp.gt.s32.totalorder %v2535_v0, 0  ;;  %v2169_v63 = vadd.s32 %v7498_v27, %v7505_v23 }
 0x399   : > { %v5665_v19 = vmin.u32 %v2179_v62, %v7625_v29  ;;  %v2244_v50 = vor.u32 %v2243_v35, %v2242_v26  ;;  %v2247_v20 = vor.u32 %v2246_v41, %v2245_v3  ;;  %v2377_v51 = vadd.s32 1, %v7636_v32 }
 0x39a   : > { %v2234_v43 = vshrl.u32 %v8769_v45, %v7599_v25  ;;  %v2374_v33 = vmul.u32 %v2367_v30, %v2358_v56  ;;  %vm2376_vm11 = vc.u32 %v7641_v9, %v7635_v52  ;;  %v8832_v31 = vand.u32 2147483647, %v7485_v38 }
 0x39b   : > { %v2181_v61 = vclz %v5665_v19  ;;  %v2378_v34 = vsel %vm2376_vm11, %v2377_v51, %v7636_v32  ;;  %v8833_v27 = vmov 683565275   ;;  %v2236_v35 = vshll.u32 %v8769_v45, %v7582_v40 }
 0x39c   : > { %v2223_v37 = vand.u32 8388607, %v8832_v31  ;;  %v2233_v23 = vshll.u32 %v8833_v27, %v7582_v40  ;;  %v8834_v44 = vmov 2131351028   ;;  %v2379_v26 = vadd.s32 %v2378_v34, %v2374_v33 }
 0x39d   : > { %v2237_v41 = vshrl.u32 %v8834_v44, %v7599_v25  ;;  %v5666_v62 = vadd.s32 4294967294, %v2181_v61  ;;  %v2239_v30 = vshll.u32 %v8834_v44, %v7582_v40  ;;  %v2240_v3 = vshrl.u32 %v8831_v60, %v7599_v25 }
 0x39e   : > { %vm2251_vm12 = vcmp.lt.s32.totalorder %v7650_v59, 4  ;;  %v2537_v51 = vsel %vm2536_vm10, %v2535_v0, 0  ;;  %v2235_v56 = vor.u32 %v2234_v43, %v2233_v23  ;;  %v2380_v45 = vadd.s32 536870912, %v2379_v26 }
 0x39f   : > { %v2238_v19 = vor.u32 %v2237_v41, %v2236_v35  ;;  %v2261_v31 = vsel %vm2251_vm12, %v2247_v20, 1326507024  ;;  %vm5667_vm13 = vcmp.lt.s32.totalorder %v5666_v62, 0  ;;  %v2241_v61 = vor.u32 %v2240_v3, %v2239_v30 }
 0x3a0   : > { %v2257_v33 = vsel %vm2251_vm12, %v2244_v50, 920167782  ;;  %v2184_v40 = vsel %vm5667_vm13, 0, %v5666_v62  ;;  %v2224_v34 = vor.u32 8388608, %v2223_v37  ;;  %vm2248_vm14 = vcmp.lt.s32.totalorder %v7650_v59, 1 }
 0x3a1   : > { %v2185_v53 = vsub.s32 32, %v2184_v40  ;;  %v2189_v0 = vsub.s32 4294967266, %v2184_v40  ;;  %vm2250_vm15 = vcmp.lt.s32.totalorder %v7650_v59, 3  ;;  %v2186_v43 = vshll.u32 %v7625_v29, %v2184_v40 }
 0x3a2   : > { %v7683_v23 = vshrl.u32 %v2380_v45, 30  ;;  %v2256_v20 = vsel %vm2248_vm14, %v2235_v56, %v2238_v19  ;;  %v2262_v35 = vsel %vm2250_vm15, %v2244_v50, %v2261_v31  ;;  %v2258_v62 = vsel %vm2250_vm15, %v2241_v61, %v2257_v33 }
 0x3a3   : > { %v2187_v41 = vshrl.u32 %v2169_v63, %v2185_v53  ;;  %v2190_v37 = vadd.s32 127, %v2189_v0  ;;  %v2260_v30 = vsel %vm2248_vm14, %v2238_v19, %v2241_v61  ;;  %v1763_v3 = vsub.f32 %v7259_v36, %v7489_v12 }
 0x3a4   : > { %v2382_v45 = vshll.u32 %v7683_v23, 30  ;;  %v7696_v29 = vand.u32 31, %v2537_v51  ;;  %vm2249_vm2 = vcmp.lt.s32.totalorder %v7650_v59, 2  ;;  %v2264_v31 = vshll.u32 %v2224_v34, 8 }
 0x3a5   : > { %v2191_v40 = vshll.u32 %v2190_v37, 23  ;;  %v2259_v53 = vsel %vm2249_vm2, %v2256_v20, %v2258_v62  ;;  %v2263_v63 = vsel %vm2249_vm2, %v2260_v30, %v2262_v35  ;;  %v2199_v12 = vsub.s32 4, %v7603_v46 }
 0x3a6   : > { %v1782_v32 = vpop.permute.xlu1 %1781  ;;  %v7699_v50 = vsub.s32 %v2379_v26, %v2382_v45  ;;  %v2232_v0 = vshrl.u32 %v8833_v27, %v7599_v25  ;;  %v2253_v26 = vsel %vm2251_vm12, %v2241_v61, 2102212464  ;;  %vm2115_vm3 = vcmp.lt.s32.totalorder %v7390_v14, 0 }
 0x3a7   : > { %v1800_v21 = vadd.f32 %v1782_v32, %v7307_v42  ;;  %v2188_v32 = vor.u32 %v2187_v41, %v2186_v43  ;;  %v2192_v36 = vor.u32 4788187, %v2191_v40  ;;  %v7723_v25 = vsub.s32 32, %v7696_v29 }
 0x3a8   : > { %v2385_v43 = vsub.s32 0, %v7699_v50  ;;  %v7713_v41 = vmul.u32.u64.low %v2264_v31, %v2263_v63  ;;  %v7714_v37 = vmul.u32.u64.high %v2264_v31, %v2263_v63, %v7713_v41  ;;  %v2252_v61 = vsel %vm2248_vm14, %v2232_v0, %v2235_v56 }
 0x3a9   : > { %v7705_v33 = vmul.f32 2.0, %v1800_v21  ;;  %v2193_v20 = vand.u32 2147483647, %v2192_v36  ;;  %v2195_v62 = vcvt.s32.f32 %v2188_v32  ;;  %v1803_v21 = vmul.f32 2.0, %v1763_v3 }
 0x3aa   : > { %v7716_v35 = vmul.u32.u64.low %v2264_v31, %v2259_v53  ;;  %v7717_v34 = vmul.u32.u64.high %v2264_v31, %v2259_v53, %v7716_v35  ;;  %v5673_v30 = vmin.u32 %v2385_v43, %v7699_v50  ;;  %v2254_v40 = vsel %vm2250_vm15, %v2238_v19, %v2253_v26 }
 0x3ab   : > { %v2196_v45 = vmul.f32 %v2195_v62, %v2193_v20  ;;  %v8835_v32 = vand.u32 2147483647, %v7390_v14  ;;  %v2200_v3 = vsel %vm2115_vm3, %v2199_v12, %v7603_v46  ;;  %v2425_v36 = vand.u32 2139095040, %v7705_v33 }
 0x3ac   : > { %v2387_v63 = vclz %v5673_v30  ;;  %vm2273_vm6 = vc.u32 %v7714_v37, %v7716_v35  ;;  %v2274_v56 = vadd.s32 1, %v7717_v34  ;;  %v7742_v19 = vshrl.u32 %v2537_v51, 5 }
 0x3ad   : > { %vm7731_vm4 = vcmp.le.f32.partialorder %v8835_v32, 0.7853982  ;;  %v2197_v43 = vxor.u32 2147483648, %v2196_v45  ;;  %v5648_v0 = vclamps-f32 %v1803_v21, 40.0  ;;  %v2255_v41 = vsel %vm2249_vm2, %v2252_v61, %v2254_v40 }
 0x3ae   : > { %v5674_v26 = vadd.s32 4294967294, %v2387_v63  ;;  %v2551_v20 = vshll.u32 %v8831_v60, %v7696_v29  ;;  %v8838_v46 = vmov 920167782   ;;  %v2555_v30 = vshrl.u32 %v8830_v39, %v7723_v25 }
 0x3af   : > { %v2552_v12 = vshrl.u32 %v8838_v46, %v7723_v25  ;;  %v2554_v62 = vshll.u32 %v8838_v46, %v7696_v29  ;;  %vm2321_vm7 = vcmp.lt.s32.totalorder %v7413_v28, 0  ;;  %v2198_v51 = vsel %vm2115_vm3, %v2197_v43, %v2196_v45 }
 0x3b0   : > { %v7759_v59 = vsel %vm7731_vm4, 0, %v2200_v3  ;;  %vm5675_vm8 = vcmp.lt.s32.totalorder %v5674_v26, 0  ;;  %v2275_v21 = vsel %vm2273_vm6, %v2274_v56, %v7717_v34  ;;  %v2426_v61 = vshrl.u32 %v2425_v36, 23 }
 0x3b1   : > { %8839 = vst [vmem:[#allocation23_spill] sm:$0xff] %v7759_v59  ;;  %v2201_v40 = vsel %vm7731_vm4, %v7390_v14, %v2198_v51  ;;  %v2390_v32 = vsel %vm5675_vm8, 0, %v5674_v26  ;;  %v2271_v63 = vmul.u32 %v2264_v31, %v2255_v41  ;;  %v2375_v13 = vadd.s32 %v7635_v52, %v7641_v9 }
 0x3b2   : > { %6649 = vcosq.f32 %v2201_v40  ;;  %v2391_v11 = vsub.s32 32, %v2390_v32  ;;  %v2395_v45 = vsub.s32 4294967266, %v2390_v32  ;;  %v7767_v43 = vor.u32 %v2552_v12, %v2551_v20 }
 0x3b3   : > { %v2556_v3 = vor.u32 %v2555_v30, %v2554_v62  ;;  %6651 = vsinq.f32 %v2201_v40  ;;  %v2276_v16 = vadd.s32 %v2275_v21, %v2271_v63  ;;  %v2206_v34 = vand.u32 3, %v7759_v59 }
 0x3b4   : > { %v2392_v36 = vshll.u32 %v7699_v50, %v2390_v32  ;;  %v2393_v56 = vshrl.u32 %v2375_v13, %v2391_v11  ;;  %v2396_v53 = vadd.s32 127, %v2395_v45  ;;  %v5676_v51 = vadd.s32 4294967169, %v2426_v61 }
 0x3b5   : > { %v8840_v31 = vand.u32 2147483647, %v7413_v28  ;;  %v2405_v52 = vsub.s32 4, %v7683_v23  ;;  %v2277_v9 = vadd.s32 536870912, %v2276_v16  ;;  %vm2560_vm10 = vcmp.lt.s32.totalorder %v7742_v19, 4 }
 0x3b6   : > { %v7779_v41 = vmul.f32 1.442695, %v5648_v0  ;;  %v2394_v20 = vor.u32 %v2393_v56, %v2392_v36  ;;  %v2397_v12 = vshll.u32 %v2396_v53, 23  ;;  %v2566_v13 = vsel %vm2560_vm10, %v7767_v43, 920167782 }
 0x3b7   : > { %vm7773_vm9 = vcmp.le.f32.partialorder %v8840_v31, 0.7853982  ;;  %v1851_v11 = vsub.f32 0.0, %v5648_v0  ;;  %v7784_v50 = vshrl.u32 %v2277_v9, 30  ;;  %v8778_v62 = vand.u32 2147483647, %v7543_v6 }
 0x3b8   : > { %v2570_v30 = vsel %vm2560_vm10, %v2556_v3, 1326507024  ;;  %vm2207_vm11 = vcmp.lt.s32.totalorder %v2206_v34, 2  ;;  %vm2208_vm12 = vcmp.eq.s32.totalorder %v2206_v34, 0  ;;  %v2398_v21 = vor.u32 4788187, %v2397_v12 }
 0x3b9   : > { %v2432_v61 = vadd.s32 1, %v5676_v51  ;;  %vm2205_vm13 = vweird.f32 %v7390_v14  ;;  %v2406_v40 = vsel %vm2321_vm7, %v2405_v52, %v7683_v23  ;;  %v2279_v32 = vshll.u32 %v7784_v50, 30 }
 0x3ba   : > { %v8843_v0 = vmov 2475754826   ;;  %v2399_v45 = vand.u32 2147483647, %v2398_v21  ;;  %v2401_v36 = vcvt.s32.f32 %v2394_v20  ;;  %v2546_v3 = vshrl.u32 %v8834_v44, %v7723_v25 }
 0x3bb   : > { %v2543_v63 = vshrl.u32 %v8843_v0, %v7723_v25  ;;  %v2549_v56 = vshrl.u32 %v8831_v60, %v7723_v25  ;;  %vm2211_vm14 = vcmp.eq.s32.totalorder %v2206_v34, 2  ;;  %v7800_v53 = vsub.s32 %v2276_v16, %v2279_v32 }
 0x3bc   : > { %v2532_v51 = vand.u32 8388607, %v8778_v62  ;;  %v2542_v23 = vshll.u32 %v8833_v27, %v7696_v29  ;;  %v7806_v31 = vpop.eup %6649  ;;  %v2402_v52 = vmul.f32 %v2401_v36, %v2399_v45  ;;  %v7810_v9 = vsel %vm7773_vm9, 0, %v2406_v40 }
 0x3bd   : > { %8844 = vst [vmem:[#allocation24_spill] sm:$0xff] %v7806_v31  ;;  %8845 = vst [vmem:[#allocation25_spill] sm:$0xff] %v7810_v9  ;;  %v2545_v20 = vshll.u32 %v8843_v0, %v7696_v29  ;;  %v2548_v16 = vshll.u32 %v8834_v44, %v7696_v29  ;;  %v7816_v12 = vpop.eup %6651  ;;  %vm2433_vm15 = vcmp.gt.s32.totalorder %v2432_v61, 0  ;;  %v8785_v21 = vxor.u32 2147483648, %v7806_v31 }
 0x3be   : > { %8846 = vst [vmem:[#allocation26_spill] sm:$0xff] %v7816_v12  ;;  %v2282_v32 = vsub.s32 0, %v7800_v53  ;;  %v7820_v62 = vor.u32 %v2543_v63, %v2542_v23  ;;  %v8786_v45 = vxor.u32 2147483648, %v7816_v12  ;;  %v2403_v36 = vxor.u32 2147483648, %v2402_v52 }
 0x3bf   : > { %v7823_v59 = vor.u32 %v2546_v3, %v2545_v20  ;;  %v2550_v47 = vor.u32 %v2549_v56, %v2548_v16  ;;  %v2213_v29 = vsel %vm2211_vm14, %v8785_v21, %v7816_v12  ;;  %v2533_v8 = vor.u32 8388608, %v2532_v51 }
 0x3c0   : > { %v5669_v5 = vmin.u32 %v2282_v32, %v7800_v53  ;;  %v2210_v63 = vsel %vm2208_vm12, %v7806_v31, %v8786_v45  ;;  %v2404_v3 = vsel %vm2321_vm7, %v2403_v36, %v2402_v52  ;;  %vm2557_vm2 = vcmp.lt.s32.totalorder %v7742_v19, 1 }
 0x3c1   : > { %vm2559_vm3 = vcmp.lt.s32.totalorder %v7742_v19, 3  ;;  %v2214_v56 = vsel %vm2207_vm11, %v2210_v63, %v2213_v29  ;;  %v2407_v23 = vsel %vm7773_vm9, %v7413_v28, %v2404_v3  ;;  %v2565_v52 = vsel %vm2557_vm2, %v7820_v62, %v7823_v59 }
 0x3c2   : > { %v2284_v51 = vclz %v5669_v5  ;;  %v2215_v16 = vsel %vm2205_vm13, nan, %v2214_v56  ;;  %6653 = vcosq.f32 %v2407_v23  ;;  %v2567_v34 = vsel %vm2559_vm3, %v2550_v47, %v2566_v13 }
 0x3c3   : > { %2743 = vrot.lane.b32.xlu0 %v2215_v16, %s6901_s22  ;;  %6655 = vsinq.f32 %v2407_v23  ;;  %v2569_v5 = vsel %vm2557_vm2, %v7823_v59, %v2550_v47  ;;  %v2571_v26 = vsel %vm2559_vm3, %v7767_v43, %v2570_v30  ;;  %v7864_v36 = vsel %vm2433_vm15, %v2432_v61, 0 }
 0x3c4   : > { %vm2558_vm4 = vcmp.lt.s32.totalorder %v7742_v19, 2  ;;  %6657 = vpow2.f32 %v7779_v41  ;;  %v1859_v13 = vmul.f32 1.442695, %v1851_v11  ;;  %v2412_v29 = vand.u32 3, %v7810_v9 }
 0x3c5   : > { %v2568_v63 = vsel %vm2558_vm4, %v2565_v52, %v2567_v34  ;;  %v2572_v43 = vsel %vm2558_vm4, %v2569_v5, %v2571_v26  ;;  %v7875_v30 = vshll.u32 %v2533_v8, 8  ;;  %v7878_v61 = vand.u32 31, %v7864_v36 }
 0x3c6   : > { %v1786_v40 = vpop.permute.xlu1 %1785  ;;  %v8787_v23 = vmov 0.0   ;;  %vm2218_vm7 = vcmp.lt.s32.totalorder %v7485_v38, 0  ;;  %6659 = vpow2.f32 %v1859_v13  ;;  %vm2411_vm8 = vweird.f32 %v7413_v28 }
 0x3c7   : > { %v1802_v24 = vadd.f32 %v1786_v40, %v7351_v54  ;;  %v5670_v40 = vadd.s32 4294967294, %v2284_v51  ;;  %6231 = vmatprep.subr.bf16.mxu1 %v8787_v23  ;;  %6243 = vmatprep.subr.bf16.mxu0 %v8787_v23  ;;  %v7885_v52 = vmul.u32.u64.low %v7875_v30, %v2568_v63  ;;  %v7886_v34 = vmul.u32.u64.high %v7875_v30, %v2568_v63, %v7885_v52 }
 0x3c8   : > { %vm2413_vm9 = vcmp.lt.s32.totalorder %v2412_v29, 2  ;;  %v2272_v26 = vadd.s32 %v7716_v35, %v7714_v37  ;;  %v2562_v63 = vsel %vm2560_vm10, %v2550_v47, 2102212464  ;;  %v7902_v21 = vsub.s32 32, %v7878_v61 }
 0x3c9   : > { %v7843_v20 = vmul.f32 2.0, %v1802_v24  ;;  %vm5671_vm6 = vcmp.lt.s32.totalorder %v5670_v40, 0  ;;  %vm2414_vm11 = vcmp.eq.s32.totalorder %v2412_v29, 0  ;;  %v2541_v45 = vshrl.u32 %v8833_v27, %v7723_v25 }
 0x3ca   : > { %v7847_v32 = vpop.permute.xlu1 %1741  ;;  %v2287_v11 = vsel %vm5671_vm6, 0, %v5670_v40  ;;  %vm2417_vm12 = vcmp.eq.s32.totalorder %v2412_v29, 2  ;;  %v8848_v35 = vand.u32 2147483647, %v7485_v38  ;;  %v2563_v37 = vsel %vm2559_vm3, %v7823_v59, %v2562_v63 }
 0x3cb   : > { %v2631_v24 = vand.u32 2139095040, %v7843_v20  ;;  %v2288_v51 = vsub.s32 32, %v2287_v11  ;;  %v2292_v16 = vsub.s32 4294967266, %v2287_v11  ;;  %v1764_v41 = vsub.f32 %v7270_v57, %v7847_v32 }
 0x3cc   : > { %vm7914_vm10 = vcmp.le.f32.partialorder %v8848_v35, 0.7853982  ;;  %v2561_v23 = vsel %vm2557_vm2, %v2541_v45, %v7820_v62  ;;  %v2289_v9 = vshll.u32 %v7800_v53, %v2287_v11  ;;  %v2449_v57 = vshrl.u32 %v8838_v46, %v7902_v21 }
 0x3cd   : > { %v2632_v56 = vshrl.u32 %v2631_v24, 23  ;;  %v7892_v8 = vmul.u32.u64.low %v7875_v30, %v2572_v43  ;;  %v7893_v24 = vmul.u32.u64.high %v7875_v30, %v2572_v43, %v7892_v8  ;;  %v2293_v40 = vadd.s32 127, %v2292_v16  ;;  %v7906_v43 = vpop.eup %6653 }
 0x3ce   : > { %v7871_v3 = vpop.permute.xlu1 %1745  ;;  %8847 = vst [vmem:[#allocation27_spill] sm:$0xff] %v7906_v43  ;;  %v2448_v8 = vshll.u32 %v8831_v60, %v7878_v61  ;;  %v2290_v16 = vshrl.u32 %v2272_v26, %v2288_v51  ;;  %v8795_v25 = vxor.u32 2147483648, %v7906_v43  ;;  %v2302_v26 = vsub.s32 4, %v7784_v50 }
 0x3cf   : > { %v5684_v13 = vadd.s32 4294967169, %v2632_v56  ;;  %v7918_v56 = vpop.eup %6655  ;;  %v2294_v51 = vshll.u32 %v2293_v40, 23  ;;  %v2452_v32 = vshrl.u32 %v8830_v39, %v7902_v21  ;;  %v2564_v11 = vsel %vm2558_vm4, %v2561_v23, %v2563_v37 }
 0x3d0   : > { %8851 = vst [vmem:[#allocation28_spill] sm:$0xff] %v7918_v56  ;;  %v8796_v35 = vxor.u32 2147483648, %v7918_v56  ;;  %v7932_v14 = vpop.eup %6657  ;;  %v2419_v59 = vsel %vm2417_vm12, %v8795_v25, %v7918_v56  ;;  %v2291_v45 = vor.u32 %v2290_v16, %v2289_v9  ;;  %v2583_v40 = vadd.s32 1, %v7886_v34 }
 0x3d1   : > { %v2638_v62 = vadd.s32 1, %v5684_v13  ;;  %v2451_v63 = vshll.u32 %v8838_v46, %v7878_v61  ;;  %v1804_v12 = vmul.f32 2.0, %v1764_v41  ;;  %vm2582_vm14 = vc.u32 %v7893_v24, %v7885_v52  ;;  %v7964_v37 = vpop.eup %6659 }
 0x3d2   : > { %v7895_v5 = vpop.permute.xlu1 %1749  ;;  %v2416_v53 = vsel %vm2414_vm11, %v7906_v43, %v8796_v35  ;;  %v7957_v25 = vshrl.u32 %v7864_v36, 5  ;;  %v2295_v9 = vor.u32 4788187, %v2294_v51  ;;  %v2303_v23 = vsel %vm2218_vm7, %v2302_v26, %v7784_v50 }
 0x3d3   : > { %v2420_v31 = vsel %vm2413_vm9, %v2416_v53, %v2419_v59  ;;  %v7966_v29 = vor.u32 %v2449_v57, %v2448_v8  ;;  %v2453_v41 = vor.u32 %v2452_v32, %v2451_v63  ;;  %vm2639_vm15 = vcmp.gt.s32.totalorder %v2638_v62, 0 }
 0x3d4   : > { %v2421_v19 = vsel %vm2411_vm8, nan, %v2420_v31  ;;  %v2580_v16 = vmul.u32 %v7875_v30, %v2564_v11  ;;  %v2296_v36 = vand.u32 2147483647, %v2295_v9  ;;  %v2298_v59 = vcvt.s32.f32 %v2291_v45 }
 0x3d5   : > { %2747 = vrot.lane.b32.xlu0 %v2421_v19, %s6901_s22  ;;  %v2584_v53 = vsel %vm2582_vm14, %v2583_v40, %v7886_v34  ;;  %v5649_v51 = vclamps-f32 %v1804_v12, 40.0  ;;  %v7975_v50 = vsel %vm7914_vm10, 0, %v2303_v23  ;;  %vm2457_vm2 = vcmp.lt.s32.totalorder %v7957_v25, 4 }
 0x3d6   : > { %v7954_v13 = vpop.permute.xlu1 %1753  ;;  %v2299_v8 = vmul.f32 %v2298_v59, %v2296_v36  ;;  %v2585_v26 = vadd.s32 %v2584_v53, %v2580_v16  ;;  %v2463_v30 = vsel %vm2457_vm2, %v7966_v29, 920167782  ;;  %v2467_v57 = vsel %vm2457_vm2, %v2453_v41, 1326507024 }
 0x3d7   : > { %v2640_v34 = vsel %vm2639_vm15, %v2638_v62, 0  ;;  %v7984_v45 = vand.u32 3, %v7975_v50  ;;  %v8802_v11 = vand.u32 2147483647, %v7705_v33  ;;  %v1852_v40 = vsub.f32 0.0, %v5649_v51 }
 0x3d8   : > { %v2300_v32 = vxor.u32 2147483648, %v2299_v8  ;;  %v2586_v12 = vadd.s32 536870912, %v2585_v26  ;;  %v1891_v63 = vadd.f32 %v7964_v37, %v7932_v14  ;;  %v2440_v9 = vshrl.u32 %v8843_v0, %v7902_v21 }
 0x3d9   : > { %v7993_v23 = vand.u32 31, %v2640_v34  ;;  %v2439_v16 = vshll.u32 %v8833_v27, %v7878_v61  ;;  %v8006_v59 = vadd.s32 %v7885_v52, %v7893_v24  ;;  %v2442_v53 = vshll.u32 %v8843_v0, %v7878_v61 }
 0x3da   : > { %v2301_v62 = vsel %vm2218_vm7, %v2300_v32, %v2299_v8  ;;  %v7997_v41 = vshrl.u32 %v2586_v12, 30  ;;  %v2443_v35 = vshrl.u32 %v8834_v44, %v7902_v21  ;;  %v8012_v8 = vpop.permute.xlu0 %1751  ;;  %v2429_v12 = vand.u32 8388607, %v8802_v11 }
 0x3db   : > { %v2304_v36 = vsel %vm7914_vm10, %v7485_v38, %v2301_v62  ;;  %v2441_v47 = vor.u32 %v2440_v9, %v2439_v16  ;;  %v2445_v52 = vshll.u32 %v8834_v44, %v7878_v61  ;;  %v2446_v24 = vshrl.u32 %v8831_v60, %v7902_v21 }
 0x3dc   : > { %6661 = vcosq.f32 %v2304_v36  ;;  %v2588_v32 = vshll.u32 %v7997_v41, 30  ;;  %v2444_v62 = vor.u32 %v2443_v35, %v2442_v53  ;;  %v8022_v31 = vsub.s32 32, %v7993_v23 }
 0x3dd   : > { %6663 = vsinq.f32 %v2304_v36  ;;  %v8024_v19 = vmul.f32 1.442695, %v5649_v51  ;;  %v1861_v28 = vmul.f32 1.442695, %v1852_v40  ;;  %v8028_v56 = vshrl.u32 %v2640_v34, 5 }
 0x3de   : > { %v8026_v43 = vsub.s32 %v2585_v26, %v2588_v32  ;;  %v1899_v11 = vmul.f32 0.5, %v1891_v63  ;;  %v2438_v35 = vshrl.u32 %v8833_v27, %v7902_v21  ;;  %v2447_v9 = vor.u32 %v2446_v24, %v2445_v52 }
 0x3df   : > { %vm2314_vm3 = vcmp.eq.s32.totalorder %v7984_v45, 2  ;;  %v2430_v36 = vor.u32 8388608, %v2429_v12  ;;  %vm2454_vm4 = vcmp.lt.s32.totalorder %v7957_v25, 1  ;;  %vm2456_vm6 = vcmp.lt.s32.totalorder %v7957_v25, 3 }
 0x3e0   : > { %v2591_v61 = vsub.s32 0, %v8026_v43  ;;  %vm2311_vm7 = vcmp.eq.s32.totalorder %v7984_v45, 0  ;;  %v2459_v26 = vsel %vm2457_vm2, %v2447_v9, 2102212464  ;;  %v2462_v21 = vsel %vm2454_vm4, %v2441_v47, %v2444_v62 }
 0x3e1   : > { %v2464_v34 = vsel %vm2456_vm6, %v2447_v9, %v2463_v30  ;;  %v2655_v40 = vshrl.u32 %v8838_v46, %v8022_v31  ;;  %6665 = vpow2.f32 %v1861_v28  ;;  %vm2310_vm9 = vcmp.lt.s32.totalorder %v7984_v45, 2 }
 0x3e2   : > { %v5681_v63 = vmin.u32 %v2591_v61, %v8026_v43  ;;  %vm2455_vm11 = vcmp.lt.s32.totalorder %v7957_v25, 2  ;;  %vm2308_vm12 = vweird.f32 %v7485_v38  ;;  %v2460_v53 = vsel %vm2456_vm6, %v2444_v62, %v2459_v26 }
 0x3e3   : > { %v2466_v30 = vsel %vm2454_vm4, %v2444_v62, %v2447_v9  ;;  %v2465_v28 = vsel %vm2455_vm11, %v2462_v21, %v2464_v34  ;;  %v2468_v12 = vsel %vm2456_vm6, %v7966_v29, %v2467_v57  ;;  %v2470_v52 = vshll.u32 %v2430_v36, 8 }
 0x3e4   : > { %v2593_v32 = vclz %v5681_v63  ;;  %v2654_v24 = vshll.u32 %v8831_v60, %v7993_v23  ;;  %v2657_v62 = vshll.u32 %v8838_v46, %v7993_v23  ;;  %vm6909_vm10 = vmmov 0  }
 0x3e5   : > { %v8852_v29 = vmov 0.0   ;;  %v8082_v26 = vmul.u32.u64.low %v2470_v52, %v2465_v28  ;;  %v8083_v46 = vmul.u32.u64.high %v2470_v52, %v2465_v28, %v8082_v26  ;;  %vm2663_vm14 = vcmp.lt.s32.totalorder %v8028_v56, 4 }
 0x3e6   : > { %v8066_v61 = vpop.eup %6661  ;;  %v5682_v9 = vadd.s32 4294967294, %v2593_v32  ;;  %6233 = vmatprep.mubr.msk.bf16.mxu1 %vm6909_vm10, %v8852_v29  ;;  %6245 = vmatprep.mubr.msk.bf16.mxu0 %vm6909_vm10, %v8852_v29  ;;  %v2656_v21 = vor.u32 %v2655_v40, %v2654_v24  ;;  %v8853_v25 = vsub.f32 %v7932_v14, %v7964_v37  ;;  %v8803_v14 = vand.u32 2147483647, %v7843_v20 }
 0x3e7   : > { %v2740_v16 = vpop.permute.xlu0 %2739  ;;  %v8804_v57 = vxor.u32 2147483648, %v8066_v61  ;;  %vm2660_vm6 = vcmp.lt.s32.totalorder %v8028_v56, 1 }
 0x3e8   : > { %v2763_v51 = vadd.f32 %v2740_v16, %v1899_v11  ;;  %v2458_v11 = vsel %vm2454_vm4, %v2438_v35, %v2441_v47  ;;  %v2658_v47 = vshrl.u32 %v8830_v39, %v8022_v31  ;;  %v2469_v35 = vsel %vm2455_vm11, %v2466_v30, %v2468_v12  ;;  %v8077_v39 = vpop.eup %6663 }
 0x3e9   : > { %v2461_v36 = vsel %vm2455_vm11, %v2458_v11, %v2460_v53  ;;  %v2312_v34 = vxor.u32 2147483648, %v8077_v39  ;;  %vm5683_vm15 = vcmp.lt.s32.totalorder %v5682_v9, 0  ;;  %v2316_v30 = vsel %vm2314_vm3, %v8804_v57, %v8077_v39 }
 0x3ea   : > { %6667 = vrcp.f32 %v2763_v51  ;;  %v8070_v16 = vmul.u32.u64.low %v2470_v52, %v2469_v35  ;;  %v8071_v51 = vmul.u32.u64.high %v2470_v52, %v2469_v35, %v8070_v16  ;;  %v2659_v63 = vor.u32 %v2658_v47, %v2657_v62 }
 0x3eb   : > { %v2596_v32 = vsel %vm5683_vm15, 0, %v5682_v9  ;;  %v1883_v11 = vmul.f32 0.5, %v8853_v25  ;;  %v2313_v40 = vsel %vm2311_vm7, %v8066_v61, %v2312_v34  ;;  %v2477_v12 = vmul.u32 %v2470_v52, %v2461_v36  ;;  %v8107_v37 = vpop.eup %6665 }
 0x3ec   : > { %v2597_v53 = vsub.s32 32, %v2596_v32  ;;  %v2601_v28 = vsub.s32 4294967266, %v2596_v32  ;;  %v2317_v24 = vsel %vm2310_vm9, %v2313_v40, %v2316_v30  ;;  %vm2479_vm2 = vc.u32 %v8071_v51, %v8082_v26 }
 0x3ed   : > { %v2480_v47 = vadd.s32 1, %v8083_v46  ;;  %v2318_v35 = vsel %vm2308_vm12, nan, %v2317_v24  ;;  %v2598_v62 = vshll.u32 %v8026_v43, %v2596_v32  ;;  %v2669_v45 = vsel %vm2663_vm14, %v2656_v21, 920167782 }
 0x3ee   : > { %v2599_v9 = vshrl.u32 %v8006_v59, %v2597_v53  ;;  %v2602_v52 = vadd.s32 127, %v2601_v28  ;;  %2745 = vrot.lane.b32.xlu1 %v2318_v35, %s6901_s22  ;;  %vm3683_vm3 = vcmask 64512   ;;  %v2646_v30 = vshrl.u32 %v8843_v0, %v8022_v31 }
 0x3ef   : > { %v2481_v36 = vsel %vm2479_vm2, %v2480_v47, %v8083_v46  ;;  %v2635_v59 = vand.u32 8388607, %v8803_v14  ;;  %v2645_v53 = vshll.u32 %v8833_v27, %v7993_v23  ;;  %v2648_v28 = vshll.u32 %v8843_v0, %v7993_v23 }
 0x3f0   : > { %v2600_v25 = vor.u32 %v2599_v9, %v2598_v62  ;;  %v2603_v40 = vshll.u32 %v2602_v52, 23  ;;  %v2482_v32 = vadd.s32 %v2481_v36, %v2477_v12  ;;  %v2649_v46 = vshrl.u32 %v8834_v44, %v8022_v31 }
 0x3f1   : > { %v2673_v24 = vsel %vm2663_vm14, %v2659_v63, 1326507024  ;;  %v2651_v9 = vshll.u32 %v8834_v44, %v7993_v23  ;;  %v2652_v52 = vshrl.u32 %v8831_v60, %v8022_v31  ;;  %6669 = vpow2.f32 %v8024_v19 }
 0x3f2   : > { %v2604_v47 = vor.u32 4788187, %v2603_v40  ;;  %v2483_v62 = vadd.s32 536870912, %v2482_v32  ;;  %v2650_v12 = vor.u32 %v2649_v46, %v2648_v28  ;;  %v2607_v14 = vcvt.s32.f32 %v2600_v25 }
 0x3f3   : > { %v2636_v63 = vor.u32 8388608, %v2635_v59  ;;  %vm2662_vm4 = vcmp.lt.s32.totalorder %v8028_v56, 3  ;;  %vm2527_vm7 = vcmp.lt.s32.totalorder %v7543_v6, 0  ;;  %v8854_v25 = vand.u32 2147483647, %v7543_v6 }
 0x3f4   : > { %v8113_v16 = vpop.eup %6667  ;;  %v2605_v36 = vand.u32 2147483647, %v2604_v47  ;;  %v8139_v57 = vshrl.u32 %v2483_v62, 30  ;;  %v2674_v60 = vsel %vm2662_vm4, %v2656_v21, %v2673_v24  ;;  %vm2661_vm11 = vcmp.lt.s32.totalorder %v8028_v56, 2 }
 0x3f5   : > { %v2787_v43 = vmul.f32 %v8113_v16, %v1883_v11  ;;  %v2647_v11 = vor.u32 %v2646_v30, %v2645_v53  ;;  %v2653_v30 = vor.u32 %v2652_v52, %v2651_v9  ;;  %vm8158_vm9 = vcmp.le.f32.partialorder %v8854_v25, 0.7853982 }
 0x3f6   : > { %v2608_v40 = vmul.f32 %v2607_v14, %v2605_v36  ;;  %v2485_v44 = vshll.u32 %v8139_v57, 30  ;;  %v2611_v21 = vsub.s32 4, %v7997_v41  ;;  %v2676_v46 = vshll.u32 %v2636_v63, 8 }
 0x3f7   : > { %v3667_v35 = vpack.c.bf16 %v2787_v43, %v2787_v43  ;;  %v2668_v19 = vsel %vm2660_vm6, %v2647_v11, %v2650_v12  ;;  %v2670_v23 = vsel %vm2662_vm4, %v2653_v30, %v2669_v45  ;;  %v2672_v14 = vsel %vm2660_vm6, %v2650_v12, %v2653_v30 }
 0x3f8   : > { %v2609_v59 = vxor.u32 2147483648, %v2608_v40  ;;  %v2486_v53 = vsub.s32 %v2482_v32, %v2485_v44  ;;  %v2665_v28 = vsel %vm2663_vm14, %v2653_v30, 2102212464  ;;  %v2675_v45 = vsel %vm2661_vm11, %v2672_v14, %v2674_v60 }
 0x3f9   : > { %v8137_v0 = vsel %vm3683_vm3, %v3667_v35, 0  ;;  %v2644_v35 = vshrl.u32 %v8833_v27, %v8022_v31  ;;  %v2671_v32 = vsel %vm2661_vm11, %v2668_v19, %v2670_v23  ;;  %v2666_v27 = vsel %vm2662_vm4, %v2650_v12, %v2665_v28 }
 0x3fa   : > { %6232 = vmatpush3.bf16.xpose.msra.mxu1 %v8137_v0  ;;  %v2610_v24 = vsel %vm2527_vm7, %v2609_v59, %v2608_v40  ;;  %v2488_v47 = vsub.s32 0, %v2486_v53  ;;  %v8177_v9 = vmul.u32.u64.low %v2676_v46, %v2675_v45  ;;  %v8178_v52 = vmul.u32.u64.high %v2676_v46, %v2675_v45, %v8177_v9 }
 0x3fb   : > { %6237 = vmatprep.subr.bf16.mxu1 %v8852_v29  ;;  %v2613_v62 = vsel %vm8158_vm9, %v7543_v6, %v2610_v24  ;;  %v2664_v63 = vsel %vm2660_vm6, %v2644_v35, %v2647_v11  ;;  %v2612_v31 = vsel %vm2527_vm7, %v2611_v21, %v7997_v41  ;;  %v6670_v60 = vpop.eup %6669  ;;  %v2478_v43 = vadd.s32 %v8082_v26, %v8071_v51 }
 0x3fc   : > { %6671 = vcosq.f32 %v2613_v62  ;;  %v5677_v36 = vmin.u32 %v2488_v47, %v2486_v53  ;;  %v8189_v30 = vmul.u32.u64.low %v2676_v46, %v2671_v32  ;;  %v8190_v40 = vmul.u32.u64.high %v2676_v46, %v2671_v32, %v8189_v30 }
 0x3fd   : > { %6673 = vsinq.f32 %v2613_v62  ;;  %v2667_v11 = vsel %vm2661_vm11, %v2664_v63, %v2666_v27  ;;  %v8199_v12 = vsel %vm8158_vm9, 0, %v2612_v31  ;;  %v1892_v41 = vadd.f32 %v6670_v60, %v8107_v37 }
 0x3fe   : > { %v2490_v44 = vclz %v5677_v36  ;;  %vm2685_vm14 = vc.u32 %v8178_v52, %v8189_v30  ;;  %v2686_v23 = vadd.s32 1, %v8190_v40  ;;  %v2683_v14 = vmul.u32 %v2676_v46, %v2667_v11 }
 0x3ff   : > { %v2618_v25 = vand.u32 3, %v8199_v12  ;;  %v1900_v24 = vmul.f32 0.5, %v1892_v41  ;;  %vm2617_vm7 = vweird.f32 %v7543_v6  ;;  %vm2424_vm9 = vcmp.lt.s32.totalorder %v7705_v33, 0 }
 0x400   : > { %v5678_v19 = vadd.s32 4294967294, %v2490_v44  ;;  %v2687_v56 = vsel %vm2685_vm14, %v2686_v23, %v8190_v40  ;;  %v8860_v6 = vsub.f32 %v7278_v17, %v7529_v2 }
 0x401   : > { %6234 = vmatmul.mubr.msk.bf16.vlgmr.msra.gmra.mrb[100].mxu1 %vm3683_vm3, %v7228_v4  ;;  %v2688_v45 = vadd.s32 %v2687_v56, %v2683_v14  ;;  %vm2623_vm2 = vcmp.eq.s32.totalorder %v2618_v25, 2  ;;  %vm2620_vm4 = vcmp.eq.s32.totalorder %v2618_v25, 0  ;;  %vm2619_vm6 = vcmp.lt.s32.totalorder %v2618_v25, 2 }
 0x402   : > { %6239 = vmatprep.mubr.msk.bf16.mxu1 %vm6909_vm10, %v8852_v29  ;;  %vm5679_vm15 = vcmp.lt.s32.totalorder %v5678_v19, 0  ;;  %v1876_v25 = vsub.f32 %v6670_v60, %v8107_v37  ;;  %v3200_v60 = vadd.s32 3, %v7975_v50 }
 0x403   : > { %v2493_v59 = vsel %vm5679_vm15, 0, %v5678_v19  ;;  %v2689_v36 = vadd.s32 536870912, %v2688_v45 }
 0x404   : > { %v2494_v21 = vsub.s32 32, %v2493_v59  ;;  %v2498_v28 = vsub.s32 4294967266, %v2493_v59  ;;  %v2495_v35 = vshll.u32 %v2486_v53, %v2493_v59 }
 0x405   : > { %v8215_v40 = vshrl.u32 %v2689_v36, 30  ;;  %v1884_v36 = vmul.f32 0.5, %v1876_v25 }
 0x406   : > { %v8209_v47 = vpop.eup %6671  ;;  %v2496_v32 = vshrl.u32 %v2478_v43, %v2494_v21  ;;  %v2499_v62 = vadd.s32 127, %v2498_v28  ;;  %v2508_v28 = vsub.s32 4, %v8139_v57 }
 0x407   : > { %v2742_v9 = vpop.permute.xlu1 %2741  ;;  %v8211_v46 = vpop.eup %6673  ;;  %v2624_v63 = vxor.u32 2147483648, %v8209_v47  ;;  %v2691_v19 = vshll.u32 %v8215_v40, 30 }
 0x408   : > { %v2764_v27 = vadd.f32 %v2742_v9, %v1900_v24  ;;  %v2621_v31 = vxor.u32 2147483648, %v8211_v46  ;;  %v2497_v51 = vor.u32 %v2496_v32, %v2495_v35  ;;  %v2500_v26 = vshll.u32 %v2499_v62, 23 }
 0x409   : > { %v2625_v53 = vsel %vm2623_vm2, %v2624_v63, %v8211_v46  ;;  %v2692_v56 = vsub.s32 %v2688_v45, %v2691_v19  ;;  %v8857_v32 = vsub.f32 %v7276_v15, %v7507_v58  ;;  %v8858_v45 = vand.u32 2147483647, %v7705_v33 }
 0x40a   : > { %6675 = vrcp.f32 %v2764_v27  ;;  %v2622_v44 = vsel %vm2620_vm4, %v8209_v47, %v2621_v31  ;;  %v2501_v11 = vor.u32 4788187, %v2500_v26  ;;  %v2504_v59 = vcvt.s32.f32 %v2497_v51 }
 0x40b   : > { %v2626_v41 = vsel %vm2619_vm6, %v2622_v44, %v2625_v53  ;;  %v2694_v21 = vsub.s32 0, %v2692_v56  ;;  %v1805_v62 = vmul.f32 2.0, %v8857_v32  ;;  %vm2423_vm11 = vcmp.le.f32.partialorder %v8858_v45, 0.7853982 }
 0x40c   : > { %v2627_v23 = vsel %vm2617_vm7, nan, %v2626_v41  ;;  %v2502_v14 = vand.u32 2147483647, %v2501_v11  ;;  %v2509_v51 = vsel %vm2424_vm9, %v2508_v28, %v8139_v57  ;;  %v3201_v11 = vand.u32 3, %v3200_v60 }
 0x40d   : > { %2751 = vrot.lane.b32.xlu0 %v2627_v23, %s6901_s22  ;;  %v5685_v35 = vmin.u32 %v2694_v21, %v2692_v56  ;;  %v5650_v53 = vclamps-f32 %v1805_v62, 40.0  ;;  %v3512_v41 = vadd.s32 3, %v8199_v12  ;;  %v2684_v57 = vadd.s32 %v8189_v30, %v8178_v52 }
 0x40e   : > { %v2505_v43 = vmul.f32 %v2504_v59, %v2502_v14  ;;  %vm3203_vm15 = vcmp.eq.s32.totalorder %v3201_v11, 0  ;;  %vm3206_vm2 = vcmp.eq.s32.totalorder %v3201_v11, 2  ;;  %vm3202_vm4 = vcmp.lt.s32.totalorder %v3201_v11, 2 }
 0x40f   : > { %v2696_v37 = vclz %v5685_v35  ;;  %v1853_v59 = vsub.f32 0.0, %v5650_v53  ;;  %v3205_v12 = vsel %vm3203_vm15, %v8066_v61, %v2312_v34  ;;  %v3513_v35 = vand.u32 3, %v3512_v41 }
 0x410   : > { %v2506_v24 = vxor.u32 2147483648, %v2505_v43  ;;  %v8859_v32 = vxor.u32 2147483648, %v8066_v61  ;;  %vm2514_vm15 = vweird.f32 %v7705_v33 }
 0x411   : > { %3635 = vrot.lane.b32.xlu0 %v8113_v16, %s6900_s20  ;;  %v5686_v26 = vadd.s32 4294967294, %v2696_v37  ;;  %v2511_v16 = vsel %vm2423_vm11, 0, %v2509_v51 }
 0x412   : > { %v2507_v9 = vsel %vm2424_vm9, %v2506_v24, %v2505_v43  ;;  %v2515_v43 = vand.u32 3, %v2511_v16  ;;  %v1839_v24 = vmul.f32 1.442695, %v5650_v53  ;;  %v3208_v62 = vsel %vm3206_vm2, %v8859_v32, %v8077_v39 }
 0x413   : > { %v2510_v15 = vsel %vm2423_vm11, %v7705_v33, %v2507_v9  ;;  %vm5687_vm14 = vcmp.lt.s32.totalorder %v5686_v26, 0  ;;  %v3209_v45 = vsel %vm3202_vm4, %v3205_v12, %v3208_v62  ;;  %vm3515_vm9 = vcmp.eq.s32.totalorder %v3513_v35, 0 }
 0x414   : > { %v8239_v27 = vpop.eup %6675  ;;  %6677 = vcosq.f32 %v2510_v15  ;;  %v2699_v19 = vsel %vm5687_vm14, 0, %v5686_v26  ;;  %vm2520_vm6 = vcmp.eq.s32.totalorder %v2515_v43, 2  ;;  %v8260_v37 = vsel %vm2308_vm12, nan, %v3209_v45 }
 0x415   : > { %v2788_v58 = vmul.f32 %v8239_v27, %v1884_v36  ;;  %6679 = vsinq.f32 %v2510_v15  ;;  %v2700_v23 = vsub.s32 32, %v2699_v19  ;;  %v2704_v14 = vsub.s32 4294967266, %v2699_v19 }
 0x416   : > { %v2701_v25 = vshll.u32 %v2692_v56, %v2699_v19  ;;  %v1863_v56 = vmul.f32 1.442695, %v1853_v59  ;;  %v3517_v34 = vsel %vm3515_vm9, %v8209_v47, %v2621_v31  ;;  %vm3518_vm11 = vcmp.eq.s32.totalorder %v3513_v35, 2 }
 0x417   : > { %v3668_v44 = vpack.c.bf16 %v2788_v58, %v2788_v58  ;;  %v2702_v21 = vshrl.u32 %v2684_v57, %v2700_v23  ;;  %v2705_v28 = vadd.s32 127, %v2704_v14  ;;  %vm3514_vm14 = vcmp.lt.s32.totalorder %v3513_v35, 2 }
 0x418   : > { %v3520_v61 = vsel %vm3518_vm11, %v2624_v63, %v8211_v46  ;;  %v3408_v39 = vadd.s32 3, %v2511_v16  ;;  %vm2517_vm12 = vcmp.eq.s32.totalorder %v2515_v43, 0  ;;  %vm2516_vm2 = vcmp.lt.s32.totalorder %v2515_v43, 2 }
 0x419   : > { %v8246_v50 = vsel %vm3683_vm3, %v3668_v44, 0  ;;  %v2703_v52 = vor.u32 %v2702_v21, %v2701_v25  ;;  %v2706_v30 = vshll.u32 %v2705_v28, 23  ;;  %v3521_v38 = vsel %vm3514_vm14, %v3517_v34, %v3520_v61 }
 0x41a   : > { %6238 = vmatpush3.bf16.xpose.msra.mxu1 %v8246_v50  ;;  %v8275_v31 = vsel %vm2617_vm7, nan, %v3521_v38  ;;  %v3409_v47 = vand.u32 3, %v3408_v39  ;;  %6681 = vpow2.f32 %v1863_v56  ;;  %v1807_v57 = vmul.f32 2.0, %v8860_v6 }
 0x41b   : > { %6249 = vmatprep.subr.bf16.mxu1 %v8852_v29  ;;  %v2707_v36 = vor.u32 4788187, %v2706_v30  ;;  %v2710_v26 = vcvt.s32.f32 %v2703_v52  ;;  %vm2630_vm7 = vcmp.lt.s32.totalorder %v7843_v20, 0  ;;  %v8861_v14 = vand.u32 2147483647, %v7843_v20 }
 0x41c   : > { %vm3410_vm4 = vcmp.lt.s32.totalorder %v3409_v47, 2  ;;  %vm3411_vm9 = vcmp.eq.s32.totalorder %v3409_v47, 0  ;;  %vm3414_vm11 = vcmp.eq.s32.totalorder %v3409_v47, 2  ;;  %v2714_v43 = vsub.s32 4, %v8215_v40 }
 0x41d   : > { %v2708_v58 = vand.u32 2147483647, %v2707_v36  ;;  %6683 = vpow2.f32 %v1839_v24  ;;  %v5652_v17 = vclamps-f32 %v1807_v57, 40.0 }
 0x41e   : > { %v6678_v9 = vpop.eup %6677  ;;  %v2715_v2 = vsel %vm2630_vm7, %v2714_v43, %v8215_v40 }
 0x41f   : > { %v6680_v60 = vpop.eup %6679  ;;  %v2521_v51 = vxor.u32 2147483648, %v6678_v9  ;;  %v2711_v63 = vmul.f32 %v2710_v26, %v2708_v58  ;;  %v1855_v28 = vsub.f32 0.0, %v5652_v17 }
 0x420   : > { %v2518_v15 = vxor.u32 2147483648, %v6680_v60 }
 0x421   : > { %6240 = vmatmul.mubr.msk.bf16.vlgmr.msra.gmra.mrb[104].mxu1 %vm3683_vm3, %v7226_v1  ;;  %v2522_v53 = vsel %vm2520_vm6, %v2521_v51, %v6680_v60  ;;  %v2712_v11 = vxor.u32 2147483648, %v2711_v63  ;;  %v3416_v41 = vsel %vm3414_vm11, %v2521_v51, %v6680_v60  ;;  %vm2629_vm6 = vcmp.le.f32.partialorder %v8861_v14, 0.7853982 }
 0x422   : > { %6251 = vmatprep.mubr.msk.bf16.mxu1 %vm6909_vm10, %v8852_v29  ;;  %v2519_v46 = vsel %vm2517_vm12, %v6678_v9, %v2518_v15  ;;  %v3413_v19 = vsel %vm3411_vm9, %v6678_v9, %v2518_v15  ;;  %v2717_v12 = vsel %vm2629_vm6, 0, %v2715_v2  ;;  %v1867_v32 = vmul.f32 1.442695, %v1855_v28 }
 0x423   : > { %v2523_v16 = vsel %vm2516_vm2, %v2519_v46, %v2522_v53  ;;  %v3417_v23 = vsel %vm3410_vm4, %v3413_v19, %v3416_v41  ;;  %v2713_v59 = vsel %vm2630_vm7, %v2712_v11, %v2711_v63  ;;  %v2721_v52 = vand.u32 3, %v2717_v12 }
 0x424   : > { %v2524_v44 = vsel %vm2514_vm15, nan, %v2523_v16  ;;  %v8290_v25 = vsel %vm2514_vm15, nan, %v3417_v23  ;;  %v2716_v21 = vsel %vm2629_vm6, %v7843_v20, %v2713_v59  ;;  %v6682_v35 = vpop.eup %6681  ;;  %v3616_v62 = vadd.s32 3, %v2717_v12 }
 0x425   : > { %2749 = vrot.lane.b32.xlu1 %v2524_v44, %s6901_s22  ;;  %6685 = vcosq.f32 %v2716_v21  ;;  %v1843_v9 = vmul.f32 1.442695, %v5652_v17  ;;  %vm2726_vm14 = vcmp.eq.s32.totalorder %v2721_v52, 2  ;;  %vm2723_vm12 = vcmp.eq.s32.totalorder %v2721_v52, 0 }
 0x426   : > { %6687 = vsinq.f32 %v2716_v21  ;;  %v3617_v60 = vand.u32 3, %v3616_v62  ;;  %vm2722_vm15 = vcmp.lt.s32.totalorder %v2721_v52, 2  ;;  %vm2720_vm2 = vweird.f32 %v7843_v20 }
 0x427   : > { %v6684_v30 = vpop.eup %6683  ;;  %6689 = vpow2.f32 %v1867_v32  ;;  %v8862_v20 = vsub.f32 %v7282_v48, %v7871_v3 }
 0x428   : > { %v1893_v45 = vadd.f32 %v6684_v30, %v6682_v35  ;;  %6691 = vpow2.f32 %v1843_v9  ;;  %vm3619_vm4 = vcmp.eq.s32.totalorder %v3617_v60, 0  ;;  %vm3622_vm9 = vcmp.eq.s32.totalorder %v3617_v60, 2 }
 0x429   : > { %vm3618_vm11 = vcmp.lt.s32.totalorder %v3617_v60, 2  ;;  %v1806_v63 = vmul.f32 2.0, %v8862_v20  ;;  %v1877_v16 = vsub.f32 %v6684_v30, %v6682_v35  ;;  %v1769_v30 = vsub.f32 %v7284_v49, %v8012_v8 }
 0x42a   : > { %v1901_v51 = vmul.f32 0.5, %v1893_v45  ;;  %v2888_v20 = vadd.s32 3, %v7417_v55 }
 0x42b   : > { %v5651_v19 = vclamps-f32 %v1806_v63, 40.0  ;;  %v1885_v41 = vmul.f32 0.5, %v1877_v16  ;;  %v1809_v45 = vmul.f32 2.0, %v1769_v30 }
 0x42d   : > { %v1854_v14 = vsub.f32 0.0, %v5651_v19  ;;  %v1841_v3 = vmul.f32 1.442695, %v5651_v19  ;;  %v5654_v9 = vclamps-f32 %v1809_v45, 40.0 }
 0x42f   : > { %v6686_v56 = vpop.eup %6685  ;;  %v1865_v48 = vmul.f32 1.442695, %v1854_v14  ;;  %v1857_v49 = vsub.f32 0.0, %v5654_v9  ;;  %v1847_v60 = vmul.f32 1.442695, %v5654_v9 }
 0x430   : > { %v6688_v33 = vpop.eup %6687  ;;  %v2727_v36 = vxor.u32 2147483648, %v6686_v56 }
 0x431   : > { %v2724_v24 = vxor.u32 2147483648, %v6688_v33  ;;  %v6690_v46 = vpop.eup %6689  ;;  %v1871_v8 = vmul.f32 1.442695, %v1857_v49 }
 0x432   : > { %v2728_v34 = vsel %vm2726_vm14, %v2727_v36, %v6688_v33  ;;  %v3624_v38 = vsel %vm3622_vm9, %v2727_v36, %v6688_v33  ;;  %v6692_v44 = vpop.eup %6691 }
 0x433   : > { %v2725_v40 = vsel %vm2723_vm12, %v6686_v56, %v2724_v24  ;;  %v3621_v26 = vsel %vm3619_vm4, %v6686_v56, %v2724_v24  ;;  %v1895_v11 = vadd.f32 %v6692_v44, %v6690_v46  ;;  %v1879_v17 = vsub.f32 %v6692_v44, %v6690_v46 }
 0x434   : > { %v2729_v61 = vsel %vm2722_vm15, %v2725_v40, %v2728_v34  ;;  %v3625_v53 = vsel %vm3618_vm11, %v3621_v26, %v3624_v38  ;;  %v2889_v44 = vand.u32 3, %v2888_v20 }
 0x435   : > { %v2744_v39 = vpop.permute.xlu0 %2743  ;;  %v2730_v15 = vsel %vm2720_vm2, nan, %v2729_v61  ;;  %v8296_v47 = vsel %vm2720_vm2, nan, %v3625_v53  ;;  %v1903_v23 = vmul.f32 0.5, %v1895_v11  ;;  %v1887_v2 = vmul.f32 0.5, %v1879_v17 }
 0x436   : > { %v2765_v58 = vadd.f32 %v2744_v39, %v1901_v51  ;;  %2753 = vrot.lane.b32.xlu1 %v2730_v15, %s6901_s22  ;;  %vm2891_vm7 = vcmp.eq.s32.totalorder %v2889_v44, 0  ;;  %vm2894_vm6 = vcmp.eq.s32.totalorder %v2889_v44, 2  ;;  %vm2890_vm14 = vcmp.lt.s32.totalorder %v2889_v44, 2 }
 0x437   : > { %v8868_v17 = vsub.f32 %v7351_v54, %v7954_v13 }
 0x438   : > { %6693 = vrcp.f32 %v2765_v58  ;;  %v8863_v58 = vsub.f32 %v7307_v42, %v7895_v5 }
 0x43a   : > { %3637 = vrot.lane.b32.xlu1 %v8239_v27, %s6900_s20  ;;  %v1808_v26 = vmul.f32 2.0, %v8863_v58 }
 0x43c   : > { %v5653_v46 = vclamps-f32 %v1808_v26, 40.0 }
 0x43e   : > { %v1856_v16 = vsub.f32 0.0, %v5653_v46  ;;  %v1845_v14 = vmul.f32 1.442695, %v5653_v46 }
 0x440   : > { %v1869_v5 = vmul.f32 1.442695, %v1856_v16  ;;  %v8872_v16 = vld [vmem:[#allocation23_spill] sm:$0xff] }
 0x441   : > { %v3096_v44 = vadd.s32 3, %v8872_v16  ;;  %v8885_v16 = vld [vmem:[#allocation28_spill] sm:$0xff] }
 0x442   : > { %v6694_v6 = vpop.eup %6693 }
 0x443   : > { %3639 = vrot.lane.b32.xlu0 %v6694_v6, %s6900_s20  ;;  %v2789_v57 = vmul.f32 %v6694_v6, %v1885_v41  ;;  %v8864_v41 = vxor.u32 2147483648, %v7425_v22  ;;  %v8865_v6 = vld [vmem:[#allocation19_spill] sm:$0xff] }
 0x445   : > { %v3669_v43 = vpack.c.bf16 %v2789_v57, %v2789_v57  ;;  %v2893_v55 = vsel %vm2891_vm7, %v8865_v6, %v8864_v41  ;;  %v8866_v57 = vxor.u32 2147483648, %v8865_v6  ;;  %v3097_v41 = vand.u32 3, %v3096_v44  ;;  %v8873_v6 = vld [vmem:[#allocation22_spill] sm:$0xff] }
 0x446   : > { %v8886_v44 = vxor.u32 2147483648, %v8885_v16 }
 0x447   : > { %v2748_v59 = vpop.permute.xlu0 %2747  ;;  %v8305_v27 = vsel %vm3683_vm3, %v3669_v43, 0  ;;  %vm3099_vm15 = vcmp.eq.s32.totalorder %v3097_v41, 0  ;;  %vm3102_vm2 = vcmp.eq.s32.totalorder %v3097_v41, 2  ;;  %vm3098_vm9 = vcmp.lt.s32.totalorder %v3097_v41, 2 }
 0x448   : > { %v2767_v21 = vadd.f32 %v2748_v59, %v1903_v23  ;;  %6244 = vmatpush3.bf16.xpose.msra.mxu0 %v8305_v27  ;;  %v2896_v23 = vsel %vm2894_vm6, %v8866_v57, %v7425_v22  ;;  %v8875_v57 = vld [vmem:[#allocation21_spill] sm:$0xff] }
 0x449   : > { %6255 = vmatprep.subr.bf16.mxu0 %v8852_v29  ;;  %v2897_v59 = vsel %vm2890_vm14, %v2893_v55, %v2896_v23  ;;  %v8874_v55 = vxor.u32 2147483648, %v8873_v6 }
 0x44a   : > { %6695 = vrcp.f32 %v2767_v21 }
 0x44b   : > { %6697 = vpow2.f32 %v1865_v48  ;;  %v8879_v48 = vld [vmem:[#allocation24_spill] sm:$0xff] }
 0x44c   : > { %6699 = vpow2.f32 %v1841_v3  ;;  %v2898_v3 = vsel %vm1999_vm5, nan, %v2897_v59 }
 0x44f   : > { %6246 = vmatmul.mubr.msk.bf16.vlgmr.msra.gmra.mrb[76].mxu0 %vm3683_vm3, %v7235_v10 }
 0x450   : > { %6257 = vmatprep.mubr.msk.bf16.mxu0 %vm6909_vm10, %v8852_v29 }
 0x454   : > { %v6696_v28 = vpop.eup %6695 }
 0x455   : > { %3643 = vrot.lane.b32.xlu0 %v6696_v28, %s6900_s20  ;;  %v2791_v12 = vmul.f32 %v6696_v28, %v1887_v2  ;;  %v6698_v52 = vpop.eup %6697  ;;  %v1810_v2 = vmul.f32 2.0, %v8868_v17  ;;  %v8880_v17 = vxor.u32 2147483648, %v8879_v48 }
 0x456   : > { %v6700_v62 = vpop.eup %6699 }
 0x457   : > { %v3671_v35 = vpack.c.bf16 %v2791_v12, %v2791_v12  ;;  %v1894_v56 = vadd.f32 %v6700_v62, %v6698_v52  ;;  %v1878_v34 = vsub.f32 %v6700_v62, %v6698_v52  ;;  %v5655_v52 = vclamps-f32 %v1810_v2, 40.0 }
 0x459   : > { %v8317_v32 = vsel %vm3683_vm3, %v3671_v35, 0  ;;  %v1902_v33 = vmul.f32 0.5, %v1894_v56  ;;  %v1886_v40 = vmul.f32 0.5, %v1878_v34  ;;  %v8869_v34 = vld [vmem:[#allocation14_spill] sm:$0xff] }
 0x45a   : > { %6256 = vmatpush3.bf16.xpose.msra.mxu0 %v8317_v32 }
 0x45b   : > { %6267 = vmatprep.subr.bf16.mxu0 %v8852_v29 }
 0x460   : > { %v2746_v36 = vpop.permute.xlu1 %2745 }
 0x461   : > { %6258 = vmatmul.mubr.msk.bf16.vlgmr.msra.gmra.mrb[80].mxu0 %vm3683_vm3, %v7239_v18  ;;  %v2766_v24 = vadd.f32 %v2746_v36, %v1902_v33  ;;  %v1858_v33 = vsub.f32 0.0, %v5655_v52 }
 0x462   : > { %6269 = vmatprep.mubr.msk.bf16.mxu0 %vm6909_vm10, %v8852_v29 }
 0x463   : > { %6701 = vrcp.f32 %v2766_v24  ;;  %v1873_v13 = vmul.f32 1.442695, %v1858_v33  ;;  %v1849_v24 = vmul.f32 1.442695, %v5655_v52 }
 0x464   : > { %6703 = vpow2.f32 %v1871_v8 }
 0x465   : > { %6705 = vpow2.f32 %v1847_v60 }
 0x46d   : > { %v6702_v51 = vpop.eup %6701 }
 0x46e   : > { %3641 = vrot.lane.b32.xlu1 %v6702_v51, %s6900_s20  ;;  %v2790_v61 = vmul.f32 %v6702_v51, %v1886_v40  ;;  %v6704_v38 = vpop.eup %6703 }
 0x46f   : > { %v6706_v53 = vpop.eup %6705 }
 0x470   : > { %v3670_v39 = vpack.c.bf16 %v2790_v61, %v2790_v61  ;;  %v1897_v63 = vadd.f32 %v6706_v53, %v6704_v38  ;;  %v1881_v21 = vsub.f32 %v6706_v53, %v6704_v38  ;;  %v8870_v53 = vld [vmem:[#allocation20_spill] sm:$0xff] }
 0x471   : > { %v2992_v46 = vadd.s32 3, %v8870_v53 }
 0x472   : > { %v8327_v15 = vsel %vm3683_vm3, %v3670_v39, 0  ;;  %v1905_v11 = vmul.f32 0.5, %v1897_v63  ;;  %v1889_v12 = vmul.f32 0.5, %v1881_v21  ;;  %v8871_v63 = vld [vmem:[#allocation12_spill] sm:$0xff] }
 0x473   : > { %6250 = vmatpush3.bf16.xpose.msra.mxu1 %v8327_v15 }
 0x474   : > { %6261 = vmatprep.subr.bf16.mxu1 %v8852_v29 }
 0x47a   : > { %6252 = vmatmul.mubr.msk.bf16.vlgmr.msra.gmra.mrb[108].mxu1 %vm3683_vm3, %v7233_v7 }
 0x47b   : > { %6263 = vmatprep.mubr.msk.bf16.mxu1 %vm6909_vm10, %v8852_v29 }
 0x47f   : > { %v2752_v19 = vpop.permute.xlu0 %2751 }
 0x480   : > { %v2769_v42 = vadd.f32 %v2752_v19, %v1905_v11 }
 0x482   : > { %6707 = vrcp.f32 %v2769_v42  ;;  %v2993_v42 = vand.u32 3, %v2992_v46 }
 0x483   : > { %6709 = vpow2.f32 %v1869_v5  ;;  %v3636_v43 = vpop.permute.xlu0 %3635 }
 0x484   : > { %6711 = vpow2.f32 %v1845_v14  ;;  %v3659_v28 = vmul.f32 %v3636_v43, %v2898_v3  ;;  %vm2995_vm5 = vcmp.eq.s32.totalorder %v2993_v42, 0  ;;  %vm2998_vm12 = vcmp.eq.s32.totalorder %v2993_v42, 2  ;;  %v8877_v43 = vld [vmem:[#allocation26_spill] sm:$0xff] }
 0x485   : > { %6713 = vpow2.f32 %v1873_v13  ;;  %v2997_v23 = vsel %vm2995_vm5, %v8875_v57, %v8874_v55  ;;  %v8876_v14 = vxor.u32 2147483648, %v8875_v57  ;;  %vm2994_vm4 = vcmp.lt.s32.totalorder %v2993_v42, 2 }
 0x486   : > { %v3675_v30 = vpack.c.bf16 %v3659_v28, %v3659_v28  ;;  %v8878_v21 = vxor.u32 2147483648, %v8877_v43  ;;  %v3104_v2 = vsel %vm3102_vm2, %v8880_v17, %v8877_v43 }
 0x487   : > { %v3000_v59 = vsel %vm2998_vm12, %v8876_v14, %v8873_v6 }
 0x488   : > { %v3101_v3 = vsel %vm3099_vm15, %v8879_v48, %v8878_v21  ;;  %v3001_v28 = vsel %vm2994_vm4, %v2997_v23, %v3000_v59 }
 0x489   : > { %v3105_v52 = vsel %vm3098_vm9, %v3101_v3, %v3104_v2 }
 0x48a   : > { %v3106_v13 = vsel %vm2205_vm13, nan, %v3105_v52 }
 0x48c   : > { %v6708_v35 = vpop.eup %6707 }
 0x48d   : > { %3647 = vrot.lane.b32.xlu0 %v6708_v35, %s6900_s20  ;;  %v2793_v22 = vmul.f32 %v6708_v35, %v1889_v12  ;;  %v6710_v62 = vpop.eup %6709 }
 0x48e   : > { %v6712_v45 = vpop.eup %6711 }
 0x48f   : > { %v3673_v56 = vpack.c.bf16 %v2793_v22, %v2793_v22  ;;  %v1896_v54 = vadd.f32 %v6712_v45, %v6710_v62  ;;  %v1880_v60 = vsub.f32 %v6712_v45, %v6710_v62  ;;  %v6714_v40 = vpop.eup %6713 }
 0x491   : > { %v8352_v9 = vsel %vm3683_vm3, %v3673_v56, 0  ;;  %4064 = vrot.lane.b32.xlu0 %v3675_v30, %s6901_s22  ;;  %v1904_v36 = vmul.f32 0.5, %v1896_v54  ;;  %v1888_v51 = vmul.f32 0.5, %v1880_v60  ;;  %v3002_v30 = vsel %vm2102_vm1, nan, %v3001_v28 }
 0x492   : > { %6268 = vmatpush3.bf16.xpose.msra.mxu0 %v8352_v9 }
 0x493   : > { %6279 = vmatprep.subr.bf16.mxu0 %v8852_v29 }
 0x495   : > { %4061 = vrot.lane.b32.xlu0 %v7228_v4, %s6901_s22 }
 0x497   : > { %v2750_v49 = vpop.permute.xlu1 %2749 }
 0x498   : > { %v2768_v8 = vadd.f32 %v2750_v49, %v1904_v36 }
 0x499   : > { %6270 = vmatmul.mubr.msk.bf16.vlgmr.msra.gmra.mrb[84].mxu0 %vm3683_vm3, %v8869_v34  ;;  %4114 = vrot.lane.b32.xlu0 %v7226_v1, %s6901_s22 }
 0x49a   : > { %6715 = vrcp.f32 %v2768_v8  ;;  %6281 = vmatprep.mubr.msk.bf16.mxu0 %vm6909_vm10, %v8852_v29 }
 0x49b   : > { %6717 = vpow2.f32 %v1849_v24 }
 0x49d   : > { %4167 = vrot.lane.b32.xlu0 %v7235_v10, %s6901_s22 }
 0x4a1   : > { %4220 = vrot.lane.b32.xlu0 %v7233_v7, %s6901_s22 }
 0x4a4   : > { %v6716_v61 = vpop.eup %6715 }
 0x4a5   : > { %v6718_v39 = vpop.eup %6717  ;;  %3645 = vrot.lane.b32.xlu1 %v6716_v61, %s6900_s20  ;;  %4273 = vrot.lane.b32.xlu0 %v7239_v18, %s6901_s22  ;;  %v2792_v58 = vmul.f32 %v6716_v61, %v1888_v51  ;;  %v8883_v51 = vld [vmem:[#allocation13_spill] sm:$0xff] }
 0x4a6   : > { %v1898_v26 = vadd.f32 %v6718_v39, %v6714_v40  ;;  %v1882_v12 = vsub.f32 %v6718_v39, %v6714_v40 }
 0x4a7   : > { %v3672_v38 = vpack.c.bf16 %v2792_v58, %v2792_v58 }
 0x4a8   : > { %v1906_v11 = vmul.f32 0.5, %v1898_v26  ;;  %v2754_v19 = vpop.permute.xlu1 %2753  ;;  %v1890_v56 = vmul.f32 0.5, %v1882_v12 }
 0x4a9   : > { %v8374_v20 = vsel %vm3683_vm3, %v3672_v38, 0  ;;  %4326 = vrot.lane.b32.xlu0 %v8871_v63, %s6901_s22  ;;  %v8884_v38 = vld [vmem:[#allocation25_spill] sm:$0xff] }
 0x4aa   : > { %6262 = vmatpush3.bf16.xpose.msra.mxu1 %v8374_v20  ;;  %v2770_v5 = vadd.f32 %v2754_v19, %v1906_v11  ;;  %v3304_v53 = vadd.s32 3, %v8884_v38  ;;  %v8887_v11 = vld [vmem:[#allocation27_spill] sm:$0xff] }
 0x4ab   : > { %6273 = vmatprep.subr.bf16.mxu1 %v8852_v29  ;;  %v8888_v42 = vxor.u32 2147483648, %v8887_v11 }
 0x4ac   : > { %6719 = vrcp.f32 %v2770_v5  ;;  %v3638_v35 = vpop.permute.xlu1 %3637  ;;  %v3305_v46 = vand.u32 3, %v3304_v53 }
 0x4ad   : > { %4379 = vrot.lane.b32.xlu0 %v8869_v34, %s6901_s22  ;;  %v3660_v62 = vmul.f32 %v3638_v35, %v3002_v30 }
 0x4ae   : > { %vm3307_vm1 = vcmp.eq.s32.totalorder %v3305_v46, 0  ;;  %vm3310_vm13 = vcmp.eq.s32.totalorder %v3305_v46, 2  ;;  %vm3306_vm11 = vcmp.lt.s32.totalorder %v3305_v46, 2 }
 0x4af   : > { %v3676_v49 = vpack.c.bf16 %v3660_v62, %v3660_v62  ;;  %v3309_v19 = vsel %vm3307_vm1, %v8887_v11, %v8886_v44  ;;  %v3312_v5 = vsel %vm3310_vm13, %v8888_v42, %v8885_v16 }
 0x4b0   : > { %v3313_v41 = vsel %vm3306_vm11, %v3309_v19, %v3312_v5 }
 0x4b1   : > { %6264 = vmatmul.mubr.msk.bf16.vlgmr.msra.gmra.mrb[112].mxu1 %vm3683_vm3, %v8871_v63  ;;  %v3314_v14 = vsel %vm2411_vm8, nan, %v3313_v41 }
 0x4b2   : > { %6275 = vmatprep.mubr.msk.bf16.mxu1 %vm6909_vm10, %v8852_v29 }
 0x4b5   : > { %v3640_v45 = vpop.permute.xlu0 %3639 }
 0x4b6   : > { %v6720_v33 = vpop.eup %6719  ;;  %v3661_v24 = vmul.f32 %v3640_v45, %v3106_v13 }
 0x4b7   : > { %3649 = vrot.lane.b32.xlu1 %v6720_v33, %s6900_s20  ;;  %v2794_v36 = vmul.f32 %v6720_v33, %v1890_v56 }
 0x4b8   : > { %v3677_v40 = vpack.c.bf16 %v3661_v24, %v3661_v24 }
 0x4b9   : > { %v3674_v8 = vpack.c.bf16 %v2794_v36, %v2794_v36 }
 0x4bb   : > { %4117 = vrot.lane.b32.xlu1 %v3676_v49, %s6901_s22  ;;  %v8406_v60 = vsel %vm3683_vm3, %v3674_v8, 0 }
 0x4bc   : > { %6274 = vmatpush3.bf16.xpose.msra.mxu1 %v8406_v60 }
 0x4bd   : > { %6285 = vmatprep.subr.bf16.mxu1 %v8852_v29 }
 0x4bf   : > { %4170 = vrot.lane.b32.xlu1 %v3677_v40, %s6901_s22 }
 0x4c3   : > { %6276 = vmatmul.mubr.msk.bf16.vlgmr.msra.gmra.mrb[116].mxu1 %vm3683_vm3, %v8883_v51 }
 0x4c4   : > { %6287 = vmatprep.mubr.msk.bf16.mxu1 %vm6909_vm10, %v8852_v29 }
 0x4c7   : > { %v3644_v6 = vpop.permute.xlu0 %3643 }
 0x4c8   : > { %v3663_v59 = vmul.f32 %v3644_v6, %v3314_v14 }
 0x4ca   : > { %v3679_v21 = vpack.c.bf16 %v3663_v59, %v3663_v59 }
 0x4d4   : > { %v8415_v61 = vpop.f32.mrb[100].mxu1 }
 0x4d5   : > { %v6235_v39 = vpop.f32.mrb[101].mxu1 }
 0x4d6   : > { %v8417_v58 = vpop.f32.mrb[102].mxu1 }
 0x4d7   : > { %v6236_v26 = vpop.f32.mrb[103].mxu1 }
 0x4e0   : > { %v3642_v55 = vpop.permute.xlu1 %3641 }
 0x4e1   : > { %v3662_v57 = vmul.f32 %v3642_v55, %v8260_v37 }
 0x4e3   : > { %v3678_v43 = vpack.c.bf16 %v3662_v57, %v3662_v57 }
 0x4e5   : > { %4223 = vrot.lane.b32.xlu1 %v3678_v43, %s6901_s22 }
 0x4e9   : > { %4276 = vrot.lane.b32.xlu1 %v3679_v21, %s6901_s22 }
 0x4f4   : > { %v8431_v48 = vpop.f32.mrb[104].mxu1 }
 0x4f5   : > { %v6241_v3 = vpop.f32.mrb[105].mxu1 }
 0x4f6   : > { %v8433_v17 = vpop.f32.mrb[106].mxu1 }
 0x4f7   : > { %v6242_v2 = vpop.f32.mrb[107].mxu1 }
 0x4ff   : > { %v3648_v28 = vpop.permute.xlu0 %3647 }
 0x500   : > { %v3665_v30 = vmul.f32 %v3648_v28, %v8275_v31 }
 0x502   : > { %v3681_v56 = vpack.c.bf16 %v3665_v30, %v3665_v30 }
 0x503   : > { %v4065_v12 = vpop.permute.xlu0 %4064 }
 0x504   : > { %v8436_v37 = vsel %vm3683_vm3, %v4065_v12, 0 }
 0x505   : > { %6280 = vmatpush3.bf16.xpose.msra.mxu0 %v8436_v37 }
 0x506   : > { %6291 = vmatprep.subr.bf16.mxu0 %v8852_v29 }
 0x507   : > { %v8440_v35 = vpop.permute.xlu0 %4061 }
 0x50c   : > { %6282 = vmatmul.mubr.msk.bf16.vlgmr.msra.gmra.mrb[88].mxu0 %vm3683_vm3, %v8440_v35 }
 0x50d   : > { %6293 = vmatprep.mubr.msk.bf16.mxu0 %vm6909_vm10, %v8852_v29 }
 0x517   : > { %v3646_v52 = vpop.permute.xlu1 %3645 }
 0x518   : > { %v3664_v22 = vmul.f32 %v3646_v52, %v8290_v25 }
 0x51a   : > { %v3680_v62 = vpack.c.bf16 %v3664_v22, %v3664_v22 }
 0x51c   : > { %4329 = vrot.lane.b32.xlu1 %v3680_v62, %s6901_s22 }
 0x520   : > { %4382 = vrot.lane.b32.xlu1 %v3681_v56, %s6901_s22 }
 0x522   : > { %v8450_v45 = vpop.f32.mrb[76].mxu0 }
 0x523   : > { %v6247_v33 = vpop.f32.mrb[77].mxu0 }
 0x524   : > { %v8452_v54 = vpop.f32.mrb[78].mxu0 }
 0x525   : > { %v6248_v13 = vpop.f32.mrb[79].mxu0 }
 0x529   : > { %v3650_v36 = vpop.permute.xlu1 %3649 }
 0x52a   : > { %v3666_v24 = vmul.f32 %v3650_v36, %v8296_v47  ;;  %v8468_v47 = vpop.permute.xlu0 %4114 }
 0x52c   : > { %v3682_v49 = vpack.c.bf16 %v3666_v24, %v3666_v24 }
 0x52d   : > { %v4118_v8 = vpop.permute.xlu1 %4117 }
 0x52e   : > { %v8456_v25 = vsel %vm3683_vm3, %v4118_v8, 0  ;;  %4435 = vrot.lane.b32.xlu1 %v3682_v49, %s6901_s22  ;;  %v4168_v46 = vpop.permute.xlu0 %4167 }
 0x52f   : > { %6286 = vmatpush3.bf16.xpose.msra.mxu1 %v8456_v25 }
 0x530   : > { %6297 = vmatprep.subr.bf16.mxu1 %v8852_v29 }
 0x531   : > { %v4171_v31 = vpop.permute.xlu1 %4170 }
 0x532   : > { %4432 = vrot.lane.b32.xlu1 %v8883_v51, %s6901_s22  ;;  %v8466_v39 = vsel %vm3683_vm3, %v4171_v31, 0  ;;  %v8493_v55 = vpop.permute.xlu0 %4220 }
 0x533   : > { %6292 = vmatpush3.bf16.xpose.msra.mxu0 %v8466_v39 }
 0x534   : > { %v8463_v40 = vpop.f32.mrb[80].mxu0  ;;  %6303 = vmatprep.subr.bf16.mxu0 %v8852_v29 }
 0x535   : > { %v6259_v26 = vpop.f32.mrb[81].mxu0 }
 0x536   : > { %v8471_v38 = vpop.f32.mrb[82].mxu0  ;;  %6288 = vmatmul.mubr.msk.bf16.vlgmr.msra.gmra.mrb[120].mxu1 %vm3683_vm3, %v8468_v47  ;;  %v4274_v57 = vpop.permute.xlu0 %4273 }
 0x537   : > { %v6260_v53 = vpop.f32.mrb[83].mxu0  ;;  %6299 = vmatprep.mubr.msk.bf16.mxu1 %vm6909_vm10, %v8852_v29 }
 0x53a   : > { %6294 = vmatmul.mubr.msk.bf16.vlgmr.msra.gmra.mrb[92].mxu0 %vm3683_vm3, %v4168_v46  ;;  %v4327_v62 = vpop.permute.xlu0 %4326 }
 0x53b   : > { %6305 = vmatprep.mubr.msk.bf16.mxu0 %vm6909_vm10, %v8852_v29 }
 0x53e   : > { %v4380_v13 = vpop.permute.xlu0 %4379 }
 0x54d   : > { %v8481_v16 = vpop.f32.mrb[108].mxu1 }
 0x54e   : > { %v6253_v44 = vpop.f32.mrb[109].mxu1 }
 0x54f   : > { %v8483_v11 = vpop.f32.mrb[110].mxu1 }
 0x550   : > { %v6254_v19 = vpop.f32.mrb[111].mxu1 }
 0x557   : > { %v4224_v42 = vpop.permute.xlu1 %4223 }
 0x558   : > { %v8486_v5 = vsel %vm3683_vm3, %v4224_v42, 0 }
 0x559   : > { %6298 = vmatpush3.bf16.xpose.msra.mxu1 %v8486_v5 }
 0x55a   : > { %6309 = vmatprep.subr.bf16.mxu1 %v8852_v29 }
 0x55b   : > { %v4277_v41 = vpop.permute.xlu1 %4276 }
 0x55c   : > { %v8491_v6 = vsel %vm3683_vm3, %v4277_v41, 0 }
 0x55d   : > { %6304 = vmatpush3.bf16.xpose.msra.mxu0 %v8491_v6 }
 0x55e   : > { %6315 = vmatprep.subr.bf16.mxu0 %v8852_v29 }
 0x560   : > { %6300 = vmatmul.mubr.msk.bf16.vlgmr.msra.gmra.mrb[124].mxu1 %vm3683_vm3, %v8493_v55 }
 0x561   : > { %6311 = vmatprep.mubr.msk.bf16.mxu1 %vm6909_vm10, %v8852_v29 }
 0x564   : > { %6306 = vmatmul.mubr.msk.bf16.vlgmr.msra.gmra.mrb[96].mxu0 %vm3683_vm3, %v4274_v57 }
 0x565   : > { %6317 = vmatprep.mubr.msk.bf16.mxu0 %vm6909_vm10, %v8852_v29 }
 0x56c   : > { %v8504_v23 = vpop.f32.mrb[84].mxu0 }
 0x56d   : > { %v6271_v14 = vpop.f32.mrb[85].mxu0 }
 0x56e   : > { %v8506_v59 = vpop.f32.mrb[86].mxu0 }
 0x56f   : > { %v6272_v43 = vpop.f32.mrb[87].mxu0 }
 0x584   : > { %v8508_v21 = vpop.f32.mrb[112].mxu1 }
 0x585   : > { %v6265_v3 = vpop.f32.mrb[113].mxu1 }
 0x586   : > { %v8510_v2 = vpop.f32.mrb[114].mxu1 }
 0x587   : > { %v6266_v28 = vpop.f32.mrb[115].mxu1 }
 0x58e   : > { %v4330_v12 = vpop.permute.xlu1 %4329 }
 0x58f   : > { %v8513_v52 = vsel %vm3683_vm3, %v4330_v12, 0 }
 0x590   : > { %6310 = vmatpush3.bf16.xpose.msra.mxu1 %v8513_v52 }
 0x591   : > { %6321 = vmatprep.subr.bf16.mxu1 %v8852_v29 }
 0x592   : > { %v4383_v22 = vpop.permute.xlu1 %4382 }
 0x593   : > { %v8518_v30 = vsel %vm3683_vm3, %v4383_v22, 0 }
 0x594   : > { %6316 = vmatpush3.bf16.xpose.msra.mxu0 %v8518_v30 }
 0x595   : > { %6327 = vmatprep.subr.bf16.mxu0 %v8852_v29 }
 0x596   : > { %v8523_v56 = vpop.f32.mrb[116].mxu1 }
 0x597   : > { %6312 = vmatmul.mubr.msk.bf16.vlgmr.msra.gmra.mrb[128].mxu1 %vm3683_vm3, %v4327_v62  ;;  %v6277_v33 = vpop.f32.mrb[117].mxu1 }
 0x598   : > { %6323 = vmatprep.mubr.msk.bf16.mxu1 %vm6909_vm10, %v8852_v29  ;;  %v8527_v36 = vpop.f32.mrb[118].mxu1 }
 0x599   : > { %v6278_v24 = vpop.f32.mrb[119].mxu1 }
 0x59b   : > { %6318 = vmatmul.mubr.msk.bf16.vlgmr.msra.gmra.mrb[100].mxu0 %vm3683_vm3, %v4380_v13 }
 0x59c   : > { %6328 = vmatpush3.bf16.xpose.msra.mxu0 %v8137_v0  ;;  %6329 = vmatprep.mubr.msk.bf16.mxu0 %vm6909_vm10, %v8852_v29 }
 0x59d   : > { %6339 = vmatprep.subr.bf16.mxu0 %v8852_v29 }
 0x5a0   : > { %v4436_v49 = vpop.permute.xlu1 %4435 }
 0x5a1   : > { %v8537_v8 = vsel %vm3683_vm3, %v4436_v49, 0 }
 0x5a2   : > { %6322 = vmatpush3.bf16.xpose.msra.mxu1 %v8537_v8 }
 0x5a3   : > { %6330 = vmatmul.mubr.msk.bf16.vlgmr.msra.gmra.mrb[104].mxu0 %vm3683_vm3, %v8440_v35  ;;  %6333 = vmatprep.subr.bf16.mxu1 %v8852_v29 }
 0x5a4   : > { %6340 = vmatpush3.bf16.xpose.msra.mxu0 %v8305_v27  ;;  %6341 = vmatprep.mubr.msk.bf16.mxu0 %vm6909_vm10, %v8852_v29  ;;  %v4433_v0 = vpop.permute.xlu1 %4432 }
 0x5a5   : > { %6351 = vmatprep.subr.bf16.mxu0 %v8852_v29 }
 0x5a9   : > { %6324 = vmatmul.mubr.msk.bf16.vlgmr.msra.gmra.mrb[132].mxu1 %vm3683_vm3, %v4433_v0 }
 0x5aa   : > { %6334 = vmatpush3.bf16.xpose.msra.mxu1 %v8246_v50  ;;  %6335 = vmatprep.mubr.msk.bf16.mxu1 %vm6909_vm10, %v8852_v29 }
 0x5ab   : > { %6342 = vmatmul.mubr.msk.bf16.vlgmr.msra.gmra.mrb[108].mxu0 %vm3683_vm3, %v4168_v46  ;;  %6345 = vmatprep.subr.bf16.mxu1 %v8852_v29 }
 0x5ac   : > { %6352 = vmatpush3.bf16.xpose.msra.mxu0 %v8317_v32  ;;  %6353 = vmatprep.mubr.msk.bf16.mxu0 %vm6909_vm10, %v8852_v29 }
 0x5ad   : > { %6363 = vmatprep.subr.bf16.mxu0 %v8852_v29 }
 0x5b1   : > { %6336 = vmatmul.mubr.msk.bf16.vlgmr.msra.gmra.mrb[136].mxu1 %vm3683_vm3, %v8468_v47 }
 0x5b2   : > { %6346 = vmatpush3.bf16.xpose.msra.mxu1 %v8327_v15  ;;  %6347 = vmatprep.mubr.msk.bf16.mxu1 %vm6909_vm10, %v8852_v29 }
 0x5b3   : > { %6354 = vmatmul.mubr.msk.bf16.vlgmr.msra.gmra.mrb[112].mxu0 %vm3683_vm3, %v4274_v57  ;;  %6357 = vmatprep.subr.bf16.mxu1 %v8852_v29 }
 0x5b4   : > { %6364 = vmatpush3.bf16.xpose.msra.mxu0 %v8352_v9  ;;  %6365 = vmatprep.mubr.msk.bf16.mxu0 %vm6909_vm10, %v8852_v29 }
 0x5b5   : > { %6375 = vmatprep.subr.bf16.mxu0 %v8852_v29 }
 0x5b9   : > { %6348 = vmatmul.mubr.msk.bf16.vlgmr.msra.gmra.mrb[140].mxu1 %vm3683_vm3, %v8493_v55 }
 0x5ba   : > { %6358 = vmatpush3.bf16.xpose.msra.mxu1 %v8374_v20  ;;  %6359 = vmatprep.mubr.msk.bf16.mxu1 %vm6909_vm10, %v8852_v29 }
 0x5bb   : > { %6366 = vmatmul.mubr.msk.bf16.vlgmr.msra.gmra.mrb[116].mxu0 %vm3683_vm3, %v4380_v13  ;;  %6369 = vmatprep.subr.bf16.mxu1 %v8852_v29 }
 0x5bc   : > { %6376 = vmatpush3.bf16.xpose.msra.mxu0 %v8436_v37  ;;  %6377 = vmatprep.mubr.msk.bf16.mxu0 %vm6909_vm10, %v8852_v29 }
 0x5bd   : > { %6387 = vmatprep.subr.bf16.mxu0 %v8852_v29 }
 0x5c1   : > { %6360 = vmatmul.mubr.msk.bf16.vlgmr.msra.gmra.mrb[144].mxu1 %vm3683_vm3, %v4327_v62 }
 0x5c2   : > { %6370 = vmatpush3.bf16.xpose.msra.mxu1 %v8406_v60  ;;  %6371 = vmatprep.mubr.msk.bf16.mxu1 %vm6909_vm10, %v8852_v29 }
 0x5c3   : > { %6378 = vmatmul.mubr.msk.bf16.vlgmr.msra.gmra.mrb[104].mxu0 %vm3683_vm3, %v7228_v4  ;;  %6381 = vmatprep.subr.bf16.mxu1 %v8852_v29 }
 0x5c4   : > { %6388 = vmatpush3.bf16.xpose.msra.mxu0 %v8466_v39  ;;  %6389 = vmatprep.mubr.msk.bf16.mxu0 %vm6909_vm10, %v8852_v29 }
 0x5c5   : > { %6399 = vmatprep.subr.bf16.mxu0 %v8852_v29 }
 0x5c9   : > { %6372 = vmatmul.mubr.msk.bf16.vlgmr.msra.gmra.mrb[148].mxu1 %vm3683_vm3, %v4433_v0 }
 0x5ca   : > { %6382 = vmatpush3.bf16.xpose.msra.mxu1 %v8456_v25  ;;  %6383 = vmatprep.mubr.msk.bf16.mxu1 %vm6909_vm10, %v8852_v29 }
 0x5cb   : > { %6390 = vmatmul.mubr.msk.bf16.vlgmr.msra.gmra.mrb[108].mxu0 %vm3683_vm3, %v7235_v10  ;;  %6393 = vmatprep.subr.bf16.mxu1 %v8852_v29 }
 0x5cc   : > { %6400 = vmatpush3.bf16.xpose.msra.mxu0 %v8491_v6  ;;  %6401 = vmatprep.mubr.msk.bf16.mxu0 %vm6909_vm10, %v8852_v29 }
 0x5cd   : > { %6411 = vmatprep.subr.bf16.mxu0 %v8852_v29 }
 0x5d1   : > { %6384 = vmatmul.mubr.msk.bf16.vlgmr.msra.gmra.mrb[136].mxu1 %vm3683_vm3, %v7226_v1 }
 0x5d2   : > { %6394 = vmatpush3.bf16.xpose.msra.mxu1 %v8486_v5  ;;  %6395 = vmatprep.mubr.msk.bf16.mxu1 %vm6909_vm10, %v8852_v29 }
 0x5d3   : > { %6402 = vmatmul.mubr.msk.bf16.vlgmr.msra.gmra.mrb[112].mxu0 %vm3683_vm3, %v7239_v18  ;;  %6405 = vmatprep.subr.bf16.mxu1 %v8852_v29 }
 0x5d4   : > { %6412 = vmatpush3.bf16.xpose.msra.mxu0 %v8518_v30  ;;  %6413 = vmatprep.mubr.msk.bf16.mxu0 %vm6909_vm10, %v8852_v29 }
 0x5d9   : > { %6396 = vmatmul.mubr.msk.bf16.vlgmr.msra.gmra.mrb[140].mxu1 %vm3683_vm3, %v7233_v7 }
 0x5da   : > { %6406 = vmatpush3.bf16.xpose.msra.mxu1 %v8513_v52  ;;  %6407 = vmatprep.mubr.msk.bf16.mxu1 %vm6909_vm10, %v8852_v29 }
 0x5db   : > { %6414 = vmatmul.mubr.msk.bf16.vlgmr.msra.gmra.mrb[116].mxu0 %vm3683_vm3, %v8869_v34  ;;  %6417 = vmatprep.subr.bf16.mxu1 %v8852_v29 }
 0x5df   : > { %v4106_v4 = vpop.f32.mrb[88].mxu0 }
 0x5e0   : > { %v4484_v1 = vsub.f32 %v8415_v61, %v4106_v4  ;;  %v6283_v10 = vpop.f32.mrb[89].mxu0  ;;  %v6640_v4 = vld [vmem:[#allocation7] sm:$0xff]  }
 0x5e1   : > { %v4109_v18 = vpop.f32.mrb[90].mxu0  ;;  %6408 = vmatmul.mubr.msk.bf16.vlgmr.msra.gmra.mrb[144].mxu1 %vm3683_vm3, %v8871_v63  ;;  %6423 = vmatprep.subr.bf16.mxu0 %v6640_v4 }
 0x5e2   : > { %v4485_v50 = vsub.f32 %v8417_v58, %v4109_v18  ;;  %v6284_v27 = vpop.f32.mrb[91].mxu0  ;;  %6418 = vmatpush3.bf16.xpose.msra.mxu1 %v8537_v8  ;;  %6419 = vmatprep.mubr.msk.bf16.mxu1 %vm6909_vm10, %v8852_v29 }
 0x5e3   : > { %6424 = vmatpush3.bf16.msra.mxu0 %v6640_v4 }
 0x5e4   : > { %v8620_v32 = vpack.c.bf16 %v4485_v50, %v4484_v1 }
 0x5e9   : > { %6420 = vmatmul.mubr.msk.bf16.vlgmr.msra.gmra.mrb[148].mxu1 %vm3683_vm3, %v8883_v51 }
 0x609   : > { %v4159_v7 = vpop.f32.mrb[120].mxu1 }
 0x60a   : > { %v4486_v15 = vsub.f32 %v8431_v48, %v4159_v7  ;;  %v6289_v9 = vpop.f32.mrb[121].mxu1 }
 0x60b   : > { %v4162_v34 = vpop.f32.mrb[122].mxu1 }
 0x60c   : > { %v4487_v20 = vsub.f32 %v8433_v17, %v4162_v34  ;;  %v6290_v60 = vpop.f32.mrb[123].mxu1 }
 0x60d   : > { %v4212_v61 = vpop.f32.mrb[92].mxu0 }
 0x60e   : > { %v8631_v58 = vpack.c.bf16 %v4487_v20, %v4486_v15  ;;  %v4488_v63 = vsub.f32 %v8450_v45, %v4212_v61  ;;  %v6295_v37 = vpop.f32.mrb[93].mxu0 }
 0x60f   : > { %v4215_v35 = vpop.f32.mrb[94].mxu0 }
 0x610   : > { %v4489_v29 = vsub.f32 %v8452_v54, %v4215_v35  ;;  %v6296_v25 = vpop.f32.mrb[95].mxu0 }
 0x612   : > { %v8635_v31 = vpack.c.bf16 %v4489_v29, %v4488_v63 }
 0x633   : > { %v4265_v51 = vpop.f32.mrb[124].mxu1 }
 0x634   : > { %v4490_v48 = vsub.f32 %v8481_v16, %v4265_v51  ;;  %v6301_v39 = vpop.f32.mrb[125].mxu1 }
 0x635   : > { %v4268_v47 = vpop.f32.mrb[126].mxu1 }
 0x636   : > { %v4491_v17 = vsub.f32 %v8483_v11, %v4268_v47  ;;  %v6302_v26 = vpop.f32.mrb[127].mxu1 }
 0x637   : > { %v4318_v53 = vpop.f32.mrb[96].mxu0 }
 0x638   : > { %v8639_v46 = vpack.c.bf16 %v4491_v17, %v4490_v48  ;;  %v4492_v45 = vsub.f32 %v8463_v40, %v4318_v53  ;;  %v6307_v44 = vpop.f32.mrb[97].mxu0 }
 0x639   : > { %v4321_v19 = vpop.f32.mrb[98].mxu0 }
 0x63a   : > { %v4493_v54 = vsub.f32 %v8471_v38, %v4321_v19  ;;  %v6308_v42 = vpop.f32.mrb[99].mxu0 }
 0x63c   : > { %v8643_v5 = vpack.c.bf16 %v4493_v54, %v4492_v45 }
 0x66a   : > { %v4371_v41 = vpop.f32.mrb[128].mxu1 }
 0x66b   : > { %v4494_v16 = vsub.f32 %v8508_v21, %v4371_v41  ;;  %v6313_v6 = vpop.f32.mrb[129].mxu1 }
 0x66c   : > { %v4374_v55 = vpop.f32.mrb[130].mxu1 }
 0x66d   : > { %v4495_v11 = vsub.f32 %v8510_v2, %v4374_v55  ;;  %v6314_v57 = vpop.f32.mrb[131].mxu1 }
 0x66e   : > { %v4424_v14 = vpop.f32.mrb[100].mxu0 }
 0x66f   : > { %v8647_v43 = vpack.c.bf16 %v4495_v11, %v4494_v16  ;;  %v4496_v40 = vsub.f32 %v8504_v23, %v4424_v14  ;;  %v6319_v3 = vpop.f32.mrb[101].mxu0 }
 0x670   : > { %v4427_v28 = vpop.f32.mrb[102].mxu0 }
 0x671   : > { %v4497_v38 = vsub.f32 %v8506_v59, %v4427_v28  ;;  %v6320_v12 = vpop.f32.mrb[103].mxu0 }
 0x673   : > { %v8651_v52 = vpack.c.bf16 %v4497_v38, %v4496_v40 }
 0x67c   : > { %v4477_v22 = vpop.f32.mrb[132].mxu1 }
 0x67d   : > { %v4498_v21 = vsub.f32 %v8523_v56, %v4477_v22  ;;  %v6325_v30 = vpop.f32.mrb[133].mxu1 }
 0x67e   : > { %v4480_v62 = vpop.f32.mrb[134].mxu1 }
 0x67f   : > { %v4499_v2 = vsub.f32 %v8527_v36, %v4480_v62  ;;  %v6326_v33 = vpop.f32.mrb[135].mxu1 }
 0x681   : > { %v8655_v13 = vpack.c.bf16 %v4499_v2, %v4498_v21 }
 0x696   : > { %v4862_v24 = vpop.f32.mrb[104].mxu0 }
 0x697   : > { %v6379_v49 = vpop.f32.mrb[105].mxu0 }
 0x698   : > { %v4865_v23 = vpop.f32.mrb[106].mxu0 }
 0x699   : > { %v5164_v8 = vpack.c.bf16 %v4865_v23, %v4862_v24  ;;  %v6380_v0 = vpop.f32.mrb[107].mxu0 }
 0x69b   : > { %5180 = vrot.lane.b32.xlu0 %v5164_v8, %s6900_s20 }
 0x69e   : > { %v4944_v59 = vpop.f32.mrb[108].mxu0 }
 0x69f   : > { %v6391_v1 = vpop.f32.mrb[109].mxu0 }
 0x6a0   : > { %v4947_v10 = vpop.f32.mrb[110].mxu0 }
 0x6a1   : > { %v5166_v56 = vpack.c.bf16 %v4947_v10, %v4944_v59  ;;  %v6392_v18 = vpop.f32.mrb[111].mxu0 }
 0x6a3   : > { %5184 = vrot.lane.b32.xlu0 %v5166_v56, %s6900_s20 }
 0x6a4   : > { %v4903_v7 = vpop.f32.mrb[136].mxu1 }
 0x6a5   : > { %v6385_v34 = vpop.f32.mrb[137].mxu1 }
 0x6a6   : > { %v5026_v36 = vpop.f32.mrb[112].mxu0  ;;  %v4906_v20 = vpop.f32.mrb[138].mxu1 }
 0x6a7   : > { %v6403_v50 = vpop.f32.mrb[113].mxu0  ;;  %v5165_v60 = vpack.c.bf16 %v4906_v20, %v4903_v7  ;;  %v6386_v61 = vpop.f32.mrb[139].mxu1 }
 0x6a8   : > { %v5029_v27 = vpop.f32.mrb[114].mxu0 }
 0x6a9   : > { %v5168_v15 = vpack.c.bf16 %v5029_v27, %v5026_v36  ;;  %v6404_v9 = vpop.f32.mrb[115].mxu0  ;;  %5182 = vrot.lane.b32.xlu1 %v5165_v60, %s6900_s20 }
 0x6ab   : > { %5188 = vrot.lane.b32.xlu0 %v5168_v15, %s6900_s20 }
 0x6ac   : > { %v4985_v29 = vpop.f32.mrb[140].mxu1 }
 0x6ad   : > { %v6397_v48 = vpop.f32.mrb[141].mxu1 }
 0x6ae   : > { %v5108_v63 = vpop.f32.mrb[116].mxu0  ;;  %v4988_v39 = vpop.f32.mrb[142].mxu1 }
 0x6af   : > { %v6415_v37 = vpop.f32.mrb[117].mxu0  ;;  %v5167_v47 = vpack.c.bf16 %v4988_v39, %v4985_v29  ;;  %v6398_v17 = vpop.f32.mrb[143].mxu1 }
 0x6b0   : > { %v5111_v35 = vpop.f32.mrb[118].mxu0 }
 0x6b1   : > { %v5170_v25 = vpack.c.bf16 %v5111_v35, %v5108_v63  ;;  %v6416_v51 = vpop.f32.mrb[119].mxu0  ;;  %5186 = vrot.lane.b32.xlu1 %v5167_v47, %s6900_s20 }
 0x6b3   : > { %5192 = vrot.lane.b32.xlu0 %v5170_v25, %s6900_s20 }
 0x6b4   : > { %v5067_v26 = vpop.f32.mrb[144].mxu1 }
 0x6b5   : > { %v6409_v53 = vpop.f32.mrb[145].mxu1 }
 0x6b6   : > { %v5070_v45 = vpop.f32.mrb[146].mxu1 }
 0x6b7   : > { %v5169_v44 = vpack.c.bf16 %v5070_v45, %v5067_v26  ;;  %v6410_v19 = vpop.f32.mrb[147].mxu1 }
 0x6b9   : > { %5190 = vrot.lane.b32.xlu1 %v5169_v44, %s6900_s20 }
 0x6bc   : > { %v5149_v54 = vpop.f32.mrb[148].mxu1 }
 0x6bd   : > { %v6421_v42 = vpop.f32.mrb[149].mxu1 }
 0x6be   : > { %v5152_v41 = vpop.f32.mrb[150].mxu1 }
 0x6bf   : > { %v5171_v16 = vpack.c.bf16 %v5152_v41, %v5149_v54  ;;  %v6422_v6 = vpop.f32.mrb[151].mxu1 }
 0x6c1   : > { %5194 = vrot.lane.b32.xlu1 %v5171_v16, %s6900_s20 }
 0x70d   : > { %v5181_v55 = vpop.permute.xlu0 %5180 }
 0x70e   : > { %v5198_v11 = vsel %vm3683_vm3, %v8620_v32, %v5181_v55 }
 0x70f   : > { %6425 = vmatprep.mubr.msk.bf16.mxu0 %vm762_vm0, %v5198_v11 }
 0x715   : > { %v5185_v57 = vpop.permute.xlu0 %5184 }
 0x716   : > { %v5204_v3 = vsel %vm3683_vm3, %v8635_v31, %v5185_v57 }
 0x71b   : > { %v5183_v14 = vpop.permute.xlu1 %5182 }
 0x71c   : > { %v5201_v40 = vsel %vm3683_vm3, %v8631_v58, %v5183_v14 }
 0x71d   : > { %6426 = vmatmul.mubr.msk.bf16.vlgmr.msra.gmra.mrb[120].mxu0 %vm762_vm0, %v5201_v40  ;;  %v5189_v28 = vpop.permute.xlu0 %5188 }
 0x71e   : > { %6429 = vmatprep.mubr.msk.bf16.mxu0 %vm762_vm0, %v5204_v3  ;;  %v5210_v12 = vsel %vm3683_vm3, %v8643_v5, %v5189_v28 }
 0x723   : > { %v5187_v38 = vpop.permute.xlu1 %5186 }
 0x724   : > { %v5207_v32 = vsel %vm3683_vm3, %v8639_v46, %v5187_v38 }
 0x725   : > { %6430 = vmatmul.mubr.msk.bf16.gmra.mrb[124].mxu0 %vm762_vm0, %v5207_v32  ;;  %v5193_v58 = vpop.permute.xlu0 %5192 }
 0x726   : > { %6433 = vmatprep.mubr.msk.bf16.mxu0 %vm762_vm0, %v5210_v12  ;;  %v5216_v21 = vsel %vm3683_vm3, %v8651_v52, %v5193_v58 }
 0x72b   : > { %v5191_v22 = vpop.permute.xlu1 %5190 }
 0x72c   : > { %v5213_v31 = vsel %vm3683_vm3, %v8647_v43, %v5191_v22 }
 0x72d   : > { %6434 = vmatmul.mubr.msk.bf16.gmra.mrb[128].mxu0 %vm762_vm0, %v5213_v31 }
 0x72e   : > { %6437 = vmatprep.mubr.msk.bf16.mxu0 %vm762_vm0, %v5216_v21 }
 0x733   : > { %v5195_v46 = vpop.permute.xlu1 %5194 }
 0x734   : > { %v5219_v5 = vsel %vm3683_vm3, %v8655_v13, %v5195_v46 }
 0x735   : > { %6438 = vmatmul.mubr.msk.bf16.gmra.mrb[132].mxu0 %vm762_vm0, %v5219_v5 }
 0x7f0   : > { %v6427_v30 = vpop.f32.mrb[120].mxu0 }
 0x7f1   : > { %v5276_v62 = vpop.f32.mrb[121].mxu0 }
 0x7f2   : > { %v6428_v2 = vpop.f32.mrb[122].mxu0 }
 0x7f3   : > { %v5807_v33 = vpack.c.bf16 %v6428_v2, %v6427_v30  ;;  %v5279_v24 = vpop.f32.mrb[123].mxu0 }
 0x7f4   : > { %v5802_v43 = vpack.c.bf16 %v5279_v24, %v5276_v62 }
 0x7f5   : > { %5839 = vst [vmem:[%s235_s11 + $0x8] sm:$0xff] %v5807_v33  }
 0x7f6   : > { %5803 = vst [vmem:[%s235_s11] sm:$0xff] %v5802_v43  }
 0x7f8   : > { %v6431_v52 = vpop.f32.mrb[124].mxu0 }
 0x7f9   : > { %v5292_v49 = vpop.f32.mrb[125].mxu0 }
 0x7fa   : > { %v6432_v23 = vpop.f32.mrb[126].mxu0 }
 0x7fb   : > { %v5817_v8 = vpack.c.bf16 %v6432_v23, %v6431_v52  ;;  %v5295_v0 = vpop.f32.mrb[127].mxu0 }
 0x7fc   : > { %v5812_v59 = vpack.c.bf16 %v5295_v0, %v5292_v49 }
 0x7fd   : > { %5841 = vst [vmem:[%s235_s11 + $0x18] sm:$0xff] %v5817_v8  }
 0x7fe   : > { %5840 = vst [vmem:[%s235_s11 + $0x10] sm:$0xff] %v5812_v59  }
 0x800   : > { %v6435_v13 = vpop.f32.mrb[128].mxu0 }
 0x801   : > { %v5308_v4 = vpop.f32.mrb[129].mxu0 }
 0x802   : > { %v6436_v1 = vpop.f32.mrb[130].mxu0 }
 0x803   : > { %v5827_v10 = vpack.c.bf16 %v6436_v1, %v6435_v13  ;;  %v5311_v56 = vpop.f32.mrb[131].mxu0 }
 0x804   : > { %v5822_v18 = vpack.c.bf16 %v5311_v56, %v5308_v4 }
 0x805   : > { %5843 = vst [vmem:[%s235_s11 + $0x28] sm:$0xff] %v5827_v10  }
 0x806   : > { %5842 = vst [vmem:[%s235_s11 + $0x20] sm:$0xff] %v5822_v18  }
 0x808   : > { %v6439_v36 = vpop.f32.mrb[132].mxu0 }
 0x809   : > { %v5324_v50 = vpop.f32.mrb[133].mxu0 }
 0x80a   : > { %v6440_v27 = vpop.f32.mrb[134].mxu0 }
 0x80b   : > { %v5837_v7 = vpack.c.bf16 %v6440_v27, %v6439_v36  ;;  %v5327_v15 = vpop.f32.mrb[135].mxu0 }
 0x80c   : > { %v5832_v9 = vpack.c.bf16 %v5327_v15, %v5324_v50 }
 0x80d   : > { %5845 = vst [vmem:[%s235_s11 + $0x38] sm:$0xff] %v5837_v7  }
 0x80e   : > { %5844 = vst [vmem:[%s235_s11 + $0x30] sm:$0xff] %v5832_v9  }
 0x80f   : > { %6820 = shalt.err (!%p6817_p2)
}
 0x810   : > { %s6821_s6 = scalar_lea.hbm %s8696_s10, 1024  ;;  %s6825_s20 = scalar_lea.hbm %s8748_s3, 2048 }
 0x811   : > { %p6822_p0 = scmp.ne.s32.totalorder %s8696_s10, %s6821_s6  ;;  %p6826_p6 = scmp.lt.u32.totalorder %s8696_s10, %s8748_s3 }
 0x812   : > { %p6827_p7 = scmp.lt.u32.totalorder %s6825_s20, %s6821_s6  ;;  %p6829_p8 = scmp.lt.u32.totalorder %s6821_s6, %s8696_s10 }
 0x813   : > { %p6823_p4 = pnand %p6822_p0, %p8890_p12 }
 0x814   : > { %p6828_p11 = por %p6827_p7, %p6826_p6 }
 0x815   : > { %p6824_p13 = pneg %p6823_p4 }
 0x816   : > { %p6830_p1 = por %p6829_p8, %p6828_p11 }
 0x818   : > { %p6831_p10 = pnand %p6830_p1, %p6824_p13 }
 0x81a   : > { %6834 = shalt.err (!%p6831_p10)
}
 0x81b   : > { %s6911_s11 = smov 64   ;;  %s6912_s4 = smov 4  }
 0x81c   : > { %6520 = dma.vmem_to_hbm [thread:$0]  (%p8890_p12), %s8691_s18, 1024, %s8696_s10, %s5420_s30, %s6911_s11, %s6911_s11, %s6912_s4  }
 0x81d PF: > { %s5450_s8 = sand.u32 1, %s6873_s12   ;;  %p8891_p3 = scmp.ne.s32.totalorder %s8808_s23, 0 }
 0x81e   : > { %p8892_p5 = scmp.ge.s32.totalorder %s6893_s17, 2  ;;  %s5451_s9 = scalar_lea.sflag [#allocation4], %s5450_s8 }
 0x820   : > { %p6534_p9 = pnand %p8892_p5, %p8891_p3 }
 0x822   : > { %6868 = dma.done.wait (!%p6534_p9), %s5451_s9, 1024  }
 0x823   : > { %6870 = vsyncadd (!%p6534_p9), %s5451_s9, 4294966272  ;;  %s20_s17 = sadd.s32 1, %s6893_s17   ;;  %s8893_s12 = smov %s6877_s13 }
 0x824   : > { %p17_p2 = scmp.ge.s32.totalorder %s20_s17, 4   ;;  %s8894_s13 = smov %s6881_s14 }
 0x825   : > { %s8895_s14 = smov %s7084_s5  ;;  %s8896_s15 = smov %s6889_s16 }
 0x826   : > { %s8897_s16 = smov %s8899_s27  ;;  %19 = sbr.rel (!%p17_p2) target bundleno = 7 (0x7), region = 85 }
 0x82d   :  { %5456 = vsyncpa [#allocation3], 1 }
 0x82e   :  { %5458 = vsyncpa [#allocation3 + $0x1], 1 }
 0x82f   :  { %5459 = vsyncpa [#allocation6], 1 }
 0x830   :  { %5460 = vsyncpa [#allocation4], 1 }
 0x831   :  { %5462 = vsyncpa [#allocation4 + $0x1], 1 }

</bundles_post_ra>
